<compile_context>
chip_gen: v7x
topology: tpu7x:2x2x1
jax: 0.10.0
libtpu: 0.0.40
codegen_flags: <defaults>
</compile_context>

<pallas_src>
import functools

import jax
import jax.numpy as jnp
from jax import lax
from jax.experimental import pallas as pl
from jax.experimental.pallas import tpu as pltpu

EPS = 1e-5
LANES = 128
SUBLANES = 8


def _round_up(v, m):
    return ((v + m - 1) // m) * m


# ------------------------- Pallas kernels -------------------------

def _conv3x3_acc(x_ref, w_ref, m, wj, kc):
    """Stride-1 3x3 conv via 9 shifted, accumulated matmuls (shift trick).

    x_ref : (1, rows, kc) bf16   padded, row-major-flattened input
    w_ref : (9*kc, tn)    bf16   tap-major weights (BN scale folded in)
    Returns f32 (m, tn); flat row r = y*wj + x holds the conv output at (y, x)
    for x < W (junk columns for x >= W, handled by caller).
    """
    acc = None
    for ky in range(3):
        for kx in range(3):
            off = ky * wj + kx          # wj % 8 == 0 -> kx==0 taps aligned
            lhs = x_ref[0, off:off + m, :]
            t = ky * 3 + kx
            part = jnp.dot(lhs, w_ref[t * kc:(t + 1) * kc, :],
                           preferred_element_type=jnp.float32)
            acc = part if acc is None else acc + part
    return acc


def _conv1_fused_layout_kernel(x_ref, w_ref, b_ref, o_ref, *, m, wj, w_img, kc):
    """conv3x3 + BN + ReLU, stored directly in conv2's padded flat layout:
    zero halo rows, junk columns masked to zero, interior at row wj+1."""
    acc = _conv3x3_acc(x_ref, w_ref, m, wj, kc)
    val = jnp.maximum(acc + b_ref[...], 0.0)                     # f32 epilogue
    col = lax.broadcasted_iota(jnp.int32, (m, 1), 0) % wj
    val = jnp.where(col < w_img, val, 0.0).astype(o_ref.dtype)   # -> bf16
    rows = o_ref.shape[1]
    tn = o_ref.shape[2]
    o_ref[0, :wj + 1, :] = jnp.zeros((wj + 1, tn), o_ref.dtype)            # top halo
    o_ref[0, wj + 1 + m:, :] = jnp.zeros((rows - wj - 1 - m, tn), o_ref.dtype)
    o_ref[0, wj + 1:wj + 1 + m, :] = val


def _conv1_flat_kernel(x_ref, w_ref, b_ref, o_ref, *, m, wj, kc):
    """conv3x3 + BN + ReLU, plain flat output (stride != 1 fallback)."""
    acc = _conv3x3_acc(x_ref, w_ref, m, wj, kc)
    o_ref[0] = jnp.maximum(acc + b_ref[...], 0.0).astype(o_ref.dtype)


def _conv2_proj_kernel(x_ref, w_ref, b_ref, xs_ref, wsc_ref, o_ref, *, m, wj, kc):
    """conv3x3 + BN + (1x1-conv shortcut as one extra matmul) + ReLU."""
    acc = _conv3x3_acc(x_ref, w_ref, m, wj, kc)
    xs = xs_ref[0, wj + 1:wj + 1 + m, :]              # interior rows, bf16
    acc = acc + jnp.dot(xs, wsc_ref[...], preferred_element_type=jnp.float32)
    o_ref[0] = jnp.maximum(acc + b_ref[...], 0.0).astype(o_ref.dtype)


def _conv2_id_kernel(x_ref, w_ref, b_ref, xs_ref, o_ref, *, m, wj, kc):
    """conv3x3 + BN + identity shortcut (plain f32 VPU add) + ReLU."""
    acc = _conv3x3_acc(x_ref, w_ref, m, wj, kc)
    xs = xs_ref[0, wj + 1:wj + 1 + m, :].astype(jnp.float32)
    o_ref[0] = jnp.maximum(acc + b_ref[...] + xs, 0.0).astype(o_ref.dtype)


# ------------------------- JAX glue -------------------------

def _fold_bn(gamma, beta, mean, var):
    scale = gamma / jnp.sqrt(var + EPS)
    bias = beta - mean * scale
    return scale, bias


def _conv3x3_w_mat(w_oihw, scale, cin_pad, cout_pad):
    """(Cout,Cin,3,3) -> (9*cin_pad, cout_pad) bf16, tap-major (ky,kx,ci) rows,
    BN scale folded into the output-channel columns, zero-padded."""
    cout, cin = w_oihw.shape[:2]
    w = jnp.transpose(w_oihw, (2, 3, 1, 0)).astype(jnp.float32)
    w = w * scale[None, None, None, :]
    w = jnp.pad(w, ((0, 0), (0, 0), (0, cin_pad - cin), (0, cout_pad - cout)))
    return w.reshape(9 * cin_pad, cout_pad).astype(jnp.bfloat16)


def _pad_lanes(v, cp):
    return jnp.pad(v.astype(jnp.float32), (0, cp - v.shape[0]))[None, :]  # (1, cp)


def _flatten_padded(x_nhwc, wj):
    """Zero-pad H by (1,2) and W to pitch wj (left 1, right wj-w-1), then
    flatten (H, W) into rows.  wj is a multiple of 8 (sublane-aligned taps)."""
    n, h, w, _ = x_nhwc.shape
    xp = jnp.pad(x_nhwc, ((0, 0), (1, 2), (1, wj - w - 1), (0, 0)))
    return xp.reshape(n, (h + 3) * wj, xp.shape[-1])


def _choose_tn(cp):
    # Tile Cout (lanes) so the resident weight block stays bounded and the grid
    # has extra parallel depth; 256 keeps v6e/v7x's 256-wide MXU full.
    if cp > 256 and cp % 256 == 0:
        return 256
    return cp


def _compiler_params(block_bytes):
    # Double-buffered blocks + slack, floored at 32 MiB and capped at v7x's
    # 64 MiB physical VMEM.  Batch axis and Cout-tile axis are both parallel
    # so v7x's two TensorCores stay busy even at batch 1.
    vmem = int(min(max(2 * block_bytes + (8 << 20), 32 << 20), 64 << 20))
    return pltpu.CompilerParams(
        dimension_semantics=("parallel", "parallel"),
        vmem_limit_bytes=vmem)


def residual_block_forward(x_nchw, params, stride):
    """Matches PyTorch ResidualBlock.forward with eval-mode BatchNorm.
    bf16 MXU operands, f32 accumulation/epilogue."""
    x = jnp.transpose(x_nchw, (0, 2, 3, 1)).astype(jnp.float32)      # NHWC
    n, h, w, cin = x.shape
    cout = params["w1"].shape[0]
    cp = _round_up(cout, LANES)
    tn = _choose_tn(cp)
    jn = cp // tn

    s1, b1 = _fold_bn(params["g1"], params["be1"], params["m1"], params["v1"])
    s2, b2 = _fold_bn(params["g2"], params["be2"], params["m2"], params["v2"])
    x_bf = x.astype(jnp.bfloat16)

    # ---------------- conv1 + bn1 + relu ----------------
    if stride == 1:
        ho, wo = h, w
        wj2 = _round_up(w + 2, SUBLANES)
        rows2 = (h + 3) * wj2
        m2 = h * wj2
        x1_flat = _flatten_padded(x_bf, wj2)                 # (n, rows2, cin)
        w1 = _conv3x3_w_mat(params["w1"], s1, cin, cp)
        b1p = _pad_lanes(b1, cp)
        blk1 = rows2 * cin * 2 + 9 * cin * tn * 2 + tn * 4 + rows2 * tn * 2
        # conv1 writes directly in conv2's padded flat layout (no HBM relayout).
        x2_flat = pl.pallas_call(
            functools.partial(_conv1_fused_layout_kernel,
                              m=m2, wj=wj2, w_img=w, kc=cin),
            out_shape=jax.ShapeDtypeStruct((n, rows2, cp), jnp.bfloat16),
            grid=(n, jn),
            in_specs=[
                pl.BlockSpec((1, rows2, cin), lambda i, j: (i, 0, 0)),
                pl.BlockSpec((9 * cin, tn), lambda i, j: (0, j)),
                pl.BlockSpec((1, tn), lambda i, j: (0, j)),
            ],
            out_specs=pl.BlockSpec((1, rows2, tn), lambda i, j: (i, 0, j)),
            compiler_params=_compiler_params(blk1),
            cost_estimate=pl.CostEstimate(
                flops=2 * n * m2 * 9 * cin * cp, transcendentals=0,
                bytes_accessed=2 * (x1_flat.size + w1.size + n * rows2 * cp)
                               + 4 * cp),
        )(x1_flat, w1, b1p)
        xs_flat = x1_flat          # shortcut re-reads conv1's own flat input
    else:
        # TODO(synk): dedicated strided conv1 kernel (strided lhs rows +
        # in-kernel column subsample) to skip computing the dropped positions.
        wj1 = _round_up(w + 2, SUBLANES)
        rows1 = (h + 3) * wj1
        m1 = h * wj1
        x1_flat = _flatten_padded(x_bf, wj1)
        w1 = _conv3x3_w_mat(params["w1"], s1, cin, cp)
        b1p = _pad_lanes(b1, cp)
        blk1 = rows1 * cin * 2 + 9 * cin * tn * 2 + tn * 4 + m1 * tn * 2
        out1 = pl.pallas_call(
            functools.partial(_conv1_flat_kernel, m=m1, wj=wj1, kc=cin),
            out_shape=jax.ShapeDtypeStruct((n, m1, cp), jnp.bfloat16),
            grid=(n, jn),
            in_specs=[
                pl.BlockSpec((1, rows1, cin), lambda i, j: (i, 0, 0)),
                pl.BlockSpec((9 * cin, tn), lambda i, j: (0, j)),
                pl.BlockSpec((1, tn), lambda i, j: (0, j)),
            ],
            out_specs=pl.BlockSpec((1, m1, tn), lambda i, j: (i, 0, j)),
            compiler_params=_compiler_params(blk1),
            cost_estimate=pl.CostEstimate(
                flops=2 * n * m1 * 9 * cin * cp, transcendentals=0,
                bytes_accessed=2 * (x1_flat.size + w1.size + n * m1 * cp)
                               + 4 * cp),
        )(x1_flat, w1, b1p)
        out1 = out1.reshape(n, h, wj1, cp)[:, :, :w, :]
        out1 = out1[:, ::stride, ::stride, :]
        ho, wo = out1.shape[1], out1.shape[2]
        wj2 = _round_up(wo + 2, SUBLANES)
        rows2 = (ho + 3) * wj2
        m2 = ho * wj2
        x2_flat = _flatten_padded(out1, wj2)                 # (n, rows2, cp)
        xs_img = x_bf[:, ::stride, ::stride, :]              # (n, ho, wo, cin)
        xs_flat = _flatten_padded(xs_img, wj2)               # (n, rows2, cin)

    # ---------------- conv2 + bn2 (+ shortcut) + relu ----------------
    w2 = _conv3x3_w_mat(params["w2"], s2, cp, cp)
    has_proj = (stride != 1) or (cin != cout)
    if has_proj:
        ssc, bsc = _fold_bn(params["gsc"], params["besc"],
                            params["msc"], params["vsc"])
        wsc = params["wsc"][:, :, 0, 0].T.astype(jnp.float32) * ssc[None, :]
        wsc = jnp.pad(wsc, ((0, 0), (0, cp - cout))).astype(jnp.bfloat16)
        b2p = _pad_lanes(b2 + bsc, cp)
    elif cout != cp:
        # Identity shortcut, Cout not lane-aligned: fold the lane padding into
        # one tiny identity-matrix matmul so xs is read unpadded and the store
        # stays 128-lane dense.
        wsc = jnp.pad(jnp.eye(cout, dtype=jnp.float32),
                      ((0, 0), (0, cp - cout))).astype(jnp.bfloat16)
        b2p = _pad_lanes(b2, cp)
    else:
        wsc = None                                          # plain VPU add
        b2p = _pad_lanes(b2, cp)

    x2_spec = pl.BlockSpec((1, rows2, cp), lambda i, j: (i, 0, 0))
    w2_spec = pl.BlockSpec((9 * cp, tn), lambda i, j: (0, j))
    b2_spec = pl.BlockSpec((1, tn), lambda i, j: (0, j))

    if wsc is not None:
        xs_c = xs_flat.shape[-1]
        blk2 = (rows2 * cp * 2 + 9 * cp * tn * 2 + tn * 4
                + rows2 * xs_c * 2 + xs_c * tn * 2 + m2 * tn * 4)
        out = pl.pallas_call(
            functools.partial(_conv2_proj_kernel, m=m2, wj=wj2, kc=cp),
            out_shape=jax.ShapeDtypeStruct((n, m2, cp), jnp.float32),
            grid=(n, jn),
            in_specs=[
                x2_spec, w2_spec, b2_spec,
                pl.BlockSpec((1, rows2, xs_c), lambda i, j: (i, 0, 0)),
                pl.BlockSpec((xs_c, tn), lambda i, j: (0, j)),
            ],
            out_specs=pl.BlockSpec((1, m2, tn), lambda i, j: (i, 0, j)),
            compiler_params=_compiler_params(blk2),
            cost_estimate=pl.CostEstimate(
                flops=2 * n * m2 * (9 * cp + xs_c) * cp, transcendentals=0,
                bytes_accessed=2 * (x2_flat.size + w2.size + xs_flat.size
                                    + wsc.size) + 4 * (cp + n * m2 * cp)),
        )(x2_flat, w2, b2p, xs_flat, wsc)
    else:
        blk2 = (rows2 * cp * 2 + 9 * cp * tn * 2 + tn * 4
                + rows2 * tn * 2 + m2 * tn * 4)
        out = pl.pallas_call(
            functools.partial(_conv2_id_kernel, m=m2, wj=wj2, kc=cp),
            out_shape=jax.ShapeDtypeStruct((n, m2, cp), jnp.float32),
            grid=(n, jn),
            in_specs=[
                x2_spec, w2_spec, b2_spec,
                pl.BlockSpec((1, rows2, tn), lambda i, j: (i, 0, j)),
            ],
            out_specs=pl.BlockSpec((1, m2, tn), lambda i, j: (i, 0, j)),
            compiler_params=_compiler_params(blk2),
            cost_estimate=pl.CostEstimate(
                flops=2 * n * m2 * 9 * cp * cp, transcendentals=0,
                bytes_accessed=2 * (x2_flat.size + w2.size + xs_flat.size)
                               + 4 * (cp + n * m2 * cp)),
        )(x2_flat, w2, b2p, xs_flat)

    out = out.reshape(n, ho, wj2, cp)[:, :, :wo, :cout]      # drop junk / pad
    return jnp.transpose(out, (0, 3, 1, 2))                  # back to NCHW


# ------------------------- reference (plain JAX, f32) -------------------------

def _ref_conv(x_nhwc, w_oihw, stride, pad):
    w_hwio = jnp.transpose(w_oihw, (2, 3, 1, 0))
    return lax.conv_general_dilated(
        x_nhwc, w_hwio, window_strides=(stride, stride),
        padding=((pad, pad), (pad, pad)),
        dimension_numbers=("NHWC", "HWIO", "NHWC"),
        precision=lax.Precision.HIGHEST)


def _ref_bn(x, g, b, m, v):
    return (x - m) / jnp.sqrt(v + EPS) * g + b


def residual_block_ref(x_nchw, params, stride):
    cin = x_nchw.shape[1]
    cout = params["w1"].shape[0]
    x = jnp.transpose(x_nchw, (0, 2, 3, 1)).astype(jnp.float32)
    out = jnp.maximum(_ref_bn(_ref_conv(x, params["w1"], stride, 1),
                              params["g1"], params["be1"],
                              params["m1"], params["v1"]), 0.0)
    out = _ref_bn(_ref_conv(out, params["w2"], 1, 1),
                  params["g2"], params["be2"], params["m2"], params["v2"])
    if stride != 1 or cin != cout:
        sc = _ref_bn(_ref_conv(x, params["wsc"], stride, 0),
                     params["gsc"], params["besc"],
                     params["msc"], params["vsc"])
    else:
        sc = x
    out = jnp.maximum(out + sc, 0.0)
    return jnp.transpose(out, (0, 3, 1, 2))


# ------------------------- main -------------------------

def make_params(key, cin, cout, with_shortcut):
    ks = jax.random.split(key, 6)

    def bn(k, c):
        kk = jax.random.split(k, 4)
        return (1.0 + 0.1 * jax.random.normal(kk[0], (c,), jnp.float32),
                0.05 * jax.random.normal(kk[1], (c,), jnp.float32),
                0.02 * jax.random.normal(kk[2], (c,), jnp.float32),
                1.0 + 0.1 * jnp.abs(jax.random.normal(kk[3], (c,),
                                                      jnp.float32)))

    g1, be1, m1, v1 = bn(ks[1], cout)
    g2, be2, m2, v2 = bn(ks[3], cout)
    std1 = (2.0 / (9 * cin)) ** 0.5          # Kaiming-style fan-in init
    std2 = (2.0 / (9 * cout)) ** 0.5
    p = dict(
        w1=std1 * jax.random.normal(ks[0], (cout, cin, 3, 3), jnp.float32),
        g1=g1, be1=be1, m1=m1, v1=v1,
        w2=std2 * jax.random.normal(ks[2], (cout, cout, 3, 3), jnp.float32),
        g2=g2, be2=be2, m2=m2, v2=v2,
    )
    if with_shortcut:
        gsc, besc, msc, vsc = bn(ks[5], cout)
        stds = (2.0 / cin) ** 0.5
        p.update(
            wsc=stds * jax.random.normal(ks[4], (cout, cin, 1, 1), jnp.float32),
            gsc=gsc, besc=besc, msc=msc, vsc=vsc)
    return p


def _check(out, ref, tol, msg):
    # bf16 MXU operands with f32 accumulation -> tolerance sized accordingly.
    assert out.shape == ref.shape, msg + " shape"
    assert jnp.allclose(out, ref, atol=tol, rtol=tol), msg


if __name__ == "__main__":
    key = jax.random.PRNGKey(0)
    k1, k2, k3, k4, k5, k6, k7, k8 = jax.random.split(key, 8)

    # 1) projection shortcut (Cin != Cout), stride = 1.
    n, cin, cout, h, w = 2, 4, 8, 16, 16
    params = make_params(k1, cin, cout, with_shortcut=True)
    x = jax.random.normal(k2, (n, cin, h, w), jnp.float32)
    out = jax.block_until_ready(residual_block_forward(x, params, 1))
    _check(out, residual_block_ref(x, params, 1), 5e-2, "projection mismatch")

    # 2) identity shortcut, Cout not lane-aligned (identity folded as matmul).
    params2 = make_params(k3, 8, 8, with_shortcut=False)
    x2 = jax.random.normal(k4, (1, 8, 8, 8), jnp.float32)
    out2 = jax.block_until_ready(residual_block_forward(x2, params2, 1))
    _check(out2, residual_block_ref(x2, params2, 1), 5e-2, "identity mismatch")

    # 3) identity shortcut, lane-aligned Cout (plain VPU add path).
    params3 = make_params(k5, 128, 128, with_shortcut=False)
    x3 = jax.random.normal(k6, (1, 128, 8, 8), jnp.float32)
    out3 = jax.block_until_ready(residual_block_forward(x3, params3, 1))
    _check(out3, residual_block_ref(x3, params3, 1), 5e-2,
           "identity (aligned) mismatch")

    # 4) downsampling block (stride = 2, projection shortcut).
    params4 = make_params(k7, 4, 8, with_shortcut=True)
    x4 = jax.random.normal(k8, (1, 4, 16, 16), jnp.float32)
    out4 = jax.block_until_ready(residual_block_forward(x4, params4, 2))
    _check(out4, residual_block_ref(x4, params4, 2), 5e-2, "stride-2 mismatch")

    print("KERNEL_OK")
</pallas_src>

<mosaic_0001>
module attributes {stable_mosaic.version = 11 : i64} {
  func.func @_conv1_fused_layout_kernel(%arg0: i32, %arg1: i32, %arg2: memref<1x456x4xbf16, #tpu.memory_space<vmem>>, %arg3: memref<36x128xbf16, #tpu.memory_space<vmem>>, %arg4: memref<1x128xf32, #tpu.memory_space<vmem>>, %arg5: memref<1x456x128xbf16, #tpu.memory_space<vmem>>) attributes {dimension_semantics = [#tpu.dimension_semantics<parallel>, #tpu.dimension_semantics<parallel>], iteration_bounds = array<i64: 2, 1>, scalar_prefetch = 0 : i64, scratch_operands = 0 : i64, tpu.core_type = #tpu.core_type<tc>, window_params = [{transform_indices = @transform_0, window_bounds = array<i64: 1, 456, 4>}, {transform_indices = @transform_1, window_bounds = array<i64: 36, 128>}, {transform_indices = @transform_2, window_bounds = array<i64: 1, 128>}, {transform_indices = @transform_3, window_bounds = array<i64: 1, 456, 128>}]} {
    %c0 = arith.constant 0 : index
    %c0_0 = arith.constant 0 : index
    %c0_1 = arith.constant 0 : index
    %0 = vector.load %arg2[%c0, %c0_0, %c0_1] : memref<1x456x4xbf16, #tpu.memory_space<vmem>>, vector<1x384x4xbf16>
    %1 = vector.shape_cast %0 : vector<1x384x4xbf16> to vector<384x4xbf16>
    %c0_2 = arith.constant 0 : index
    %c0_3 = arith.constant 0 : index
    %2 = vector.load %arg3[%c0_2, %c0_3] : memref<36x128xbf16, #tpu.memory_space<vmem>>, vector<4x128xbf16>
    %cst = arith.constant dense<0.000000e+00> : vector<384x128xf32>
    %3 = tpu.matmul %1, %2, %cst {dimension_numbers = #tpu.dot_dimension_numbers<[1], [0], [0], [1], [0, 0, 1, 1], [], []>} : vector<384x4xbf16>, vector<4x128xbf16>, vector<384x128xf32> -> vector<384x128xf32>
    %c0_4 = arith.constant 0 : index
    %c1 = arith.constant 1 : index
    %c0_5 = arith.constant 0 : index
    %4 = vector.load %arg2[%c0_4, %c1, %c0_5] : memref<1x456x4xbf16, #tpu.memory_space<vmem>>, vector<1x384x4xbf16>
    %5 = vector.shape_cast %4 : vector<1x384x4xbf16> to vector<384x4xbf16>
    %c4 = arith.constant 4 : index
    %c0_6 = arith.constant 0 : index
    %6 = vector.load %arg3[%c4, %c0_6] : memref<36x128xbf16, #tpu.memory_space<vmem>>, vector<4x128xbf16>
    %cst_7 = arith.constant dense<0.000000e+00> : vector<384x128xf32>
    %7 = tpu.matmul %5, %6, %cst_7 {dimension_numbers = #tpu.dot_dimension_numbers<[1], [0], [0], [1], [0, 0, 1, 1], [], []>} : vector<384x4xbf16>, vector<4x128xbf16>, vector<384x128xf32> -> vector<384x128xf32>
    %8 = arith.addf %3, %7 : vector<384x128xf32>
    %c0_8 = arith.constant 0 : index
    %c2 = arith.constant 2 : index
    %c0_9 = arith.constant 0 : index
    %9 = vector.load %arg2[%c0_8, %c2, %c0_9] : memref<1x456x4xbf16, #tpu.memory_space<vmem>>, vector<1x384x4xbf16>
    %10 = vector.shape_cast %9 : vector<1x384x4xbf16> to vector<384x4xbf16>
    %c8 = arith.constant 8 : index
    %c0_10 = arith.constant 0 : index
    %11 = vector.load %arg3[%c8, %c0_10] : memref<36x128xbf16, #tpu.memory_space<vmem>>, vector<4x128xbf16>
    %cst_11 = arith.constant dense<0.000000e+00> : vector<384x128xf32>
    %12 = tpu.matmul %10, %11, %cst_11 {dimension_numbers = #tpu.dot_dimension_numbers<[1], [0], [0], [1], [0, 0, 1, 1], [], []>} : vector<384x4xbf16>, vector<4x128xbf16>, vector<384x128xf32> -> vector<384x128xf32>
    %13 = arith.addf %8, %12 : vector<384x128xf32>
    %c0_12 = arith.constant 0 : index
    %c24 = arith.constant 24 : index
    %c0_13 = arith.constant 0 : index
    %14 = vector.load %arg2[%c0_12, %c24, %c0_13] : memref<1x456x4xbf16, #tpu.memory_space<vmem>>, vector<1x384x4xbf16>
    %15 = vector.shape_cast %14 : vector<1x384x4xbf16> to vector<384x4xbf16>
    %c12 = arith.constant 12 : index
    %c0_14 = arith.constant 0 : index
    %16 = vector.load %arg3[%c12, %c0_14] : memref<36x128xbf16, #tpu.memory_space<vmem>>, vector<4x128xbf16>
    %cst_15 = arith.constant dense<0.000000e+00> : vector<384x128xf32>
    %17 = tpu.matmul %15, %16, %cst_15 {dimension_numbers = #tpu.dot_dimension_numbers<[1], [0], [0], [1], [0, 0, 1, 1], [], []>} : vector<384x4xbf16>, vector<4x128xbf16>, vector<384x128xf32> -> vector<384x128xf32>
    %18 = arith.addf %13, %17 : vector<384x128xf32>
    %c0_16 = arith.constant 0 : index
    %c25 = arith.constant 25 : index
    %c0_17 = arith.constant 0 : index
    %19 = vector.load %arg2[%c0_16, %c25, %c0_17] : memref<1x456x4xbf16, #tpu.memory_space<vmem>>, vector<1x384x4xbf16>
    %20 = vector.shape_cast %19 : vector<1x384x4xbf16> to vector<384x4xbf16>
    %c16 = arith.constant 16 : index
    %c0_18 = arith.constant 0 : index
    %21 = vector.load %arg3[%c16, %c0_18] : memref<36x128xbf16, #tpu.memory_space<vmem>>, vector<4x128xbf16>
    %cst_19 = arith.constant dense<0.000000e+00> : vector<384x128xf32>
    %22 = tpu.matmul %20, %21, %cst_19 {dimension_numbers = #tpu.dot_dimension_numbers<[1], [0], [0], [1], [0, 0, 1, 1], [], []>} : vector<384x4xbf16>, vector<4x128xbf16>, vector<384x128xf32> -> vector<384x128xf32>
    %23 = arith.addf %18, %22 : vector<384x128xf32>
    %c0_20 = arith.constant 0 : index
    %c26 = arith.constant 26 : index
    %c0_21 = arith.constant 0 : index
    %24 = vector.load %arg2[%c0_20, %c26, %c0_21] : memref<1x456x4xbf16, #tpu.memory_space<vmem>>, vector<1x384x4xbf16>
    %25 = vector.shape_cast %24 : vector<1x384x4xbf16> to vector<384x4xbf16>
    %c20 = arith.constant 20 : index
    %c0_22 = arith.constant 0 : index
    %26 = vector.load %arg3[%c20, %c0_22] : memref<36x128xbf16, #tpu.memory_space<vmem>>, vector<4x128xbf16>
    %cst_23 = arith.constant dense<0.000000e+00> : vector<384x128xf32>
    %27 = tpu.matmul %25, %26, %cst_23 {dimension_numbers = #tpu.dot_dimension_numbers<[1], [0], [0], [1], [0, 0, 1, 1], [], []>} : vector<384x4xbf16>, vector<4x128xbf16>, vector<384x128xf32> -> vector<384x128xf32>
    %28 = arith.addf %23, %27 : vector<384x128xf32>
    %c0_24 = arith.constant 0 : index
    %c48 = arith.constant 48 : index
    %c0_25 = arith.constant 0 : index
    %29 = vector.load %arg2[%c0_24, %c48, %c0_25] : memref<1x456x4xbf16, #tpu.memory_space<vmem>>, vector<1x384x4xbf16>
    %30 = vector.shape_cast %29 : vector<1x384x4xbf16> to vector<384x4xbf16>
    %c24_26 = arith.constant 24 : index
    %c0_27 = arith.constant 0 : index
    %31 = vector.load %arg3[%c24_26, %c0_27] : memref<36x128xbf16, #tpu.memory_space<vmem>>, vector<4x128xbf16>
    %cst_28 = arith.constant dense<0.000000e+00> : vector<384x128xf32>
    %32 = tpu.matmul %30, %31, %cst_28 {dimension_numbers = #tpu.dot_dimension_numbers<[1], [0], [0], [1], [0, 0, 1, 1], [], []>} : vector<384x4xbf16>, vector<4x128xbf16>, vector<384x128xf32> -> vector<384x128xf32>
    %33 = arith.addf %28, %32 : vector<384x128xf32>
    %c0_29 = arith.constant 0 : index
    %c49 = arith.constant 49 : index
    %c0_30 = arith.constant 0 : index
    %34 = vector.load %arg2[%c0_29, %c49, %c0_30] : memref<1x456x4xbf16, #tpu.memory_space<vmem>>, vector<1x384x4xbf16>
    %35 = vector.shape_cast %34 : vector<1x384x4xbf16> to vector<384x4xbf16>
    %c28 = arith.constant 28 : index
    %c0_31 = arith.constant 0 : index
    %36 = vector.load %arg3[%c28, %c0_31] : memref<36x128xbf16, #tpu.memory_space<vmem>>, vector<4x128xbf16>
    %cst_32 = arith.constant dense<0.000000e+00> : vector<384x128xf32>
    %37 = tpu.matmul %35, %36, %cst_32 {dimension_numbers = #tpu.dot_dimension_numbers<[1], [0], [0], [1], [0, 0, 1, 1], [], []>} : vector<384x4xbf16>, vector<4x128xbf16>, vector<384x128xf32> -> vector<384x128xf32>
    %38 = arith.addf %33, %37 : vector<384x128xf32>
    %c0_33 = arith.constant 0 : index
    %c50 = arith.constant 50 : index
    %c0_34 = arith.constant 0 : index
    %39 = vector.load %arg2[%c0_33, %c50, %c0_34] : memref<1x456x4xbf16, #tpu.memory_space<vmem>>, vector<1x384x4xbf16>
    %40 = vector.shape_cast %39 : vector<1x384x4xbf16> to vector<384x4xbf16>
    %c32 = arith.constant 32 : index
    %c0_35 = arith.constant 0 : index
    %41 = vector.load %arg3[%c32, %c0_35] : memref<36x128xbf16, #tpu.memory_space<vmem>>, vector<4x128xbf16>
    %cst_36 = arith.constant dense<0.000000e+00> : vector<384x128xf32>
    %42 = tpu.matmul %40, %41, %cst_36 {dimension_numbers = #tpu.dot_dimension_numbers<[1], [0], [0], [1], [0, 0, 1, 1], [], []>} : vector<384x4xbf16>, vector<4x128xbf16>, vector<384x128xf32> -> vector<384x128xf32>
    %43 = arith.addf %38, %42 : vector<384x128xf32>
    %c0_37 = arith.constant 0 : index
    %c0_38 = arith.constant 0 : index
    %44 = vector.load %arg4[%c0_37, %c0_38] : memref<1x128xf32, #tpu.memory_space<vmem>>, vector<1x128xf32>
    %45 = vector.broadcast %44 : vector<1x128xf32> to vector<384x128xf32>
    %46 = arith.addf %43, %45 : vector<384x128xf32>
    %cst_39 = arith.constant 0.000000e+00 : f32
    %47 = vector.broadcast %cst_39 : f32 to vector<384x128xf32>
    %48 = arith.maximumf %46, %47 : vector<384x128xf32>
    %49 = tpu.iota {dimensions = array<i32: 0>} : vector<384x1xi32>
    %c24_i32 = arith.constant 24 : i32
    %c0_i32 = arith.constant 0 : i32
    %50 = arith.cmpi eq, %c24_i32, %c0_i32 : i32
    %c1_i32 = arith.constant 1 : i32
    %51 = arith.select %50, %c1_i32, %c24_i32 : i32
    %52 = vector.broadcast %51 : i32 to vector<384x1xi32>
    %53 = arith.remsi %49, %52 : vector<384x1xi32>
    %c0_i32_40 = arith.constant 0 : i32
    %54 = vector.broadcast %c0_i32_40 : i32 to vector<384x1xi32>
    %55 = arith.cmpi ne, %53, %54 : vector<384x1xi32>
    %c0_i32_41 = arith.constant 0 : i32
    %56 = vector.broadcast %c0_i32_41 : i32 to vector<384x1xi32>
    %57 = arith.cmpi slt, %53, %56 : vector<384x1xi32>
    %c0_i32_42 = arith.constant 0 : i32
    %58 = arith.cmpi slt, %51, %c0_i32_42 : i32
    %59 = vector.broadcast %58 : i1 to vector<384x1xi1>
    %60 = vector.broadcast %59 : vector<384x1xi1> to vector<384x1xi1>
    %61 = arith.xori %57, %60 : vector<384x1xi1>
    %62 = arith.andi %61, %55 : vector<384x1xi1>
    %63 = vector.broadcast %51 : i32 to vector<384x1xi32>
    %64 = arith.addi %53, %63 : vector<384x1xi32>
    %65 = arith.select %62, %64, %53 : vector<384x1xi1>, vector<384x1xi32>
    %c16_i32 = arith.constant 16 : i32
    %66 = vector.broadcast %c16_i32 : i32 to vector<384x1xi32>
    %67 = arith.cmpi slt, %65, %66 : vector<384x1xi32>
    %cst_43 = arith.constant 0.000000e+00 : f32
    %68 = vector.shape_cast %67 : vector<384x1xi1> to vector<384x1xi1>
    %69 = vector.broadcast %68 : vector<384x1xi1> to vector<384x128xi1>
    %70 = vector.broadcast %cst_43 : f32 to vector<384x128xf32>
    %71 = arith.select %69, %48, %70 : vector<384x128xi1>, vector<384x128xf32>
    %72 = arith.truncf %71 : vector<384x128xf32> to vector<384x128xbf16>
    %cst_44 = arith.constant 0.000000e+00 : bf16
    %73 = vector.broadcast %cst_44 : bf16 to vector<25x128xbf16>
    %c0_45 = arith.constant 0 : index
    %c0_46 = arith.constant 0 : index
    %c0_47 = arith.constant 0 : index
    %74 = vector.load %arg5[%c0_45, %c0_46, %c0_47] : memref<1x456x128xbf16, #tpu.memory_space<vmem>>, vector<1x25x128xbf16>
    %75 = vector.shape_cast %74 : vector<1x25x128xbf16> to vector<25x128xbf16>
    %76 = vector.shape_cast %73 : vector<25x128xbf16> to vector<1x25x128xbf16>
    tpu.vector_store %arg5[%c0_45, %c0_46, %c0_47], %76 {strides = array<i32>} : memref<1x456x128xbf16, #tpu.memory_space<vmem>>, vector<1x25x128xbf16>,
    %cst_48 = arith.constant 0.000000e+00 : bf16
    %77 = vector.broadcast %cst_48 : bf16 to vector<47x128xbf16>
    %c0_49 = arith.constant 0 : index
    %c409 = arith.constant 409 : index
    %c0_50 = arith.constant 0 : index
    %78 = vector.load %arg5[%c0_49, %c409, %c0_50] : memref<1x456x128xbf16, #tpu.memory_space<vmem>>, vector<1x47x128xbf16>
    %79 = vector.shape_cast %78 : vector<1x47x128xbf16> to vector<47x128xbf16>
    %80 = vector.shape_cast %77 : vector<47x128xbf16> to vector<1x47x128xbf16>
    tpu.vector_store %arg5[%c0_49, %c409, %c0_50], %80 {strides = array<i32>} : memref<1x456x128xbf16, #tpu.memory_space<vmem>>, vector<1x47x128xbf16>,
    %c0_51 = arith.constant 0 : index
    %c25_52 = arith.constant 25 : index
    %c0_53 = arith.constant 0 : index
    %81 = vector.load %arg5[%c0_51, %c25_52, %c0_53] : memref<1x456x128xbf16, #tpu.memory_space<vmem>>, vector<1x384x128xbf16>
    %82 = vector.shape_cast %81 : vector<1x384x128xbf16> to vector<384x128xbf16>
    %83 = vector.shape_cast %72 : vector<384x128xbf16> to vector<1x384x128xbf16>
    tpu.vector_store %arg5[%c0_51, %c25_52, %c0_53], %83 {strides = array<i32>} : memref<1x456x128xbf16, #tpu.memory_space<vmem>>, vector<1x384x128xbf16>,
    return
  }
  func.func @transform_0(%arg0: i32, %arg1: i32) -> (i32, i32, i32) {
    %c0_i32 = arith.constant 0 : i32
    %c0_i32_0 = arith.constant 0 : i32
    %c0_i32_1 = arith.constant 0 : i32
    return %arg0, %c0_i32, %c0_i32_0 : i32, i32, i32
  }
  func.func @transform_1(%arg0: i32, %arg1: i32) -> (i32, i32) {
    %c0_i32 = arith.constant 0 : i32
    %c0_i32_0 = arith.constant 0 : i32
    return %c0_i32, %arg1 : i32, i32
  }
  func.func @transform_2(%arg0: i32, %arg1: i32) -> (i32, i32) {
    %c0_i32 = arith.constant 0 : i32
    %c0_i32_0 = arith.constant 0 : i32
    return %c0_i32, %arg1 : i32, i32
  }
  func.func @transform_3(%arg0: i32, %arg1: i32) -> (i32, i32, i32) {
    %c0_i32 = arith.constant 0 : i32
    %c0_i32_0 = arith.constant 0 : i32
    return %arg0, %c0_i32, %arg1 : i32, i32, i32
  }
}

</mosaic_0001>

<bundles_post_ra>
// kernel: tpu_custom_call.1
= control target key start
LH: loop header
LB: loop body
LE: loop exit
PB: predicated region body
PF: predicated region fallthrough
CT: control target
= control target key end

     0   :  { %8 = vsyncpa [#allocation3], 0  ;;  %s12087_s0 = inlined_call_operand.vmem [shape: bf16[2,456,4], index: 0, kind: input, shape index: {}]   ;;  %s12088_s1 = inlined_call_operand.vmem [shape: bf16[36,128], index: 1, kind: input, shape index: {}]   ;;  %s12089_s2 = inlined_call_operand.vmem [shape: f32[1,128], index: 2, kind: input, shape index: {}]   ;;  %s12090_s3 = inlined_call_operand.hbm [shape: bf16[2,456,128], index: 3, kind: output, shape index: {}]  }
   0x1   :  { %10 = vsyncpa [#allocation3 + $0x1], 0  ;;  %s8721_s12 = smov 0   ;;  %s8723_s13 = smov 0  }
   0x2   :  { %s8725_s14 = smov 0   ;;  %s8727_s15 = smov 0  }
   0x3   :  { %s8729_s16 = smov 0   ;;  %s8731_s17 = smov 0  }
   0x4 LB: > { %s6780_s18 = sadd.s32 4294967295, %s8695_s17   ;;  %s6781_s19 = sadd.s32 4294967294, %s8695_s17   ;;  %s8695_s17 = sphi %s8731_s17, %s16_s17   ;;  %s8691_s16 = sphi %s8729_s16, %s12810_s16   ;;  %s8687_s15 = sphi %s8727_s15, %s12809_s15   ;;  %s8683_s14 = sphi %s8725_s14, %s12808_s14   ;;  %s8679_s13 = sphi %s8723_s13, %s12807_s13   ;;  %s8675_s12 = sphi %s8721_s12, %s12806_s12  }
   0x5   : > { %s28_s20 = sadd.s32 1, %s8691_s16  ;;  %s115_s21 = sadd.s32 1, %s8683_s14 }
   0x6   : > { %p30_p0 = scmp.ge.s32.totalorder %s28_s20, 2  ;;  %p125_p1 = scmp.ne.s32.totalorder %s8683_s14, %s8679_s13 }
   0x7   : > { %p126_p2 = scmp.eq.s32.totalorder %s6780_s18, 1  ;;  %p131_p3 = scmp.ne.s32.totalorder %s8679_s13, %s8675_s12 }
   0x8   : > { %s12812_s20 = smov (%p30_p0, %s28_s20), 0  ;;  %p132_p5 = scmp.eq.s32.totalorder %s6781_s19, 1 }
   0x9   : > { %p8761_p4 = por %p126_p2, %p125_p1  ;;  %s110_s23 = ssub.s32 %s8691_s16, %s12812_s20 }
   0xa   : > { %p6786_p6 = scmp.ge.s32.totalorder %s8695_s17, 1  ;;  %p113_p7 = scmp.eq.s32.totalorder %s110_s23, 0 }
   0xb   : > { %p8768_p8 = por %p132_p5, %p131_p3  ;;  %p171_p9 = scmp.lt.s32.totalorder %s8695_s17, 3 }
   0xc   : > { %s8774_s25 = scalar_select %p113_p7, %s8683_s14, %s115_s21  }
   0xd   : > { %p172_p10 = pnand %p6786_p6, %p171_p9 }
   0xf   : > { %175 = sbr.rel (%p172_p10) target bundleno = 794 (0x31a), region = 32 }
  0x16   : > { %v8462_v0 = vld [vmem:[%s12088_s1] ss:$0 sps:$4 sm:$0xcc]   ;;  %vm663_vm0 = vcmask 1041408   ;;  %v2141_v1 = vld [vmem:[%s12088_s1 + $0x8] sm:$0x3] }
  0x17   : > { %p202_p11 = scmp.lt.s32.totalorder %s8687_s15, 1  ;;  %v589_v2 = vrot.slane %v8462_v0, 2  ;;  %8299 = vmatprep.subr.msk.bf16.mxu0 %vm663_vm0, %v2141_v1  ;;  %v8785_v3 = vsel %vm663_vm0, %v2141_v1, 0  ;;  %v263_v4 = vld [vmem:[%s12088_s1] sm:$0x3]  ;;  %vm590_vm2 = vcmask 31744  }
  0x18   : > { %7660 = vmatpush3.bf16.msra.mxu0 %v8785_v3  ;;  %v8467_v5 = vld [vmem:[%s12088_s1 + $0x8] ss:$0 sps:$4 sm:$0xcc]   ;;  %vm389_vm1 = vsmask.f32 7424  ;;  %v941_v8 = vsel %vm663_vm0, %v263_v4, 0 }
  0x19   : > { %s203_s30 = scalar_select %p202_p11, %s8687_s15, 1  ;;  %8295 = vmatprep.subr.msk.bf16.mxu1 %vm663_vm0, %v589_v2  ;;  %v665_v6 = vsel %vm663_vm0, %v589_v2, 0  ;;  %v2866_v7 = vrot.slane %v8467_v5, 2  ;;  %v8840_v41 = vld [vmem:[%s12088_s1 + $0x4] sm:$0x3]  ;;  %vm1173_vm3 = vcmask 1046528  }
  0x1a   : > { %7460 = vmatpush3.bf16.msra.mxu1 %v665_v6  ;;  %v8856_v55 = vld [vmem:[%s12088_s1 + $0xc] sm:$0x3]  ;;  %s199_s7 = sand.u32 1, %s8679_s13   ;;  %vm5994_vm4 = vcmask 1040384   ;;  %vm12091_vm5 = vsmask.f32 256 }
  0x1b   : > { %s8306_s8 = smul.u32 228, %s203_s30  ;;  %8296 = vmatprep.subr.msk.bf16.mxu1 %vm663_vm0, %v263_v4  ;;  %8301 = vmatprep.subr.msk.bf16.mxu0 %vm663_vm0, %v2866_v7  ;;  %v2940_v14 = vsel %vm663_vm0, %v2866_v7, 0  ;;  %vm9737_vm6 = vmand %vm5994_vm4, %vm12091_vm5  ;;  %vm6000_vm7 = vcmask 1043456   ;;  %vm6001_vm8 = vsmask.f32 7938  ;;  %s8698_s30 = smov [#allocation2]  }
  0x1c   : > { %vm9758_vm9 = vmand %vm6000_vm7, %vm6001_vm8  ;;  %s8403_s21 = smul.u32 3648, %s8687_s15  ;;  %s12041_s15 = scalar_lea.sflag [#allocation3], %s199_s7 }
  0x1d   : > { %s8801_s11 = scalar_lea.vmem %s12087_s0, %s8306_s8  ;;  %s8305_s8 = smul.u32 228, %s199_s7 }
  0x1e   : > { %v215_v9 = vld [vmem:[%s8801_s11] sm:$0xf]  ;;  %v216_v10 = vld [vmem:[%s8801_s11 + $0x4] sm:$0xf]  ;;  %v8464_v12 = vld [vmem:[%s8801_s11 + $0x8] sm:$0xff]   ;;  %s12029_s28 = scalar_lea.hbm %s12090_s3, %s8403_s21  ;;  %s8621_s4 = sshll.u32 %s8698_s30, 4  ;;  %s8622_s4 = int_to_ptr.vmem [resolvable:$false] %s8621_s4 }
  0x1f   : > { %v8807_v11 = vcombine.low %v215_v9, %v216_v10  ;;  %v2092_v13 = vld [vmem:[%s8801_s11 + $0xc] sm:$0xf]  ;;  %v8813_v15 = vld [vmem:[%s8801_s11 + $0x10] sm:$0xf]  ;;  %v398_v18 = vshll.u32 %v8464_v12, 16  ;;  %v402_v19 = vshrl.u32 %v8464_v12, 16 }
  0x20   : > { %v8818_v20 = vld [vmem:[%s8801_s11 + $0x14] sm:$0xff]   ;;  %v6936_v22 = vcombine.low %v2092_v13, %v8813_v15  ;;  %v8828_v30 = vld [vmem:[%s8801_s11 + $0x1c] sm:$0xff]   ;;  %v8833_v36 = vld [vmem:[%s8801_s11 + $0x24] sm:$0xff]   ;;  %s9741_s9 = scalar_lea.vmem [#allocation2], %s8305_s8  ;;  %s8623_s5 = scalar_lea.vmem %s8622_s4, 7296 }
  0x21   : > { %v391_v16 = vshrl.u32 %v8807_v11, 16  ;;  %v393_v17 = vshll.u32 %v8807_v11, 16  ;;  %v8821_v21 = vld [vmem:[%s8801_s11 + $0x10] sm:$0xff]   ;;  %v400_v24 = vrot.slane %v398_v18, 1  ;;  %v2273_v25 = vshll.u32 %v8818_v20, 16  ;;  %v8470_v34 = vld [vmem:[%s8801_s11 + $0x18] sm:$0xff]  }
  0x22   : > { %v2277_v26 = vshrl.u32 %v8818_v20, 16  ;;  %v2266_v27 = vshrl.u32 %v6936_v22, 16  ;;  %v2268_v28 = vshll.u32 %v6936_v22, 16  ;;  %v406_v29 = vshll.u32 %v8821_v21, 16  ;;  %v8847_v50 = vld [vmem:[%s8801_s11 + $0x20] sm:$0xff]   ;;  %v8851_v54 = vld [vmem:[%s8801_s11 + $0x2c] sm:$0xff]  }
  0x23   : > { %v395_v23 = vrot.slane %v393_v17, 1  ;;  %v404_v32 = vor.u32 %v402_v19, %v400_v24  ;;  %v2275_v33 = vrot.slane %v2273_v25, 1  ;;  %v410_v35 = vshrl.u32 %v8821_v21, 16  ;;  %v8862_v60 = vld [vmem:[%s8801_s11 + $0x28] sm:$0xff]   ;;  %v8876_v6 = vld [vmem:[%s8801_s11 + $0x34] sm:$0xff]   ;;  %v8890_v22 = vld [vmem:[%s8801_s11 + $0x3c] sm:$0xff]  }
  0x24   : > { %v2270_v37 = vrot.slane %v2268_v28, 1  ;;  %v408_v38 = vrot.slane %v406_v29, 1  ;;  %v2281_v39 = vshll.u32 %v8828_v30, 16  ;;  %v2285_v40 = vshrl.u32 %v8828_v30, 16  ;;  %v8881_v10 = vld [vmem:[%s8801_s11 + $0x30] sm:$0xff]   ;;  %s6681_s23 = sshll.u32 %s9741_s9, 4  ;;  %s12031_s23 = int_to_ptr.vmem [resolvable:$true] %s6681_s23 }
  0x25   : > { %v396_v31 = vor.u32 %v395_v23, %v391_v16  ;;  %v2279_v43 = vor.u32 %v2277_v26, %v2275_v33  ;;  %v414_v44 = vshll.u32 %v8470_v34, 16  ;;  %v2289_v45 = vshll.u32 %v8833_v36, 16  ;;  %s8617_s29 = scalar_lea.vmem %s12031_s23, 3648  ;;  %p8624_p1 = scmp.lt.s32.totalorder %s12031_s23, %s8622_s4 }
  0x26   : > { %v2271_v46 = vor.u32 %v2270_v37, %v2266_v27  ;;  %v409_v47 = vsel %vm389_vm1, %v404_v32, %v408_v38  ;;  %v2283_v48 = vrot.slane %v2281_v39, 1  ;;  %v412_v49 = vor.u32 %v410_v35, %v408_v38  ;;  %v8909_v38 = vld [vmem:[%s8801_s11 + $0x40] sm:$0xff]   ;;  %p8618_p12 = scmp.ne.s32.totalorder %s12031_s23, %s8617_s29  ;;  %p8625_p2 = scmp.lt.s32.totalorder %s8623_s5, %s8617_s29 }
  0x27   : > { %v401_v42 = vsel %vm389_vm1, %v396_v31, %v400_v24  ;;  %v416_v51 = vrot.slane %v414_v44, 1  ;;  %v2291_v52 = vrot.slane %v2289_v45, 1  ;;  %v418_v53 = vshrl.u32 %v8470_v34, 16  ;;  %v8894_v24 = vld [vmem:[%s8801_s11 + $0x38] sm:$0xff]   ;;  %v8914_v44 = vld [vmem:[%s8801_s11 + $0x4c] sm:$0xff]  }
  0x28   : > { %7461 = vmatprep.mubr.msk.bf16.mxu1 %vm590_vm2, %v401_v42  ;;  %v2276_v56 = vsel %vm389_vm1, %v2271_v46, %v2275_v33  ;;  %v2284_v57 = vsel %vm389_vm1, %v2279_v43, %v2283_v48  ;;  %v2287_v58 = vor.u32 %v2285_v40, %v2283_v48  ;;  %v422_v59 = vshll.u32 %v8847_v50, 16  ;;  %v8903_v33 = vld [vmem:[%s8801_s11 + $0x44] sm:$0xff]   ;;  %p8619_p13 = pnand %p8618_p12, %p8761_p4  ;;  %p8626_p3 = por %p8625_p2, %p8624_p1 }
  0x29   : > { %7462 = vmatmul.mubr.msk.bf16.vlgmr.msra.gmra.mrb[0].mxu1 %vm590_vm2, %v409_v47  ;;  %7661 = vmatprep.mubr.msk.bf16.mxu0 %vm590_vm2, %v2276_v56  ;;  %v417_v61 = vsel %vm389_vm1, %v412_v49, %v416_v51  ;;  %v420_v62 = vor.u32 %v418_v53, %v416_v51  ;;  %v2293_v63 = vshrl.u32 %v8833_v36, 16  ;;  %v2297_v0 = vshll.u32 %v8851_v54, 16  ;;  %v8917_v45 = vld [vmem:[%s8801_s11 + $0x48] sm:$0xff]   ;;  %v8924_v53 = vld [vmem:[%s8801_s11 + $0x54] sm:$0xff]  }
  0x2a   : > { %7510 = vmatpush3.bf16.msra.mxu1 %v941_v8  ;;  %7662 = vmatmul.mubr.msk.bf16.vlgmr.msra.gmra.mrb[0].mxu0 %vm590_vm2, %v2284_v57  ;;  %v2292_v1 = vsel %vm389_vm1, %v2287_v58, %v2291_v52  ;;  %v424_v2 = vrot.slane %v422_v59, 1  ;;  %v426_v4 = vshrl.u32 %v8847_v50, 16  ;;  %v430_v5 = vshll.u32 %v8862_v60, 16  ;;  %p8620_p0 = pneg %p8619_p13 }
  0x2b   : > { %8297 = vmatprep.subr.msk.bf16.mxu1 %vm663_vm0, %v8840_v41  ;;  %7465 = vmatprep.mubr.msk.bf16.mxu1 %vm590_vm2, %v417_v61  ;;  %v2295_v7 = vor.u32 %v2293_v63, %v2291_v52  ;;  %v2299_v8 = vrot.slane %v2297_v0, 1  ;;  %v2301_v9 = vshrl.u32 %v8851_v54, 16  ;;  %v434_v12 = vshrl.u32 %v8862_v60, 16  ;;  %v8934_v0 = vld [vmem:[%s8801_s11 + $0x50] sm:$0xff]  }
  0x2c   : > { %7710 = vmatpush3.bf16.msra.mxu0 %v2940_v14  ;;  %7665 = vmatprep.mubr.msk.bf16.mxu0 %vm590_vm2, %v2292_v1  ;;  %v425_v13 = vsel %vm389_vm1, %v420_v62, %v424_v2  ;;  %v428_v16 = vor.u32 %v426_v4, %v424_v2  ;;  %v432_v17 = vrot.slane %v430_v5, 1  ;;  %v2305_v18 = vshll.u32 %v8876_v6, 16  ;;  %p8627_p5 = pnand %p8626_p3, %p8620_p0 }
  0x2d   : > { %8302 = vmatprep.subr.msk.bf16.mxu0 %vm663_vm0, %v8856_v55  ;;  %v2303_v14 = vor.u32 %v2301_v9, %v2299_v8  ;;  %v438_v19 = vshll.u32 %v8881_v10, 16  ;;  %v2309_v23 = vshrl.u32 %v8876_v6, 16  ;;  %v442_v27 = vshrl.u32 %v8881_v10, 16  ;;  %v8941_v9 = vld [vmem:[%s8801_s11 + $0x58] sm:$0xff]  }
  0x2e   : > { %v433_v25 = vsel %vm389_vm1, %v428_v16, %v432_v17  ;;  %v2307_v26 = vrot.slane %v2305_v18, 1  ;;  %v2300_v28 = vsel %vm389_vm1, %v2295_v7, %v2299_v8  ;;  %v2313_v31 = vshll.u32 %v8890_v22, 16 }
  0x2f   : > { %v440_v29 = vrot.slane %v438_v19, 1  ;;  %v446_v32 = vshll.u32 %v8894_v24, 16  ;;  %v436_v35 = vor.u32 %v434_v12, %v432_v17  ;;  %v2317_v37 = vshrl.u32 %v8890_v22, 16 }
  0x30   : > { %v2308_v34 = vsel %vm389_vm1, %v2303_v14, %v2307_v26  ;;  %v2315_v42 = vrot.slane %v2313_v31, 1  ;;  %v2321_v43 = vshll.u32 %v8903_v33, 16  ;;  %v2311_v46 = vor.u32 %v2309_v23, %v2307_v26 }
  0x31   : > { %7466 = vmatmul.mubr.msk.bf16.gmra.mrb[4].mxu1 %vm590_vm2, %v425_v13  ;;  %v444_v39 = vor.u32 %v442_v27, %v440_v29  ;;  %v448_v40 = vrot.slane %v446_v32, 1  ;;  %v454_v47 = vshll.u32 %v8909_v38, 16  ;;  %v441_v48 = vsel %vm389_vm1, %v436_v35, %v440_v29  ;;  %v8945_v13 = vld [vmem:[%s8801_s11 + $0x5c] sm:$0xff]  }
  0x32   : > { %7469 = vmatprep.mubr.msk.bf16.mxu1 %vm590_vm2, %v433_v25  ;;  %7666 = vmatmul.mubr.msk.bf16.gmra.mrb[4].mxu0 %vm590_vm2, %v2300_v28  ;;  %v2319_v49 = vor.u32 %v2317_v37, %v2315_v42  ;;  %v2323_v51 = vrot.slane %v2321_v43, 1  ;;  %v450_v52 = vshrl.u32 %v8894_v24, 16  ;;  %v458_v57 = vshrl.u32 %v8909_v38, 16  ;;  %v8952_v25 = vld [vmem:[%s8801_s11 + $0x64] sm:$0xff]  }
  0x33   : > { %7669 = vmatprep.mubr.msk.bf16.mxu0 %vm590_vm2, %v2308_v34  ;;  %v449_v56 = vsel %vm389_vm1, %v444_v39, %v448_v40  ;;  %v462_v58 = vshll.u32 %v8917_v45, 16  ;;  %v2329_v59 = vshll.u32 %v8914_v44, 16  ;;  %v2316_v61 = vsel %vm389_vm1, %v2311_v46, %v2315_v42  ;;  %v8962_v35 = vld [vmem:[%s8801_s11 + $0x60] sm:$0xff]  }
  0x34   : > { %v456_v62 = vrot.slane %v454_v47, 1  ;;  %v2325_v63 = vshrl.u32 %v8903_v33, 16  ;;  %v2324_v1 = vsel %vm389_vm1, %v2319_v49, %v2323_v51  ;;  %v452_v2 = vor.u32 %v450_v52, %v448_v40  ;;  %v8969_v47 = vld [vmem:[%s8801_s11 + $0x68] sm:$0xff]  }
  0x35   : > { %v2333_v4 = vshrl.u32 %v8914_v44, 16  ;;  %v2337_v5 = vshll.u32 %v8924_v53, 16  ;;  %v464_v8 = vrot.slane %v462_v58, 1  ;;  %v2331_v12 = vrot.slane %v2329_v59, 1  ;;  %v8975_v52 = vld [vmem:[%s8801_s11 + $0x6c] sm:$0xff]  }
  0x36   : > { %v460_v7 = vor.u32 %v458_v57, %v456_v62  ;;  %v2327_v16 = vor.u32 %v2325_v63, %v2323_v51  ;;  %v470_v17 = vshll.u32 %v8934_v0, 16  ;;  %v457_v18 = vsel %vm389_vm1, %v452_v2, %v456_v62 }
  0x37   : > { %v2335_v14 = vor.u32 %v2333_v4, %v2331_v12  ;;  %v2339_v19 = vrot.slane %v2337_v5, 1  ;;  %v466_v23 = vshrl.u32 %v8917_v45, 16  ;;  %v474_v27 = vshrl.u32 %v8934_v0, 16 }
  0x38   : > { %v465_v26 = vsel %vm389_vm1, %v460_v7, %v464_v8  ;;  %v478_v28 = vshll.u32 %v8941_v9, 16  ;;  %v2345_v29 = vshll.u32 %v8945_v13, 16  ;;  %v2332_v31 = vsel %vm389_vm1, %v2327_v16, %v2331_v12 }
  0x39   : > { %7470 = vmatmul.mubr.msk.bf16.gmra.mrb[8].mxu1 %vm590_vm2, %v441_v48  ;;  %v472_v32 = vrot.slane %v470_v17, 1  ;;  %v2341_v34 = vshrl.u32 %v8924_v53, 16  ;;  %v2340_v37 = vsel %vm389_vm1, %v2335_v14, %v2339_v19  ;;  %v468_v39 = vor.u32 %v466_v23, %v464_v8  ;;  %v8988_v8 = vld [vmem:[%s8801_s11 + $0x70] sm:$0xff]  }
  0x3a   : > { %7473 = vmatprep.mubr.msk.bf16.mxu1 %vm590_vm2, %v449_v56  ;;  %7670 = vmatmul.mubr.msk.bf16.gmra.mrb[8].mxu0 %vm590_vm2, %v2316_v61  ;;  %v2349_v40 = vshrl.u32 %v8945_v13, 16  ;;  %v2353_v42 = vshll.u32 %v8952_v25, 16  ;;  %v480_v46 = vrot.slane %v478_v28, 1  ;;  %v2347_v48 = vrot.slane %v2345_v29, 1 }
  0x3b   : > { %7673 = vmatprep.mubr.msk.bf16.mxu0 %vm590_vm2, %v2324_v1  ;;  %v476_v43 = vor.u32 %v474_v27, %v472_v32  ;;  %v2343_v49 = vor.u32 %v2341_v34, %v2339_v19  ;;  %v486_v51 = vshll.u32 %v8962_v35, 16  ;;  %v473_v56 = vsel %vm389_vm1, %v468_v39, %v472_v32  ;;  %v2809_v1 = vld [vmem:[%s8801_s11 + $0xc] sm:$0xe]  ;;  %v8994_v19 = vld [vmem:[%s8801_s11 + $0x78] sm:$0xff]  }
  0x3c   : > { %v2351_v57 = vor.u32 %v2349_v40, %v2347_v48  ;;  %v2355_v58 = vrot.slane %v2353_v42, 1  ;;  %v482_v59 = vshrl.u32 %v8941_v9, 16  ;;  %v490_v62 = vshrl.u32 %v8962_v35, 16  ;;  %v9011_v42 = vld [vmem:[%s8801_s11 + $0x80] sm:$0xff]  }
  0x3d   : > { %v481_v61 = vsel %vm389_vm1, %v476_v43, %v480_v46  ;;  %v494_v63 = vshll.u32 %v8969_v47, 16  ;;  %v2348_v2 = vsel %vm389_vm1, %v2343_v49, %v2347_v48  ;;  %v488_v4 = vrot.slane %v486_v51, 1  ;;  %v9016_v49 = vld [vmem:[%s8801_s11 + $0x88] sm:$0xff]  }
  0x3e   : > { %v2357_v5 = vshrl.u32 %v8952_v25, 16  ;;  %v2361_v7 = vshll.u32 %v8975_v52, 16  ;;  %v2356_v12 = vsel %vm389_vm1, %v2351_v57, %v2355_v58  ;;  %v484_v16 = vor.u32 %v482_v59, %v480_v46 }
  0x3f   : > { %v6985_v17 = vcombine.low %v2809_v1, %v8813_v15  ;;  %v496_v14 = vrot.slane %v494_v63, 1  ;;  %v502_v27 = vshll.u32 %v8988_v8, 16  ;;  %v2815_v15 = vrot.slane %v8818_v20, 1 }
  0x40   : > { %v2359_v23 = vor.u32 %v2357_v5, %v2355_v58  ;;  %v489_v28 = vsel %vm389_vm1, %v484_v16, %v488_v4  ;;  %v506_v34 = vshrl.u32 %v8988_v8, 16  ;;  %v2817_v51 = vrot.slane %v8828_v30, 1  ;;  %v9038_v16 = vld [vmem:[%s8801_s11 + $0x98] sm:$0xff]  }
  0x41   : > { %7474 = vmatmul.mubr.msk.bf16.gmra.mrb[12].mxu1 %vm590_vm2, %v457_v18  ;;  %v492_v18 = vor.u32 %v490_v62, %v488_v4  ;;  %v2814_v29 = vrot.slane %v6985_v17, 1  ;;  %v504_v40 = vrot.slane %v502_v27, 1  ;;  %v2819_v58 = vrot.slane %v8833_v36, 1  ;;  %v9033_v4 = vld [vmem:[%s8801_s11 + $0x90] sm:$0xff]  }
  0x42   : > { %7477 = vmatprep.mubr.msk.bf16.mxu1 %vm590_vm2, %v465_v26  ;;  %7674 = vmatmul.mubr.msk.bf16.gmra.mrb[12].mxu0 %vm590_vm2, %v2332_v31  ;;  %v8998_v26 = vrot.slane %v2361_v7, 1  ;;  %v498_v31 = vshrl.u32 %v8969_v47, 16  ;;  %v514_v59 = vshrl.u32 %v8994_v19, 16  ;;  %v522_v62 = vshrl.u32 %v9011_v42, 16 }
  0x43   : > { %7677 = vmatprep.mubr.msk.bf16.mxu0 %vm590_vm2, %v2340_v37  ;;  %v497_v32 = vsel %vm389_vm1, %v492_v18, %v496_v14  ;;  %v510_v37 = vshll.u32 %v8994_v19, 16  ;;  %v2816_v20 = vsel %vm1173_vm3, %v2814_v29, %v2815_v15  ;;  %v508_v46 = vor.u32 %v506_v34, %v504_v40 }
  0x44   : > { %v2364_v39 = vsel %vm389_vm1, %v2359_v23, %v8998_v26  ;;  %v500_v43 = vor.u32 %v498_v31, %v496_v14  ;;  %v526_v63 = vshll.u32 %v9016_v49, 16  ;;  %v2818_v1 = vsel %vm1173_vm3, %v2815_v15, %v2817_v51  ;;  %v9053_v15 = vld [vmem:[%s12088_s1 + $0xc] ss:$0 sps:$4 sm:$0xcc]  }
  0x45   : > { %v512_v48 = vrot.slane %v510_v37, 1  ;;  %v3457_v30 = vsel %vm663_vm0, %v8856_v55, 0  ;;  %v2820_v36 = vsel %vm1173_vm3, %v2817_v51, %v2819_v58  ;;  %v2821_v55 = vrot.slane %v8851_v54, 1  ;;  %v9056_v54 = vld [vmem:[%s8801_s11 + $0xa0] sm:$0xff]  }
  0x46   : > { %v505_v57 = vsel %vm389_vm1, %v500_v43, %v504_v40  ;;  %v534_v17 = vshll.u32 %v9033_v4, 16  ;;  %v2823_v14 = vrot.slane %v8876_v6, 1  ;;  %v530_v23 = vshrl.u32 %v9016_v49, 16 }
  0x47   : > { %v516_v5 = vor.u32 %v514_v59, %v512_v48  ;;  %v538_v27 = vshrl.u32 %v9033_v4, 16  ;;  %v542_v29 = vshll.u32 %v9038_v16, 16  ;;  %v2822_v6 = vsel %vm1173_vm3, %v2819_v58, %v2821_v55 }
  0x48   : > { %v536_v31 = vrot.slane %v534_v17, 1  ;;  %v2824_v34 = vsel %vm1173_vm3, %v2821_v55, %v2823_v14  ;;  %v2825_v43 = vrot.slane %v8890_v22, 1  ;;  %v2827_v51 = vrot.slane %v8903_v33, 1 }
  0x49   : > { %7478 = vmatmul.mubr.msk.bf16.gmra.mrb[16].mxu1 %vm590_vm2, %v473_v56  ;;  %v518_v56 = vshll.u32 %v9011_v42, 16  ;;  %v544_v40 = vrot.slane %v542_v29, 1  ;;  %v554_v58 = vshrl.u32 %v9056_v54, 16  ;;  %v2831_v55 = vrot.slane %v8924_v53, 1 }
  0x4a   : > { %7481 = vmatprep.mubr.msk.bf16.mxu1 %vm590_vm2, %v481_v61  ;;  %7678 = vmatmul.mubr.msk.bf16.gmra.mrb[16].mxu0 %vm590_vm2, %v2348_v2  ;;  %v513_v61 = vsel %vm389_vm1, %v508_v46, %v512_v48  ;;  %v550_v46 = vshll.u32 %v9056_v54, 16  ;;  %v2826_v22 = vsel %vm1173_vm3, %v2823_v14, %v2825_v43  ;;  %v2828_v33 = vsel %vm1173_vm3, %v2825_v43, %v2827_v51 }
  0x4b   : > { %7681 = vmatprep.mubr.msk.bf16.mxu0 %vm590_vm2, %v2356_v12  ;;  %v520_v2 = vrot.slane %v518_v56, 1  ;;  %v528_v12 = vrot.slane %v526_v63, 1  ;;  %v546_v56 = vshrl.u32 %v9038_v16, 16  ;;  %v9085_v63 = vld [vmem:[%s8801_s11 + $0xb8] sm:$0xff]  }
  0x4d   : > { %v524_v7 = vor.u32 %v522_v62, %v520_v2  ;;  %v521_v18 = vsel %vm389_vm1, %v516_v5, %v520_v2  ;;  %v532_v37 = vor.u32 %v530_v23, %v528_v12  ;;  %v552_v62 = vrot.slane %v550_v46, 1  ;;  %v9100_v23 = vld [vmem:[%s8801_s11 + $0xc0] ss:$0 sps:$4 sm:$0x11]  }
  0x4f   : > { %v537_v48 = vsel %vm389_vm1, %v532_v37, %v536_v31  ;;  %v578_v37 = vshrl.u32 %v9085_v63, 16 }
  0x51   : > { %7482 = vmatmul.mubr.msk.bf16.gmra.mrb[20].mxu1 %vm590_vm2, %v489_v28  ;;  %v529_v28 = vsel %vm389_vm1, %v524_v7, %v528_v12  ;;  %v574_v7 = vshll.u32 %v9085_v63, 16 }
  0x52   : > { %7485 = vmatprep.mubr.msk.bf16.mxu1 %vm590_vm2, %v497_v32  ;;  %7682 = vmatmul.mubr.msk.bf16.gmra.mrb[20].mxu0 %vm590_vm2, %v2364_v39  ;;  %v4104_v32 = vrot.slane %v9053_v15, 2  ;;  %v540_v39 = vor.u32 %v538_v27, %v536_v31  ;;  %v2833_v31 = vrot.slane %v8945_v13, 1  ;;  %v8503_v13 = vld [vmem:[%s8801_s11 + $0x74] sm:$0xff]  }
  0x53   : > { %7711 = vmatprep.mubr.msk.bf16.mxu0 %vm590_vm2, %v2816_v20  ;;  %v9064_v20 = vld [vmem:[%s8801_s11 + $0xa8] sm:$0xff]   ;;  %v8520_v15 = vld [vmem:[%s8801_s11 + $0x38] sm:$0xff]  }
  0x54   : > { %v558_v59 = vshll.u32 %v9064_v20, 16  ;;  %v562_v17 = vshrl.u32 %v9064_v20, 16  ;;  %v2834_v46 = vsel %vm1173_vm3, %v2831_v55, %v2833_v31 }
  0x56   : > { %v560_v2 = vrot.slane %v558_v59, 1  ;;  %v8504_v59 = vld [vmem:[%s8801_s11 + $0x7c] sm:$0xff]  }
  0x58   : > { %v564_v53 = vor.u32 %v562_v17, %v560_v2 }
  0x59   : > { %7486 = vmatmul.mubr.msk.bf16.gmra.mrb[24].mxu1 %vm590_vm2, %v505_v57  ;;  %v545_v57 = vsel %vm389_vm1, %v540_v39, %v544_v40  ;;  %v582_v39 = vshll.u32 %v9100_v23, 16 }
  0x5a   : > { %7489 = vmatprep.mubr.msk.bf16.mxu1 %vm590_vm2, %v513_v61  ;;  %7712 = vmatmul.mubr.msk.bf16.vlgmr.msra.gmra.mrb[0].mxu0 %vm590_vm2, %v2818_v1  ;;  %v9080_v61 = vld [vmem:[%s8801_s11 + $0xb0] sm:$0xff]   ;;  %v548_v1 = vor.u32 %v546_v56, %v544_v40  ;;  %v2837_v56 = vrot.slane %v8975_v52, 1 }
  0x5b   : > { %7760 = vmatpush3.bf16.msra.mxu0 %v3457_v30  ;;  %7715 = vmatprep.mubr.msk.bf16.mxu0 %vm590_vm2, %v2820_v36  ;;  %v556_v30 = vor.u32 %v554_v58, %v552_v62  ;;  %v2829_v36 = vrot.slane %v8914_v44, 1  ;;  %v566_v5 = vshll.u32 %v9080_v61, 16  ;;  %v570_v14 = vshrl.u32 %v9080_v61, 16 }
  0x5c   : > { %8303 = vmatprep.subr.msk.bf16.mxu0 %vm663_vm0, %v4104_v32  ;;  %v553_v12 = vsel %vm389_vm1, %v548_v1, %v552_v62  ;;  %v1296_v1 = vsel %vm663_vm0, %v8840_v41, 0 }
  0x5d   : > { %v2830_v44 = vsel %vm1173_vm3, %v2827_v51, %v2829_v36  ;;  %v568_v27 = vrot.slane %v566_v5, 1  ;;  %v2832_v29 = vsel %vm1173_vm3, %v2829_v36, %v2831_v55  ;;  %v8506_v5 = vld [vmem:[%s8801_s11 + $0x8c] sm:$0xff]  }
  0x5e   : > { %v2845_v55 = vrot.slane %v8506_v5, 1 }
  0x5f   : > { %v569_v40 = vsel %vm389_vm1, %v564_v53, %v568_v27  ;;  %v9176_v53 = vld [vmem:[%s8801_s11 + $0xac] sm:$0xff]  }
  0x61   : > { %7490 = vmatmul.mubr.msk.bf16.gmra.mrb[28].mxu1 %vm590_vm2, %v521_v18  ;;  %v561_v18 = vsel %vm389_vm1, %v556_v30, %v560_v2  ;;  %v2841_v30 = vrot.slane %v8504_v59, 1  ;;  %v1168_v59 = vld [vmem:[%s8801_s11] sm:$0xe] }
  0x62   : > { %7493 = vmatprep.mubr.msk.bf16.mxu1 %vm590_vm2, %v529_v28  ;;  %7716 = vmatmul.mubr.msk.bf16.gmra.mrb[4].mxu0 %vm590_vm2, %v2822_v6  ;;  %v576_v28 = vrot.slane %v574_v7, 1  ;;  %v572_v6 = vor.u32 %v570_v14, %v568_v27  ;;  %v9142_v7 = vld [vmem:[%s8801_s11 + $0x8] sm:$0xff]   ;;  %v9163_v14 = vld [vmem:[%s8801_s11 + $0x9c] sm:$0xff]  }
  0x63   : > { %7719 = vmatprep.mubr.msk.bf16.mxu0 %vm590_vm2, %v2824_v34  ;;  %v2835_v34 = vrot.slane %v8952_v25, 1 }
  0x64   : > { %v577_v43 = vsel %vm389_vm1, %v572_v6, %v576_v28  ;;  %v580_v51 = vor.u32 %v578_v37, %v576_v28  ;;  %v2849_v28 = vrot.slane %v9163_v14, 1 }
  0x65   : > { %v2836_v25 = vsel %vm1173_vm3, %v2833_v31, %v2835_v34  ;;  %v2838_v62 = vsel %vm1173_vm3, %v2835_v34, %v2837_v56  ;;  %v2853_v34 = vrot.slane %v9176_v53, 1 }
  0x69   : > { %7494 = vmatmul.mubr.msk.bf16.gmra.mrb[32].mxu1 %vm590_vm2, %v537_v48  ;;  %v584_v48 = vrot.slane %v582_v39, 1  ;;  %v9195_v39 = vld [vmem:[%s8801_s11 + $0xbc] sm:$0xff]  }
  0x6a   : > { %7497 = vmatprep.mubr.msk.bf16.mxu1 %vm590_vm2, %v545_v57  ;;  %7720 = vmatmul.mubr.msk.bf16.gmra.mrb[8].mxu0 %vm590_vm2, %v2826_v22  ;;  %v2839_v57 = vrot.slane %v8503_v13, 1  ;;  %v9127_v22 = vld [vmem:[%s12088_s1 + $0x4] ss:$0 sps:$4 sm:$0xcc]  }
  0x6b   : > { %7723 = vmatprep.mubr.msk.bf16.mxu0 %vm590_vm2, %v2828_v33  ;;  %v585_v58 = vsel %vm389_vm1, %v580_v51, %v584_v48  ;;  %v8505_v33 = vld [vmem:[%s8801_s11 + $0x84] sm:$0xff]   ;;  %v1743_v36 = vrot.slane %v9127_v22, 2 }
  0x6c   : > { %v2840_v52 = vsel %vm1173_vm3, %v2837_v56, %v2839_v57  ;;  %v2843_v2 = vrot.slane %v8505_v33, 1  ;;  %v8518_v51 = vld [vmem:[%s8801_s11 + $0x28] sm:$0xff]  }
  0x6d   : > { %v8522_v56 = vld [vmem:[%s8801_s11 + $0x48] sm:$0xff]  }
  0x6e   : > { %v2844_v41 = vsel %vm1173_vm3, %v2841_v30, %v2843_v2  ;;  %v8598_v22 = vld [vmem:[%s12088_s1 + $0x8] sm:$0x3] }
  0x71   : > { %7498 = vmatmul.mubr.msk.bf16.gmra.mrb[36].mxu1 %vm590_vm2, %v553_v12  ;;  %v8507_v12 = vld [vmem:[%s8801_s11 + $0x94] sm:$0xff]  }
  0x72   : > { %7501 = vmatprep.mubr.msk.bf16.mxu1 %vm590_vm2, %v561_v18  ;;  %7724 = vmatmul.mubr.msk.bf16.gmra.mrb[12].mxu0 %vm590_vm2, %v2830_v44  ;;  %v2847_v17 = vrot.slane %v8507_v12, 1  ;;  %v9157_v18 = vld [vmem:[%s8801_s11 + $0x18] sm:$0xff]   ;;  %v9166_v44 = vld [vmem:[%s8801_s11 + $0xa4] sm:$0xff]  }
  0x73   : > { %7727 = vmatprep.mubr.msk.bf16.mxu0 %vm590_vm2, %v2832_v29  ;;  %v2851_v29 = vrot.slane %v9166_v44, 1  ;;  %v8530_v12 = vld [vmem:[%s8801_s11 + $0x78] sm:$0xff]  }
  0x74   : > { %v2848_v27 = vsel %vm1173_vm3, %v2845_v55, %v2847_v17  ;;  %v2850_v6 = vsel %vm1173_vm3, %v2847_v17, %v2849_v28 }
  0x75   : > { %v2852_v31 = vsel %vm1173_vm3, %v2849_v28, %v2851_v29  ;;  %v8531_v28 = vld [vmem:[%s8801_s11 + $0x80] sm:$0xff]  }
  0x79   : > { %7502 = vmatmul.mubr.msk.bf16.gmra.mrb[40].mxu1 %vm590_vm2, %v569_v40  ;;  %v9201_v40 = vld [vmem:[%s8801_s11 + $0xc4] sm:$0xff]  }
  0x7a   : > { %7505 = vmatprep.mubr.msk.bf16.mxu1 %vm590_vm2, %v577_v43  ;;  %7728 = vmatmul.mubr.msk.bf16.gmra.mrb[16].mxu0 %vm590_vm2, %v2834_v46  ;;  %v2857_v43 = vrot.slane %v9195_v39, 1  ;;  %v9211_v46 = vld [vmem:[%s8801_s11 + $0xcc] ss:$0 sps:$4 sm:$0x11]  }
  0x7b   : > { %7731 = vmatprep.mubr.msk.bf16.mxu0 %vm590_vm2, %v2836_v25  ;;  %v2861_v13 = vrot.slane %v9211_v46, 1  ;;  %v8515_v25 = vld [vmem:[%s8801_s11 + $0x18] sm:$0xff]  }
  0x81   : > { %7506 = vmatmul.mubr.msk.bf16.gmra.mrb[44].mxu1 %vm590_vm2, %v585_v58  ;;  %v8524_v58 = vld [vmem:[%s8801_s11 + $0x58] sm:$0xff]  }
  0x82   : > { %7511 = vmatprep.mubr.msk.bf16.mxu1 %vm590_vm2, %v8807_v11  ;;  %7732 = vmatmul.mubr.msk.bf16.gmra.mrb[20].mxu0 %vm590_vm2, %v2838_v62  ;;  %v2842_v11 = vsel %vm1173_vm3, %v2839_v57, %v2841_v30  ;;  %v8523_v57 = vld [vmem:[%s8801_s11 + $0x50] sm:$0xff]   ;;  %v8594_v62 = vld [vmem:[%s8801_s11 + $0x4] sm:$0xf] }
  0x83   : > { %7735 = vmatprep.mubr.msk.bf16.mxu0 %vm590_vm2, %v2840_v52  ;;  %v6862_v33 = vcombine.low %v1168_v59, %v8594_v62  ;;  %v8525_v52 = vld [vmem:[%s8801_s11 + $0x60] sm:$0xff]   ;;  %v8537_v59 = vld [vmem:[%s8801_s11 + $0xb0] sm:$0xff]   ;;  %v8538_v62 = vld [vmem:[%s8801_s11 + $0xb8] sm:$0xff]  }
  0x85   : > { %v1174_v30 = vrot.slane %v6862_v33, 1  ;;  %v8603_v33 = vld [vmem:[%s8801_s11 + $0x50] sm:$0xff]  }
  0x89   : > { %7512 = vmatmul.mubr.msk.bf16.vlgmr.msra.gmra.mrb[0].mxu1 %vm590_vm2, %v9142_v7 }
  0x8a   : > { %7560 = vmatpush3.bf16.msra.mxu1 %v1296_v1  ;;  %7515 = vmatprep.mubr.msk.bf16.mxu1 %vm590_vm2, %v8821_v21  ;;  %v2846_v21 = vsel %vm1173_vm3, %v2843_v2, %v2845_v55  ;;  %v8526_v1 = vld [vmem:[%s8801_s11 + $0x68] sm:$0xff]   ;;  %v1175_v2 = vrot.slane %v9142_v7, 1  ;;  %v1179_v7 = vrot.slane %v9157_v18, 1 }
  0x8b   : > { %8298 = vmatprep.subr.msk.bf16.mxu1 %vm663_vm0, %v1743_v36  ;;  %7736 = vmatmul.mubr.msk.bf16.gmra.mrb[24].mxu0 %vm590_vm2, %v2842_v11  ;;  %v8527_v11 = vld [vmem:[%s8801_s11 + $0x70] sm:$0xff]  }
  0x8c   : > { %7739 = vmatprep.mubr.msk.bf16.mxu0 %vm590_vm2, %v2844_v41  ;;  %v1176_v5 = vsel %vm1173_vm3, %v1174_v30, %v1175_v2  ;;  %v8595_v41 = vld [vmem:[%s8801_s11 + $0x10] sm:$0xff]   ;;  %v8604_v30 = vld [vmem:[%s8801_s11 + $0x58] sm:$0xff]  }
  0x8d   : > { %v1177_v55 = vrot.slane %v8595_v41, 1 }
  0x8f   : > { %v1178_v17 = vsel %vm1173_vm3, %v1175_v2, %v1177_v55  ;;  %v1195_v2 = vrot.slane %v8604_v30, 1 }
  0x91   : > { %7516 = vmatmul.mubr.msk.bf16.gmra.mrb[4].mxu1 %vm590_vm2, %v9157_v18  ;;  %v8596_v18 = vld [vmem:[%s8801_s11 + $0x20] sm:$0xff]  }
  0x92   : > { %7519 = vmatprep.mubr.msk.bf16.mxu1 %vm590_vm2, %v8847_v50  ;;  %v9182_v50 = vld [vmem:[%s8801_s11 + $0xb4] sm:$0xff]  }
  0x93   : > { %7740 = vmatmul.mubr.msk.bf16.gmra.mrb[28].mxu0 %vm590_vm2, %v2846_v21  ;;  %v2855_v37 = vrot.slane %v9182_v50, 1  ;;  %v1817_v21 = vsel %vm663_vm0, %v1743_v36, 0 }
  0x94   : > { %7743 = vmatprep.mubr.msk.bf16.mxu0 %vm590_vm2, %v2848_v27  ;;  %v1180_v27 = vsel %vm1173_vm3, %v1177_v55, %v1179_v7  ;;  %v8539_v55 = vld [vmem:[%s8801_s11 + $0xc0] sm:$0xff]  }
  0x99   : > { %7520 = vmatmul.mubr.msk.bf16.gmra.mrb[8].mxu1 %vm590_vm2, %v8862_v60  ;;  %v2854_v60 = vsel %vm1173_vm3, %v2851_v29, %v2853_v34  ;;  %v8532_v29 = vld [vmem:[%s8801_s11 + $0x88] sm:$0xff]  }
  0x9a   : > { %7523 = vmatprep.mubr.msk.bf16.mxu1 %vm590_vm2, %v8881_v10  ;;  %v2856_v10 = vsel %vm1173_vm3, %v2853_v34, %v2855_v37 }
  0x9b   : > { %7744 = vmatmul.mubr.msk.bf16.gmra.mrb[32].mxu0 %vm590_vm2, %v2850_v6  ;;  %v1181_v6 = vrot.slane %v8596_v18, 1  ;;  %v8606_v18 = vld [vmem:[%s8801_s11 + $0x68] sm:$0xff]  }
  0x9c   : > { %7747 = vmatprep.mubr.msk.bf16.mxu0 %vm590_vm2, %v2852_v31  ;;  %v8597_v31 = vld [vmem:[%s8801_s11 + $0x28] sm:$0xff]  }
  0x9d   : > { %v1183_v34 = vrot.slane %v8597_v31, 1  ;;  %v1182_v36 = vsel %vm1173_vm3, %v1179_v7, %v1181_v6  ;;  %v8540_v7 = vld [vmem:[%s8801_s11 + $0xc8] sm:$0xff]  }
  0x9e   : > { %v9356_v31 = vld [vmem:[%s8801_s11 + $0x28] sm:$0xff]  }
  0xa1   : > { %7524 = vmatmul.mubr.msk.bf16.gmra.mrb[12].mxu1 %vm590_vm2, %v8894_v24  ;;  %v2859_v24 = vrot.slane %v9201_v40, 1 }
  0xa2   : > { %7527 = vmatprep.mubr.msk.bf16.mxu1 %vm590_vm2, %v8909_v38  ;;  %v2858_v38 = vsel %vm1173_vm3, %v2855_v37, %v2857_v43  ;;  %v1184_v37 = vsel %vm1173_vm3, %v1181_v6, %v1183_v34  ;;  %v1199_v6 = vrot.slane %v8606_v18, 1 }
  0xa3   : > { %7748 = vmatmul.mubr.msk.bf16.gmra.mrb[36].mxu0 %vm590_vm2, %v2854_v60  ;;  %v2860_v48 = vsel %vm1173_vm3, %v2857_v43, %v2859_v24  ;;  %v8533_v60 = vld [vmem:[%s8801_s11 + $0x90] sm:$0xff]  }
  0xa4   : > { %7751 = vmatprep.mubr.msk.bf16.mxu0 %vm590_vm2, %v2856_v10  ;;  %v8534_v10 = vld [vmem:[%s8801_s11 + $0x98] sm:$0xff]   ;;  %v8599_v43 = vld [vmem:[%s8801_s11 + $0x30] sm:$0xff]  }
  0xa9   : > { %7528 = vmatmul.mubr.msk.bf16.gmra.mrb[16].mxu1 %vm590_vm2, %v8917_v45  ;;  %v2862_v45 = vsel %vm1173_vm3, %v2859_v24, %v2861_v13  ;;  %v1185_v24 = vrot.slane %v8599_v43, 1  ;;  %v3921_v43 = vshll.u32 %v9356_v31, 16 }
  0xaa   : > { %7531 = vmatprep.mubr.msk.bf16.mxu1 %vm590_vm2, %v8934_v0  ;;  %v8517_v0 = vld [vmem:[%s8801_s11 + $0x20] sm:$0xff]  }
  0xab   : > { %7752 = vmatmul.mubr.msk.bf16.gmra.mrb[40].mxu0 %vm590_vm2, %v2858_v38  ;;  %v8600_v38 = vld [vmem:[%s8801_s11 + $0x38] sm:$0xff]   ;;  %v1186_v13 = vsel %vm1173_vm3, %v1183_v34, %v1185_v24 }
  0xac   : > { %7755 = vmatprep.mubr.msk.bf16.mxu0 %vm590_vm2, %v2860_v48  ;;  %v1187_v48 = vrot.slane %v8600_v38, 1 }
  0xb1   : > { %7532 = vmatmul.mubr.msk.bf16.gmra.mrb[20].mxu1 %vm590_vm2, %v8941_v9  ;;  %v4178_v9 = vsel %vm663_vm0, %v4104_v32, 0  ;;  %v8521_v32 = vld [vmem:[%s8801_s11 + $0x40] sm:$0xff]  }
  0xb2   : > { %7535 = vmatprep.mubr.msk.bf16.mxu1 %vm590_vm2, %v8962_v35  ;;  %v9239_v35 = vld [vmem:[%s12088_s1 + $0x10] sm:$0x3] }
  0xb3   : > { %7756 = vmatmul.mubr.msk.bf16.gmra.mrb[44].mxu0 %vm590_vm2, %v2862_v45  ;;  %v1188_v45 = vsel %vm1173_vm3, %v1185_v24, %v1187_v48 }
  0xb4   : > { %7761 = vmatprep.mubr.msk.bf16.mxu0 %vm590_vm2, %v8515_v25  ;;  %v8535_v25 = vld [vmem:[%s8801_s11 + $0xa0] sm:$0xff]  }
  0xb9   : > { %7536 = vmatmul.mubr.msk.bf16.gmra.mrb[24].mxu1 %vm590_vm2, %v8969_v47  ;;  %v8519_v47 = vld [vmem:[%s8801_s11 + $0x30] sm:$0xff]  }
  0xba   : > { %7539 = vmatprep.mubr.msk.bf16.mxu1 %vm590_vm2, %v8988_v8 }
  0xbb   : > { %7762 = vmatmul.mubr.msk.bf16.vlgmr.msra.gmra.mrb[0].mxu0 %vm590_vm2, %v8517_v0  ;;  %v8536_v0 = vld [vmem:[%s8801_s11 + $0xa8] sm:$0xff]  }
  0xbc   : > { %7810 = vmatpush3.bf16.msra.mxu0 %v4178_v9  ;;  %7765 = vmatprep.mubr.msk.bf16.mxu0 %vm590_vm2, %v8518_v51  ;;  %v8601_v51 = vld [vmem:[%s8801_s11 + $0x40] sm:$0xff]  }
  0xbd   : > { %8304 = vmatprep.subr.msk.bf16.mxu0 %vm663_vm0, %v9239_v35  ;;  %v1189_v9 = vrot.slane %v8601_v51, 1  ;;  %v9376_v51 = vld [vmem:[%s8801_s11 + $0x38] sm:$0xff]  }
  0xc1   : > { %7540 = vmatmul.mubr.msk.bf16.gmra.mrb[28].mxu1 %vm590_vm2, %v8994_v19 }
  0xc2   : > { %7543 = vmatprep.mubr.msk.bf16.mxu1 %vm590_vm2, %v9011_v42 }
  0xc3   : > { %7766 = vmatmul.mubr.msk.bf16.gmra.mrb[4].mxu0 %vm590_vm2, %v8519_v47  ;;  %v8602_v47 = vld [vmem:[%s8801_s11 + $0x48] sm:$0xff]  }
  0xc4   : > { %7769 = vmatprep.mubr.msk.bf16.mxu0 %vm590_vm2, %v8520_v15  ;;  %v1191_v15 = vrot.slane %v8602_v47, 1 }
  0xc9   : > { %7544 = vmatmul.mubr.msk.bf16.gmra.mrb[32].mxu1 %vm590_vm2, %v9016_v49 }
  0xca   : > { %7547 = vmatprep.mubr.msk.bf16.mxu1 %vm590_vm2, %v9033_v4 }
  0xcb   : > { %7770 = vmatmul.mubr.msk.bf16.gmra.mrb[8].mxu0 %vm590_vm2, %v8521_v32  ;;  %v1190_v32 = vsel %vm1173_vm3, %v1187_v48, %v1189_v9  ;;  %v1201_v48 = vrot.slane %v8988_v8, 1  ;;  %v9381_v8 = vld [vmem:[%s8801_s11 + $0x40] sm:$0xff]  }
  0xcc   : > { %7773 = vmatprep.mubr.msk.bf16.mxu0 %vm590_vm2, %v8522_v56  ;;  %v1192_v56 = vsel %vm1173_vm3, %v1189_v9, %v1191_v15  ;;  %v3945_v30 = vshll.u32 %v9381_v8, 16 }
  0xcd   : > { %v1202_v47 = vsel %vm1173_vm3, %v1199_v6, %v1201_v48 }
  0xd1   : > { %7548 = vmatmul.mubr.msk.bf16.gmra.mrb[36].mxu1 %vm590_vm2, %v9038_v16 }
  0xd2   : > { %7551 = vmatprep.mubr.msk.bf16.mxu1 %vm590_vm2, %v9056_v54 }
  0xd3   : > { %7774 = vmatmul.mubr.msk.bf16.gmra.mrb[12].mxu0 %vm590_vm2, %v8523_v57  ;;  %v3732_v57 = vld [vmem:[%s8801_s11 + $0x18] sm:$0xf] }
  0xd4   : > { %7777 = vmatprep.mubr.msk.bf16.mxu0 %vm590_vm2, %v8524_v58  ;;  %v9331_v58 = vld [vmem:[%s8801_s11 + $0x1c] sm:$0xf] }
  0xd9   : > { %7552 = vmatmul.mubr.msk.bf16.gmra.mrb[40].mxu1 %vm590_vm2, %v9064_v20 }
  0xda   : > { %7555 = vmatprep.mubr.msk.bf16.mxu1 %vm590_vm2, %v9080_v61 }
  0xdb   : > { %7778 = vmatmul.mubr.msk.bf16.gmra.mrb[16].mxu0 %vm590_vm2, %v8525_v52  ;;  %v1193_v52 = vrot.slane %v8603_v33, 1 }
  0xdc   : > { %7781 = vmatprep.mubr.msk.bf16.mxu0 %vm590_vm2, %v8526_v1  ;;  %v7059_v1 = vcombine.low %v3732_v57, %v9331_v58  ;;  %v3937_v57 = vshll.u32 %v9376_v51, 16 }
  0xdd   : > { %v1196_v41 = vsel %vm1173_vm3, %v1193_v52, %v1195_v2 }
  0xe1   : > { %7556 = vmatmul.mubr.msk.bf16.gmra.mrb[44].mxu1 %vm590_vm2, %v9085_v63 }
  0xe2   : > { %7561 = vmatprep.mubr.msk.bf16.mxu1 %vm590_vm2, %v1176_v5  ;;  %v1194_v5 = vsel %vm1173_vm3, %v1191_v15, %v1193_v52  ;;  %v1205_v52 = vrot.slane %v9011_v42, 1  ;;  %v3947_v42 = vrot.slane %v3945_v30, 1  ;;  %v1217_v30 = vrot.slane %v9080_v61, 1  ;;  %v9463_v61 = vld [vmem:[%s8801_s11 + $0x80] sm:$0xff]  }
  0xe3   : > { %7782 = vmatmul.mubr.msk.bf16.gmra.mrb[20].mxu0 %vm590_vm2, %v8527_v11  ;;  %v9344_v11 = vld [vmem:[%s8801_s11 + $0x20] sm:$0xff]  }
  0xe4   : > { %7785 = vmatprep.mubr.msk.bf16.mxu0 %vm590_vm2, %v8530_v12  ;;  %v3908_v12 = vshll.u32 %v7059_v1, 16  ;;  %v3917_v24 = vshrl.u32 %v9344_v11, 16 }
  0xe9   : > { %7562 = vmatmul.mubr.msk.bf16.vlgmr.msra.gmra.mrb[0].mxu1 %vm590_vm2, %v1178_v17  ;;  %v8605_v17 = vld [vmem:[%s8801_s11 + $0x60] sm:$0xff]  }
  0xea   : > { %7610 = vmatpush3.bf16.msra.mxu1 %v1817_v21  ;;  %7565 = vmatprep.mubr.msk.bf16.mxu1 %vm590_vm2, %v1180_v27  ;;  %v1197_v21 = vrot.slane %v8605_v17, 1  ;;  %v3906_v27 = vshrl.u32 %v7059_v1, 16  ;;  %v3941_v1 = vshrl.u32 %v9376_v51, 16 }
  0xeb   : > { %8300 = vmatprep.subr.msk.bf16.mxu1 %vm663_vm0, %v8598_v22  ;;  %7786 = vmatmul.mubr.msk.bf16.gmra.mrb[24].mxu0 %vm590_vm2, %v8531_v28  ;;  %v3910_v28 = vrot.slane %v3908_v12, 1  ;;  %v9398_v12 = vld [vmem:[%s8801_s11 + $0x48] sm:$0xff]  }
  0xec   : > { %7789 = vmatprep.mubr.msk.bf16.mxu0 %vm590_vm2, %v8532_v29  ;;  %v3913_v29 = vshll.u32 %v9344_v11, 16  ;;  %v1198_v34 = vsel %vm1173_vm3, %v1195_v2, %v1197_v21  ;;  %v1207_v2 = vrot.slane %v9016_v49, 1  ;;  %v3953_v49 = vshll.u32 %v9398_v12, 16 }
  0xed   : > { %v3911_v22 = vor.u32 %v3910_v28, %v3906_v27  ;;  %v3949_v27 = vshrl.u32 %v9381_v8, 16  ;;  %v3957_v18 = vshrl.u32 %v9398_v12, 16 }
  0xee   : > { %v1208_v17 = vsel %vm1173_vm3, %v1205_v52, %v1207_v2 }
  0xf1   : > { %7566 = vmatmul.mubr.msk.bf16.gmra.mrb[4].mxu1 %vm590_vm2, %v1182_v36  ;;  %v3915_v36 = vrot.slane %v3913_v29, 1  ;;  %v1209_v29 = vrot.slane %v9033_v4, 1  ;;  %v9423_v4 = vld [vmem:[%s8801_s11 + $0x60] sm:$0xff]  }
  0xf2   : > { %7569 = vmatprep.mubr.msk.bf16.mxu1 %vm590_vm2, %v1184_v37  ;;  %v9361_v37 = vld [vmem:[%s8801_s11 + $0x30] sm:$0xff]  }
  0xf3   : > { %7790 = vmatmul.mubr.msk.bf16.gmra.mrb[28].mxu0 %vm590_vm2, %v8533_v60  ;;  %v1200_v60 = vsel %vm1173_vm3, %v1197_v21, %v1199_v6  ;;  %v3916_v38 = vsel %vm389_vm1, %v3911_v22, %v3915_v36  ;;  %v3919_v9 = vor.u32 %v3917_v24, %v3915_v36  ;;  %v3955_v22 = vrot.slane %v3953_v49, 1  ;;  %v9418_v36 = vld [vmem:[%s8801_s11 + $0x58] sm:$0xff]  }
  0xf4   : > { %7793 = vmatprep.mubr.msk.bf16.mxu0 %vm590_vm2, %v8534_v10  ;;  %v8541_v10 = vld [vmem:[%s8801_s11 + $0xd0] sm:$0xff]  }
  0xf9   : > { %7570 = vmatmul.mubr.msk.bf16.gmra.mrb[8].mxu1 %vm590_vm2, %v1186_v13  ;;  %v3925_v13 = vshrl.u32 %v9356_v31, 16 }
  0xfa   : > { %7573 = vmatprep.mubr.msk.bf16.mxu1 %vm590_vm2, %v1188_v45  ;;  %v3929_v45 = vshll.u32 %v9361_v37, 16 }
  0xfb   : > { %7794 = vmatmul.mubr.msk.bf16.gmra.mrb[32].mxu0 %vm590_vm2, %v8535_v25  ;;  %v1203_v25 = vrot.slane %v8994_v19, 1 }
  0xfc   : > { %7797 = vmatprep.mubr.msk.bf16.mxu0 %vm590_vm2, %v8536_v0  ;;  %v3923_v0 = vrot.slane %v3921_v43, 1  ;;  %v3959_v43 = vor.u32 %v3957_v18, %v3955_v22 }
  0xfe   : > { %v3927_v15 = vor.u32 %v3925_v13, %v3923_v0  ;;  %v3924_v19 = vsel %vm389_vm1, %v3919_v9, %v3923_v0  ;;  %v3973_v0 = vshrl.u32 %v9418_v36, 16  ;;  %v3977_v9 = vshll.u32 %v9423_v4, 16 }
 0x101   : > { %7574 = vmatmul.mubr.msk.bf16.gmra.mrb[12].mxu1 %vm590_vm2, %v1190_v32  ;;  %v3931_v32 = vrot.slane %v3929_v45, 1 }
 0x102   : > { %7577 = vmatprep.mubr.msk.bf16.mxu1 %vm590_vm2, %v1192_v56  ;;  %v1204_v56 = vsel %vm1173_vm3, %v1201_v48, %v1203_v25  ;;  %v3969_v48 = vshll.u32 %v9418_v36, 16 }
 0x103   : > { %7798 = vmatmul.mubr.msk.bf16.gmra.mrb[36].mxu0 %vm590_vm2, %v8537_v59  ;;  %v4580_v59 = vsel %vm663_vm0, %v9239_v35, 0  ;;  %v3932_v33 = vsel %vm389_vm1, %v3927_v15, %v3931_v32 }
 0x104   : > { %7801 = vmatprep.mubr.msk.bf16.mxu0 %vm590_vm2, %v8538_v62  ;;  %v3933_v62 = vshrl.u32 %v9361_v37, 16  ;;  %v3971_v15 = vrot.slane %v3969_v48, 1 }
 0x106   : > { %v3935_v35 = vor.u32 %v3933_v62, %v3931_v32  ;;  %v9438_v32 = vld [vmem:[%s8801_s11 + $0x68] sm:$0xff]  }
 0x109   : > { %7578 = vmatmul.mubr.msk.bf16.gmra.mrb[16].mxu1 %vm590_vm2, %v1194_v5  ;;  %v3939_v5 = vrot.slane %v3937_v57, 1 }
 0x10a   : > { %7581 = vmatprep.mubr.msk.bf16.mxu1 %vm590_vm2, %v1196_v41  ;;  %v1206_v41 = vsel %vm1173_vm3, %v1203_v25, %v1205_v52  ;;  %v1213_v25 = vrot.slane %v9056_v54, 1  ;;  %v9443_v54 = vld [vmem:[%s8801_s11 + $0x70] sm:$0xff]   ;;  %v3981_v52 = vshrl.u32 %v9423_v4, 16 }
 0x10b   : > { %7802 = vmatmul.mubr.msk.bf16.gmra.mrb[40].mxu0 %vm590_vm2, %v8539_v55  ;;  %v3943_v55 = vor.u32 %v3941_v1, %v3939_v5  ;;  %v3940_v21 = vsel %vm389_vm1, %v3935_v35, %v3939_v5  ;;  %v3993_v5 = vshll.u32 %v9443_v54, 16  ;;  %v1219_v35 = vrot.slane %v9085_v63, 1 }
 0x10c   : > { %7805 = vmatprep.mubr.msk.bf16.mxu0 %vm590_vm2, %v8540_v7  ;;  %v9403_v7 = vld [vmem:[%s8801_s11 + $0x50] sm:$0xff]  }
 0x10d   : > { %v3948_v28 = vsel %vm389_vm1, %v3943_v55, %v3947_v42  ;;  %v3961_v6 = vshll.u32 %v9403_v7, 16  ;;  %v3965_v13 = vshrl.u32 %v9403_v7, 16  ;;  %v9458_v55 = vld [vmem:[%s8801_s11 + $0x78] sm:$0xff]  }
 0x10e   : > { %v4001_v63 = vshll.u32 %v9458_v55, 16 }
 0x10f   : > { %v3963_v24 = vrot.slane %v3961_v6, 1  ;;  %v1221_v6 = vrot.slane %v9100_v23, 1  ;;  %v9483_v23 = vld [vmem:[%s8801_s11 + $0x90] sm:$0xff]  }
 0x111   : > { %7582 = vmatmul.mubr.msk.bf16.gmra.mrb[20].mxu1 %vm590_vm2, %v1198_v34  ;;  %v1211_v34 = vrot.slane %v9038_v16, 1  ;;  %v3964_v45 = vsel %vm389_vm1, %v3959_v43, %v3963_v24 }
 0x112   : > { %7585 = vmatprep.mubr.msk.bf16.mxu1 %vm590_vm2, %v1200_v60  ;;  %v3951_v60 = vor.u32 %v3949_v27, %v3947_v42  ;;  %v1220_v27 = vsel %vm1173_vm3, %v1217_v30, %v1219_v35 }
 0x113   : > { %7806 = vmatmul.mubr.msk.bf16.gmra.mrb[44].mxu0 %vm590_vm2, %v8541_v10  ;;  %v1210_v10 = vsel %vm1173_vm3, %v1207_v2, %v1209_v29  ;;  %v1214_v57 = vsel %vm1173_vm3, %v1211_v34, %v1213_v25  ;;  %v3989_v2 = vshrl.u32 %v9438_v32, 16 }
 0x114   : > { %7811 = vmatprep.mubr.msk.bf16.mxu0 %vm590_vm2, %v3916_v38  ;;  %v1212_v38 = vsel %vm1173_vm3, %v1209_v29, %v1211_v34  ;;  %v3956_v16 = vsel %vm389_vm1, %v3951_v60, %v3955_v22  ;;  %v3997_v29 = vshrl.u32 %v9443_v54, 16  ;;  %v4005_v34 = vshrl.u32 %v9458_v55, 16 }
 0x115   : > { %v4009_v22 = vshll.u32 %v9463_v61, 16  ;;  %v4003_v60 = vrot.slane %v4001_v63, 1  ;;  %v9520_v63 = vld [vmem:[%s8801_s11 + $0xb0] sm:$0xff]  }
 0x117   : > { %v4007_v48 = vor.u32 %v4005_v34, %v4003_v60 }
 0x119   : > { %7586 = vmatmul.mubr.msk.bf16.gmra.mrb[24].mxu1 %vm590_vm2, %v1202_v47  ;;  %v1215_v47 = vrot.slane %v9064_v20, 1 }
 0x11a   : > { %7589 = vmatprep.mubr.msk.bf16.mxu1 %vm590_vm2, %v1204_v56  ;;  %v3967_v56 = vor.u32 %v3965_v13, %v3963_v24  ;;  %v1222_v24 = vsel %vm1173_vm3, %v1219_v35, %v1221_v6 }
 0x11b   : > { %7812 = vmatmul.mubr.msk.bf16.vlgmr.msra.gmra.mrb[0].mxu0 %vm590_vm2, %v3924_v19  ;;  %v3975_v19 = vor.u32 %v3973_v0, %v3971_v15  ;;  %v1216_v62 = vsel %vm1173_vm3, %v1213_v25, %v1215_v47  ;;  %v4013_v25 = vshrl.u32 %v9463_v61, 16 }
 0x11c   : > { %7860 = vmatpush3.bf16.msra.mxu0 %v4580_v59  ;;  %7815 = vmatprep.mubr.msk.bf16.mxu0 %vm590_vm2, %v3932_v33  ;;  %v3979_v59 = vrot.slane %v3977_v9, 1  ;;  %v3985_v33 = vshll.u32 %v9438_v32, 16  ;;  %v3972_v20 = vsel %vm389_vm1, %v3967_v56, %v3971_v15  ;;  %v9495_v56 = vld [vmem:[%s8801_s11 + $0x98] sm:$0xff]  }
 0x11e   : > { %v3980_v1 = vsel %vm389_vm1, %v3975_v19, %v3979_v59  ;;  %v3983_v42 = vor.u32 %v3981_v52, %v3979_v59  ;;  %v8559_v59 = vld [vmem:[%s8801_s11 + $0x1c] sm:$0xff]   ;;  %v4033_v52 = vshll.u32 %v9495_v56, 16 }
 0x121   : > { %7590 = vmatmul.mubr.msk.bf16.gmra.mrb[28].mxu1 %vm590_vm2, %v1206_v41  ;;  %v3987_v41 = vrot.slane %v3985_v33, 1 }
 0x122   : > { %7593 = vmatprep.mubr.msk.bf16.mxu1 %vm590_vm2, %v1208_v17  ;;  %v1218_v17 = vsel %vm1173_vm3, %v1215_v47, %v1217_v30  ;;  %v4025_v47 = vshll.u32 %v9483_v23, 16  ;;  %v4029_v30 = vshrl.u32 %v9483_v23, 16 }
 0x123   : > { %7816 = vmatmul.mubr.msk.bf16.gmra.mrb[4].mxu0 %vm590_vm2, %v3940_v21  ;;  %v3991_v49 = vor.u32 %v3989_v2, %v3987_v41  ;;  %v3995_v21 = vrot.slane %v3993_v5, 1  ;;  %v4037_v5 = vshrl.u32 %v9495_v56, 16 }
 0x124   : > { %7819 = vmatprep.mubr.msk.bf16.mxu0 %vm590_vm2, %v3948_v28  ;;  %v3988_v28 = vsel %vm389_vm1, %v3983_v42, %v3987_v41  ;;  %v4027_v33 = vrot.slane %v4025_v47, 1  ;;  %v4035_v41 = vrot.slane %v4033_v52, 1  ;;  %v9514_v42 = vld [vmem:[%s8801_s11 + $0xa8] sm:$0xff]  }
 0x125   : > { %v3996_v18 = vsel %vm389_vm1, %v3991_v49, %v3995_v21  ;;  %v3999_v43 = vor.u32 %v3997_v29, %v3995_v21  ;;  %v8563_v21 = vld [vmem:[%s8801_s11 + $0x2c] sm:$0xff]   ;;  %v4053_v34 = vshrl.u32 %v9514_v42, 16 }
 0x126   : > { %v4031_v49 = vor.u32 %v4029_v30, %v4027_v33  ;;  %v8571_v52 = vld [vmem:[%s8801_s11 + $0x4c] sm:$0xff]  }
 0x128   : > { %v4036_v29 = vsel %vm389_vm1, %v4031_v49, %v4035_v41 }
 0x129   : > { %7594 = vmatmul.mubr.msk.bf16.gmra.mrb[32].mxu1 %vm590_vm2, %v1210_v10  ;;  %v9477_v10 = vld [vmem:[%s8801_s11 + $0x88] sm:$0xff]  }
 0x12a   : > { %7597 = vmatprep.mubr.msk.bf16.mxu1 %vm590_vm2, %v1212_v38  ;;  %v8555_v38 = vld [vmem:[%s8801_s11 + $0xc] sm:$0xff]   ;;  %v4017_v13 = vshll.u32 %v9477_v10, 16  ;;  %v4021_v9 = vshrl.u32 %v9477_v10, 16 }
 0x12b   : > { %7820 = vmatmul.mubr.msk.bf16.gmra.mrb[8].mxu0 %vm590_vm2, %v3956_v16  ;;  %v4011_v16 = vrot.slane %v4009_v22, 1  ;;  %v4057_v22 = vshll.u32 %v9520_v63, 16 }
 0x12c   : > { %7823 = vmatprep.mubr.msk.bf16.mxu0 %vm590_vm2, %v3964_v45  ;;  %v4004_v45 = vsel %vm389_vm1, %v3999_v43, %v4003_v60  ;;  %v4019_v15 = vrot.slane %v4017_v13, 1  ;;  %v9532_v43 = vld [vmem:[%s8801_s11 + $0xb8] sm:$0xff]  }
 0x12d   : > { %v4012_v0 = vsel %vm389_vm1, %v4007_v48, %v4011_v16  ;;  %v4015_v19 = vor.u32 %v4013_v25, %v4011_v16  ;;  %v8567_v48 = vld [vmem:[%s8801_s11 + $0x3c] sm:$0xff]   ;;  %v4059_v13 = vrot.slane %v4057_v22, 1  ;;  %v4065_v25 = vshll.u32 %v9532_v43, 16  ;;  %v4453_v22 = vld [vmem:[%s8801_s11 + $0x18] sm:$0xe] }
 0x131   : > { %7598 = vmatmul.mubr.msk.bf16.gmra.mrb[36].mxu1 %vm590_vm2, %v1214_v57  ;;  %v8557_v57 = vld [vmem:[%s8801_s11 + $0x14] sm:$0xff]  }
 0x132   : > { %7601 = vmatprep.mubr.msk.bf16.mxu1 %vm590_vm2, %v1216_v62  ;;  %v4023_v62 = vor.u32 %v4021_v9, %v4019_v15  ;;  %v4061_v9 = vshrl.u32 %v9520_v63, 16 }
 0x133   : > { %7824 = vmatmul.mubr.msk.bf16.gmra.mrb[12].mxu0 %vm590_vm2, %v3972_v20  ;;  %v9501_v20 = vld [vmem:[%s8801_s11 + $0xa0] sm:$0xff]  }
 0x134   : > { %7827 = vmatprep.mubr.msk.bf16.mxu0 %vm590_vm2, %v3980_v1  ;;  %v4020_v1 = vsel %vm389_vm1, %v4015_v19, %v4019_v15  ;;  %v4028_v2 = vsel %vm389_vm1, %v4023_v62, %v4027_v33  ;;  %v4041_v35 = vshll.u32 %v9501_v20, 16  ;;  %v4069_v15 = vshrl.u32 %v9532_v43, 16  ;;  %v8569_v62 = vld [vmem:[%s8801_s11 + $0x44] sm:$0xff]  }
 0x135   : > { %v4067_v19 = vrot.slane %v4065_v25, 1  ;;  %v4063_v33 = vor.u32 %v4061_v9, %v4059_v13  ;;  %v8579_v9 = vld [vmem:[%s8801_s11 + $0x6c] sm:$0xff]  }
 0x139   : > { %7602 = vmatmul.mubr.msk.bf16.gmra.mrb[40].mxu1 %vm590_vm2, %v1218_v17  ;;  %v8561_v17 = vld [vmem:[%s8801_s11 + $0x24] sm:$0xff]  }
 0x13a   : > { %7605 = vmatprep.mubr.msk.bf16.mxu1 %vm590_vm2, %v1220_v27  ;;  %v4043_v27 = vrot.slane %v4041_v35, 1  ;;  %v4068_v35 = vsel %vm389_vm1, %v4063_v33, %v4067_v19  ;;  %v8582_v33 = vld [vmem:[%s8801_s11 + $0x7c] sm:$0xff]  }
 0x13b   : > { %7828 = vmatmul.mubr.msk.bf16.gmra.mrb[16].mxu0 %vm590_vm2, %v3988_v28  ;;  %v4049_v28 = vshll.u32 %v9514_v42, 16 }
 0x13c   : > { %7831 = vmatprep.mubr.msk.bf16.mxu0 %vm590_vm2, %v3996_v18  ;;  %v4045_v18 = vshrl.u32 %v9501_v20, 16 }
 0x13d   : > { %v4051_v60 = vrot.slane %v4049_v28, 1 }
 0x13f   : > { %v4055_v16 = vor.u32 %v4053_v34, %v4051_v60 }
 0x141   : > { %7606 = vmatmul.mubr.msk.bf16.gmra.mrb[44].mxu1 %vm590_vm2, %v1222_v24  ;;  %v8565_v24 = vld [vmem:[%s8801_s11 + $0x34] sm:$0xff]   ;;  %v4060_v47 = vsel %vm389_vm1, %v4055_v16, %v4059_v13  ;;  %v7109_v16 = vcombine.low %v4453_v22, %v9331_v58  ;;  %v8577_v13 = vld [vmem:[%s8801_s11 + $0x64] sm:$0xff]   ;;  %v4477_v22 = vrot.slane %v9438_v32, 1 }
 0x142   : > { %7611 = vmatprep.mubr.msk.bf16.mxu1 %vm590_vm2, %v8555_v38  ;;  %v4047_v38 = vor.u32 %v4045_v18, %v4043_v27  ;;  %v8575_v18 = vld [vmem:[%s8801_s11 + $0x5c] sm:$0xff]  }
 0x143   : > { %7832 = vmatmul.mubr.msk.bf16.gmra.mrb[20].mxu0 %vm590_vm2, %v4004_v45  ;;  %v9538_v45 = vld [vmem:[%s8801_s11 + $0xc0] sm:$0xff]  }
 0x144   : > { %7835 = vmatprep.mubr.msk.bf16.mxu0 %vm590_vm2, %v4012_v0  ;;  %v4052_v0 = vsel %vm389_vm1, %v4047_v38, %v4051_v60 }
 0x149   : > { %7612 = vmatmul.mubr.msk.bf16.vlgmr.msra.gmra.mrb[0].mxu1 %vm590_vm2, %v8557_v57  ;;  %v4073_v57 = vshll.u32 %v9538_v45, 16 }
 0x14a   : > { %7910 = vmatpush3.bf16.msra.mxu1 %v8785_v3  ;;  %7615 = vmatprep.mubr.msk.bf16.mxu1 %vm590_vm2, %v8559_v59  ;;  %v4039_v3 = vor.u32 %v4037_v5, %v4035_v41  ;;  %v9550_v59 = vld [vmem:[%s8801_s11 + $0xc8] sm:$0xff]   ;;  %v4077_v41 = vshrl.u32 %v9538_v45, 16 }
 0x14b   : > { %7836 = vmatmul.mubr.msk.bf16.gmra.mrb[24].mxu0 %vm590_vm2, %v4020_v1  ;;  %v4071_v1 = vor.u32 %v4069_v15, %v4067_v19  ;;  %v4075_v30 = vrot.slane %v4073_v57, 1  ;;  %v4081_v5 = vshll.u32 %v9550_v59, 16  ;;  %v4085_v49 = vshrl.u32 %v9550_v59, 16  ;;  %v8581_v19 = vld [vmem:[%s8801_s11 + $0x74] sm:$0xff]  }
 0x14c   : > { %7839 = vmatprep.mubr.msk.bf16.mxu0 %vm590_vm2, %v4028_v2  ;;  %v4044_v6 = vsel %vm389_vm1, %v4039_v3, %v4043_v27  ;;  %v9556_v2 = vld [vmem:[%s8801_s11 + $0xd0] sm:$0xff]   ;;  %v4459_v15 = vrot.slane %v9344_v11, 1  ;;  %v4463_v11 = vrot.slane %v9361_v37, 1  ;;  %v4467_v37 = vrot.slane %v9381_v8, 1 }
 0x14d   : > { %v4083_v3 = vrot.slane %v4081_v5, 1  ;;  %v8573_v27 = vld [vmem:[%s8801_s11 + $0x54] sm:$0xff]   ;;  %v4079_v28 = vor.u32 %v4077_v41, %v4075_v30  ;;  %v8584_v5 = vld [vmem:[%s8801_s11 + $0x8c] sm:$0xff]   ;;  %v4471_v8 = vrot.slane %v9403_v7, 1 }
 0x14e   : > { %v8588_v7 = vld [vmem:[%s8801_s11 + $0xac] sm:$0xff]  }
 0x14f   : > { %v4084_v60 = vsel %vm389_vm1, %v4079_v28, %v4083_v3  ;;  %v4475_v28 = vrot.slane %v9423_v4, 1  ;;  %v4479_v4 = vrot.slane %v9443_v54, 1  ;;  %v8591_v54 = vld [vmem:[%s8801_s11 + $0xc4] sm:$0xff]  }
 0x151   : > { %7616 = vmatmul.mubr.msk.bf16.gmra.mrb[4].mxu1 %vm590_vm2, %v8561_v17  ;;  %v4076_v17 = vsel %vm389_vm1, %v4071_v1, %v4075_v30  ;;  %v8583_v30 = vld [vmem:[%s8801_s11 + $0x84] sm:$0xff]  }
 0x152   : > { %7619 = vmatprep.mubr.msk.bf16.mxu1 %vm590_vm2, %v8563_v21  ;;  %v4089_v21 = vshll.u32 %v9556_v2, 16 }
 0x153   : > { %7840 = vmatmul.mubr.msk.bf16.gmra.mrb[28].mxu0 %vm590_vm2, %v4036_v29  ;;  %v9570_v29 = vld [vmem:[%s8801_s11 + $0xd8] ss:$0 sps:$4 sm:$0x11]  }
 0x154   : > { %7843 = vmatprep.mubr.msk.bf16.mxu0 %vm590_vm2, %v4044_v6  ;;  %v4087_v6 = vor.u32 %v4085_v49, %v4083_v3  ;;  %v4091_v34 = vrot.slane %v4089_v21, 1  ;;  %v4097_v38 = vshll.u32 %v9570_v29, 16  ;;  %v8586_v49 = vld [vmem:[%s8801_s11 + $0x9c] sm:$0xff]  }
 0x159   : > { %7620 = vmatmul.mubr.msk.bf16.gmra.mrb[8].mxu1 %vm590_vm2, %v8565_v24  ;;  %v4093_v24 = vshrl.u32 %v9556_v2, 16 }
 0x15a   : > { %7623 = vmatprep.mubr.msk.bf16.mxu1 %vm590_vm2, %v8567_v48  ;;  %v4092_v48 = vsel %vm389_vm1, %v4087_v6, %v4091_v34 }
 0x15b   : > { %7844 = vmatmul.mubr.msk.bf16.gmra.mrb[32].mxu0 %vm590_vm2, %v4052_v0  ;;  %v4095_v25 = vor.u32 %v4093_v24, %v4091_v34  ;;  %v4099_v0 = vrot.slane %v4097_v38, 1  ;;  %v8589_v34 = vld [vmem:[%s8801_s11 + $0xb4] sm:$0xff]  }
 0x15c   : > { %7847 = vmatprep.mubr.msk.bf16.mxu0 %vm590_vm2, %v4060_v47  ;;  %v4458_v47 = vrot.slane %v7109_v16, 1  ;;  %v8608_v38 = vld [vmem:[%s8801_s11 + $0x74] sm:$0xff]   ;;  %v4478_v16 = vsel %vm1173_vm3, %v4475_v28, %v4477_v22 }
 0x15d   : > { %v4100_v57 = vsel %vm389_vm1, %v4095_v25, %v4099_v0  ;;  %v4481_v0 = vrot.slane %v9458_v55, 1 }
 0x15e   : > { %v4460_v58 = vsel %vm1173_vm3, %v4458_v47, %v4459_v15 }
 0x161   : > { %7624 = vmatmul.mubr.msk.bf16.gmra.mrb[12].mxu1 %vm590_vm2, %v8569_v62  ;;  %v4461_v62 = vrot.slane %v9356_v31, 1  ;;  %v4465_v31 = vrot.slane %v9376_v51, 1  ;;  %v4469_v51 = vrot.slane %v9398_v12, 1  ;;  %v4473_v12 = vrot.slane %v9418_v36, 1  ;;  %v8590_v36 = vld [vmem:[%s8801_s11 + $0xbc] sm:$0xff]  }
 0x162   : > { %7627 = vmatprep.mubr.msk.bf16.mxu1 %vm590_vm2, %v8571_v52 }
 0x163   : > { %7848 = vmatmul.mubr.msk.bf16.gmra.mrb[36].mxu0 %vm590_vm2, %v4068_v35  ;;  %v4462_v52 = vsel %vm1173_vm3, %v4459_v15, %v4461_v62  ;;  %v4464_v1 = vsel %vm1173_vm3, %v4461_v62, %v4463_v11  ;;  %v4466_v35 = vsel %vm1173_vm3, %v4463_v11, %v4465_v31  ;;  %v4468_v41 = vsel %vm1173_vm3, %v4465_v31, %v4467_v37  ;;  %v8610_v62 = vld [vmem:[%s8801_s11 + $0x84] sm:$0xff]   ;;  %v8611_v31 = vld [vmem:[%s8801_s11 + $0x8c] sm:$0xff]  }
 0x164   : > { %7851 = vmatprep.mubr.msk.bf16.mxu0 %vm590_vm2, %v4076_v17  ;;  %v8585_v17 = vld [vmem:[%s8801_s11 + $0x94] sm:$0xff]   ;;  %v4470_v21 = vsel %vm1173_vm3, %v4467_v37, %v4469_v51  ;;  %v4472_v3 = vsel %vm1173_vm3, %v4469_v51, %v4471_v8  ;;  %v4476_v6 = vsel %vm1173_vm3, %v4473_v12, %v4475_v28  ;;  %v2373_v15 = vshrl.u32 %v8608_v38, 16 }
 0x165   : > { %v2397_v51 = vshrl.u32 %v8611_v31, 16  ;;  %v2409_v28 = vshll.u32 %v9163_v14, 16 }
 0x169   : > { %7628 = vmatmul.mubr.msk.bf16.gmra.mrb[16].mxu1 %vm590_vm2, %v8573_v27  ;;  %v8587_v27 = vld [vmem:[%s8801_s11 + $0xa4] sm:$0xff]  }
 0x16a   : > { %7631 = vmatprep.mubr.msk.bf16.mxu1 %vm590_vm2, %v8575_v18  ;;  %v4474_v18 = vsel %vm1173_vm3, %v4471_v8, %v4473_v12 }
 0x16b   : > { %7852 = vmatmul.mubr.msk.bf16.gmra.mrb[40].mxu0 %vm590_vm2, %v4084_v60  ;;  %v8607_v60 = vld [vmem:[%s8801_s11 + $0x6c] sm:$0xff]  }
 0x16c   : > { %7855 = vmatprep.mubr.msk.bf16.mxu0 %vm590_vm2, %v4092_v48  ;;  %v2365_v24 = vshrl.u32 %v8607_v60, 16  ;;  %v2369_v48 = vshll.u32 %v8608_v38, 16 }
 0x16e   : > { %v2367_v25 = vor.u32 %v2365_v24, %v8998_v26  ;;  %v2371_v32 = vrot.slane %v2369_v48, 1  ;;  %v4482_v26 = vsel %vm1173_vm3, %v4479_v4, %v4481_v0  ;;  %v2411_v24 = vrot.slane %v2409_v28, 1 }
 0x171   : > { %7632 = vmatmul.mubr.msk.bf16.gmra.mrb[20].mxu1 %vm590_vm2, %v8577_v13  ;;  %v4480_v13 = vsel %vm1173_vm3, %v4477_v22, %v4479_v4  ;;  %v2417_v4 = vshll.u32 %v9166_v44, 16  ;;  %v2425_v44 = vshll.u32 %v9176_v53, 16 }
 0x172   : > { %7635 = vmatprep.mubr.msk.bf16.mxu1 %vm590_vm2, %v8579_v9  ;;  %v8609_v9 = vld [vmem:[%s8801_s11 + $0x7c] sm:$0xff]  }
 0x173   : > { %7856 = vmatmul.mubr.msk.bf16.gmra.mrb[44].mxu0 %vm590_vm2, %v4100_v57  ;;  %v2377_v47 = vshll.u32 %v8609_v9, 16  ;;  %v4483_v57 = vrot.slane %v9463_v61, 1  ;;  %v4485_v61 = vrot.slane %v9477_v10, 1 }
 0x174   : > { %7861 = vmatprep.mubr.msk.bf16.mxu0 %vm590_vm2, %v4460_v58  ;;  %v2372_v58 = vsel %vm389_vm1, %v2367_v25, %v2371_v32  ;;  %v8613_v25 = vld [vmem:[%s8801_s11 + $0xa4] sm:$0xff]  }
 0x175   : > { %v2379_v11 = vrot.slane %v2377_v47, 1  ;;  %v4484_v55 = vsel %vm1173_vm3, %v4481_v0, %v4483_v57  ;;  %v2429_v0 = vshrl.u32 %v9176_v53, 16  ;;  %v4497_v53 = vrot.slane %v9532_v43, 1 }
 0x179   : > { %7636 = vmatmul.mubr.msk.bf16.gmra.mrb[24].mxu1 %vm590_vm2, %v8581_v19  ;;  %v2381_v19 = vshrl.u32 %v8609_v9, 16  ;;  %v2433_v9 = vshll.u32 %v9182_v50, 16  ;;  %v2441_v50 = vshll.u32 %v9195_v39, 16 }
 0x17a   : > { %7639 = vmatprep.mubr.msk.bf16.mxu1 %vm590_vm2, %v8582_v33  ;;  %v2385_v33 = vshll.u32 %v8610_v62, 16 }
 0x17b   : > { %7862 = vmatmul.mubr.msk.bf16.vlgmr.msra.gmra.mrb[0].mxu0 %vm590_vm2, %v4462_v52  ;;  %v2375_v52 = vor.u32 %v2373_v15, %v2371_v32  ;;  %v2421_v32 = vshrl.u32 %v8613_v25, 16  ;;  %v2443_v43 = vrot.slane %v2441_v50, 1 }
 0x17c   : > { %7865 = vmatprep.mubr.msk.bf16.mxu0 %vm590_vm2, %v4464_v1  ;;  %v2383_v1 = vor.u32 %v2381_v19, %v2379_v11 }
 0x17d   : > { %v2380_v37 = vsel %vm389_vm1, %v2375_v52, %v2379_v11  ;;  %v2445_v52 = vshrl.u32 %v9195_v39, 16  ;;  %v4501_v39 = vrot.slane %v9550_v59, 1 }
 0x181   : > { %7640 = vmatmul.mubr.msk.bf16.gmra.mrb[28].mxu1 %vm590_vm2, %v8583_v30  ;;  %v2387_v30 = vrot.slane %v2385_v33, 1  ;;  %v8614_v33 = vld [vmem:[%s8801_s11 + $0xb4] sm:$0xff]  }
 0x182   : > { %7643 = vmatprep.mubr.msk.bf16.mxu1 %vm590_vm2, %v8584_v5  ;;  %v2393_v5 = vshll.u32 %v8611_v31, 16 }
 0x183   : > { %7866 = vmatmul.mubr.msk.bf16.gmra.mrb[4].mxu0 %vm590_vm2, %v4466_v35  ;;  %v4487_v35 = vrot.slane %v9483_v23, 1  ;;  %v4489_v23 = vrot.slane %v9495_v56, 1 }
 0x184   : > { %7869 = vmatprep.mubr.msk.bf16.mxu0 %vm590_vm2, %v4468_v41  ;;  %v2389_v41 = vshrl.u32 %v8610_v62, 16  ;;  %v4499_v62 = vrot.slane %v9538_v45, 1  ;;  %v2447_v45 = vor.u32 %v2445_v52, %v2443_v43 }
 0x185   : > { %v4488_v10 = vsel %vm1173_vm3, %v4485_v61, %v4487_v35  ;;  %v4490_v60 = vsel %vm1173_vm3, %v4487_v35, %v4489_v23 }
 0x189   : > { %7644 = vmatmul.mubr.msk.bf16.gmra.mrb[32].mxu1 %vm590_vm2, %v8585_v17  ;;  %v2388_v17 = vsel %vm389_vm1, %v2383_v1, %v2387_v30 }
 0x18a   : > { %7647 = vmatprep.mubr.msk.bf16.mxu1 %vm590_vm2, %v8586_v49  ;;  %v8612_v49 = vld [vmem:[%s8801_s11 + $0x94] sm:$0xff]  }
 0x18b   : > { %7870 = vmatmul.mubr.msk.bf16.gmra.mrb[8].mxu0 %vm590_vm2, %v4470_v21  ;;  %v2401_v8 = vshll.u32 %v8612_v49, 16  ;;  %v4486_v21 = vsel %vm1173_vm3, %v4483_v57, %v4485_v61 }
 0x18c   : > { %7873 = vmatprep.mubr.msk.bf16.mxu0 %vm590_vm2, %v4472_v3  ;;  %v2395_v3 = vrot.slane %v2393_v5, 1  ;;  %v4503_v5 = vrot.slane %v9556_v2, 1 }
 0x18e   : > { %v2399_v12 = vor.u32 %v2397_v51, %v2395_v3  ;;  %v4502_v51 = vsel %vm1173_vm3, %v4499_v62, %v4501_v39  ;;  %v4504_v59 = vsel %vm1173_vm3, %v4501_v39, %v4503_v5 }
 0x191   : > { %7648 = vmatmul.mubr.msk.bf16.gmra.mrb[36].mxu1 %vm590_vm2, %v8587_v27  ;;  %v2391_v27 = vor.u32 %v2389_v41, %v2387_v30  ;;  %v4500_v30 = vsel %vm1173_vm3, %v4497_v53, %v4499_v62  ;;  %v2457_v41 = vshll.u32 %v9211_v46, 16  ;;  %v4505_v46 = vrot.slane %v9570_v29, 1 }
 0x192   : > { %7651 = vmatprep.mubr.msk.bf16.mxu1 %vm590_vm2, %v8588_v7  ;;  %v2403_v7 = vrot.slane %v2401_v8, 1  ;;  %v12233_v29 = vmov 0 }
 0x193   : > { %7874 = vmatmul.mubr.msk.bf16.gmra.mrb[12].mxu0 %vm590_vm2, %v4474_v18  ;;  %v2396_v18 = vsel %vm389_vm1, %v2391_v27, %v2395_v3  ;;  %v2459_v8 = vrot.slane %v2457_v41, 1  ;;  %v12234_v29 = vsel %vm9737_vm6, 4294967295, %v12233_v29 }
 0x194   : > { %7877 = vmatprep.mubr.msk.bf16.mxu0 %vm590_vm2, %v4476_v6  ;;  %v4491_v6 = vrot.slane %v9501_v20, 1  ;;  %v2404_v22 = vsel %vm389_vm1, %v2399_v12, %v2403_v7  ;;  %v2419_v20 = vrot.slane %v2417_v4, 1  ;;  %12235 = vst [vmem:[#allocation6_spill] sm:$0xff] %v12234_v29 }
 0x196   : > { %v4492_v56 = vsel %vm1173_vm3, %v4489_v23, %v4491_v6  ;;  %v2423_v57 = vor.u32 %v2421_v32, %v2419_v20  ;;  %v5997_v23 = vld [vmem:[%s9741_s9 + $0xc] sm:$0x1] }
 0x197   : > { %v5998_v28 = vsel %vm9737_vm6, 0, %v5997_v23 }
 0x198   : > { %5999 = vst [vmem:[%s9741_s9 + $0xc] sm:$0x1] %v5998_v28 }
 0x199   : > { %7652 = vmatmul.mubr.msk.bf16.gmra.mrb[40].mxu1 %vm590_vm2, %v8589_v34  ;;  %v2405_v34 = vshrl.u32 %v8612_v49, 16 }
 0x19a   : > { %7655 = vmatprep.mubr.msk.bf16.mxu1 %vm590_vm2, %v8590_v36  ;;  %v2413_v36 = vshrl.u32 %v9163_v14, 16  ;;  %v4493_v14 = vrot.slane %v9514_v42, 1  ;;  %v2427_v42 = vrot.slane %v2425_v44, 1 }
 0x19b   : > { %7878 = vmatmul.mubr.msk.bf16.gmra.mrb[16].mxu0 %vm590_vm2, %v4478_v16  ;;  %v2407_v38 = vor.u32 %v2405_v34, %v2403_v7 }
 0x19c   : > { %7881 = vmatprep.mubr.msk.bf16.mxu0 %vm590_vm2, %v4480_v13  ;;  %v2415_v48 = vor.u32 %v2413_v36, %v2411_v24  ;;  %v4495_v13 = vrot.slane %v9520_v63, 1  ;;  %v4494_v47 = vsel %vm1173_vm3, %v4491_v6, %v4493_v14  ;;  %v2431_v63 = vor.u32 %v2429_v0, %v2427_v42 }
 0x19d   : > { %v2412_v16 = vsel %vm389_vm1, %v2407_v38, %v2411_v24  ;;  %v2428_v19 = vsel %vm389_vm1, %v2423_v57, %v2427_v42 }
 0x19e   : > { %v4496_v15 = vsel %vm1173_vm3, %v4493_v14, %v4495_v13  ;;  %v4498_v1 = vsel %vm1173_vm3, %v4495_v13, %v4497_v53 }
 0x1a1   : > { %7656 = vmatmul.mubr.msk.bf16.gmra.mrb[44].mxu1 %vm590_vm2, %v8591_v54  ;;  %v2420_v54 = vsel %vm389_vm1, %v2415_v48, %v2419_v20 }
 0x1a2   : > { %7685 = vmatprep.mubr.msk.bf16.mxu1 %vm590_vm2, %v2372_v58  ;;  %v2435_v58 = vrot.slane %v2433_v9, 1 }
 0x1a3   : > { %7882 = vmatmul.mubr.msk.bf16.gmra.mrb[20].mxu0 %vm590_vm2, %v4482_v26  ;;  %v2437_v26 = vshrl.u32 %v8614_v33, 16 }
 0x1a4   : > { %7885 = vmatprep.mubr.msk.bf16.mxu0 %vm590_vm2, %v4484_v55  ;;  %v2436_v11 = vsel %vm389_vm1, %v2431_v63, %v2435_v58  ;;  %v2449_v55 = vshll.u32 %v9201_v40, 16 }
 0x1a5   : > { %v2439_v61 = vor.u32 %v2437_v26, %v2435_v58 }
 0x1a6   : > { %v2451_v31 = vrot.slane %v2449_v55, 1 }
 0x1a7   : > { %v2444_v40 = vsel %vm389_vm1, %v2439_v61, %v2443_v43 }
 0x1a9   : > { %7686 = vmatmul.mubr.msk.bf16.vlgmr.msra.gmra.mrb[24].mxu1 %vm590_vm2, %v2380_v37  ;;  %v8615_v37 = vld [vmem:[%s8801_s11 + $0xc4] sm:$0xff]  }
 0x1aa   : > { %7689 = vmatprep.mubr.msk.bf16.mxu1 %vm590_vm2, %v2388_v17  ;;  %v2453_v35 = vshrl.u32 %v8615_v37, 16  ;;  %v2452_v17 = vsel %vm389_vm1, %v2447_v45, %v2451_v31 }
 0x1ab   : > { %7886 = vmatmul.mubr.msk.bf16.gmra.mrb[24].mxu0 %vm590_vm2, %v4486_v21  ;;  %v4958_v21 = vlaneseq }
 0x1ac   : > { %7889 = vmatprep.mubr.msk.bf16.mxu0 %vm590_vm2, %v4488_v10  ;;  %v2455_v49 = vor.u32 %v2453_v35, %v2451_v31  ;;  %v4506_v10 = vsel %vm1173_vm3, %v4503_v5, %v4505_v46 }
 0x1ad   : > { %v9724_v3 = vshrl.u32 %v4958_v21, 7 }
 0x1ae   : > { %v2460_v2 = vsel %vm389_vm1, %v2455_v49, %v2459_v8 }
 0x1af   : > { %12232 = vst [vmem:[#allocation5_spill] sm:$0xff] %v9724_v3  ;;  %v4961_v27 = vadd.s32 16, %v9724_v3  ;;  %v9749_v6 = vmul.u32.u64.low 2863311531, %v9724_v3  ;;  %v9750_v34 = vmul.u32.u64.high 2863311531, %v9724_v3, %v9749_v6  ;;  %v4965_v14 = vadd.s32 48, %v9724_v3 }
 0x1b0   : > { %v4963_v44 = vadd.s32 32, %v9724_v3  ;;  %v4966_v25 = vadd.s32 56, %v9724_v3  ;;  %v9776_v0 = vadd.s32 40, %v9724_v3  ;;  %v9798_v26 = vadd.s32 80, %v9724_v3 }
 0x1b1   : > { %7690 = vmatmul.mubr.msk.bf16.gmra.mrb[28].mxu1 %vm590_vm2, %v2396_v18  ;;  %v9733_v12 = vmul.u32.u64.low 2863311531, %v4961_v27  ;;  %v9734_v7 = vmul.u32.u64.high 2863311531, %v4961_v27, %v9733_v12  ;;  %v4962_v18 = vadd.s32 24, %v9724_v3  ;;  %v9817_v45 = vadd.s32 64, %v9724_v3 }
 0x1b2   : > { %7693 = vmatprep.mubr.msk.bf16.mxu1 %vm590_vm2, %v2404_v22  ;;  %v4960_v22 = vadd.s32 8, %v9724_v3  ;;  %v9784_v63 = vmul.u32.u64.low 2863311531, %v4966_v25  ;;  %v9785_v58 = vmul.u32.u64.high 2863311531, %v4966_v25, %v9784_v63  ;;  %v9825_v5 = vadd.s32 88, %v9724_v3 }
 0x1b3   : > { %7890 = vmatmul.mubr.msk.bf16.gmra.mrb[28].mxu0 %vm590_vm2, %v4490_v60  ;;  %v9753_v36 = vmul.u32.u64.low 2863311531, %v4962_v18  ;;  %v9754_v4 = vmul.u32.u64.high 2863311531, %v4962_v18, %v9753_v36  ;;  %v6003_v60 = vld [vmem:[%s9741_s9 + $0xcc] sm:$0xf]  ;;  %v5035_v24 = vshrl.u32 %v9734_v7, 4  ;;  %v9839_v49 = vadd.s32 112, %v9724_v3 }
 0x1b4   : > { %7893 = vmatprep.mubr.msk.bf16.mxu0 %vm590_vm2, %v4492_v56  ;;  %v12236_v56 = vmov 0  ;;  %v6004_v38 = vsel %vm9758_vm9, 0, %v6003_v60  ;;  %v9764_v48 = vmul.u32.u64.low 2863311531, %v4960_v22  ;;  %v9765_v20 = vmul.u32.u64.high 2863311531, %v4960_v22, %v9764_v48 }
 0x1b5   : > { %v12237_v56 = vsel %vm9758_vm9, 4294967295, %v12236_v56  ;;  %6005 = vst [vmem:[%s9741_s9 + $0xcc] sm:$0xf] %v6004_v38  ;;  %v5036_v13 = vmul.u32 24, %v5035_v24  ;;  %v5046_v9 = vshrl.u32 %v9754_v4, 4  ;;  %v5090_v31 = vshrl.u32 %v9785_v58, 4 }
 0x1b6   : > { %12238 = vst [vmem:[#allocation7_spill] sm:$0xff] %v12237_v56  ;;  %v5024_v53 = vshrl.u32 %v9765_v20, 4  ;;  %v9846_v21 = vmul.u32.u64.low 2863311531, %v9817_v45  ;;  %v9847_v46 = vmul.u32.u64.high 2863311531, %v9817_v45, %v9846_v21  ;;  %v9862_v7 = vadd.s32 96, %v9724_v3 }
 0x1b7   : > { %v9782_v57 = vsub.s32 %v4961_v27, %v5036_v13  ;;  %v5047_v62 = vmul.u32 24, %v5046_v9  ;;  %v9858_v27 = vmul.u32.u64.low 2863311531, %v9825_v5  ;;  %v9859_v12 = vmul.u32.u64.high 2863311531, %v9825_v5, %v9858_v27 }
 0x1b8   : > { %v9877_v4 = vadd.s32 120, %v9724_v3  ;;  %v9886_v24 = vadd.s32 104, %v9724_v3  ;;  %v5101_v9 = vshrl.u32 %v9847_v46, 4  ;;  %v9997_v27 = vadd.s32 128, %v9724_v3 }
 0x1b9   : > { %7694 = vmatmul.mubr.msk.bf16.gmra.mrb[32].mxu1 %vm590_vm2, %v2412_v16  ;;  %v5013_v16 = vshrl.u32 %v9750_v34, 4  ;;  %vm5537_vm10 = vcmp.ne.s32.totalorder %v9782_v57, 0  ;;  %vm5585_vm11 = vcmp.lt.s32.totalorder %v9782_v57, 0  ;;  %v9802_v55 = vadd.s32 24, %v9782_v57 }
 0x1ba   : > { %7697 = vmatprep.mubr.msk.bf16.mxu1 %vm590_vm2, %v2420_v54  ;;  %v9772_v32 = vmul.u32.u64.low 2863311531, %v4965_v14  ;;  %v9773_v54 = vmul.u32.u64.high 2863311531, %v4965_v14, %v9772_v32  ;;  %vm9807_vm12 = vmand %vm5585_vm11, %vm5537_vm10  ;;  %v5134_v58 = vshrl.u32 %v9859_v12, 4 }
 0x1bb   : > { %7894 = vmatmul.mubr.msk.bf16.gmra.mrb[32].mxu0 %vm590_vm2, %v4494_v47  ;;  %v9779_v47 = vmul.u32.u64.low 2863311531, %v4963_v44  ;;  %v9780_v42 = vmul.u32.u64.high 2863311531, %v4963_v44, %v9779_v47 }
 0x1bc   : > { %7897 = vmatprep.mubr.msk.bf16.mxu0 %vm590_vm2, %v4496_v15  ;;  %v5014_v15 = vmul.u32 24, %v5013_v16  ;;  %v5079_v52 = vshrl.u32 %v9773_v54, 4  ;;  %v9916_v32 = vmul.u32.u64.low 2863311531, %v9877_v4  ;;  %v9917_v54 = vmul.u32.u64.high 2863311531, %v9877_v4, %v9916_v32 }
 0x1bd   : > { %v5057_v43 = vshrl.u32 %v9780_v42, 4  ;;  %v9930_v47 = vmul.u32.u64.low 2863311531, %v9886_v24  ;;  %v9931_v42 = vmul.u32.u64.high 2863311531, %v9886_v24, %v9930_v47  ;;  %v5135_v46 = vmul.u32 24, %v5134_v58 }
 0x1be   : > { %v9793_v33 = vsub.s32 %v9724_v3, %v5014_v15  ;;  %v5080_v35 = vmul.u32 24, %v5079_v52 }
 0x1c0   : > { %vm5535_vm13 = vcmp.ne.s32.totalorder %v9793_v33, 0  ;;  %vm5583_vm14 = vcmp.lt.s32.totalorder %v9793_v33, 0  ;;  %v9814_v61 = vadd.s32 24, %v9793_v33  ;;  %v9864_v23 = vsub.s32 %v4965_v14, %v5080_v35 }
 0x1c1   : > { %7698 = vmatmul.mubr.msk.bf16.gmra.mrb[36].mxu1 %vm590_vm2, %v2428_v19  ;;  %v9789_v50 = vmul.u32.u64.low 2863311531, %v9776_v0  ;;  %v9790_v19 = vmul.u32.u64.high 2863311531, %v9776_v0, %v9789_v50  ;;  %vm9853_vm1 = vmand %vm5583_vm14, %vm5535_vm13  ;;  %v9892_v20 = vmul.u32.u64.low 2863311531, %v9862_v7  ;;  %v9893_v14 = vmul.u32.u64.high 2863311531, %v9862_v7, %v9892_v20 }
 0x1c2   : > { %7701 = vmatprep.mubr.msk.bf16.mxu1 %vm590_vm2, %v2436_v11  ;;  %v5025_v11 = vmul.u32 24, %v5024_v53  ;;  %vm5541_vm4 = vcmp.ne.s32.totalorder %v9864_v23, 0  ;;  %vm5589_vm7 = vcmp.lt.s32.totalorder %v9864_v23, 0  ;;  %v9944_v50 = vadd.s32 144, %v9724_v3 }
 0x1c3   : > { %7898 = vmatmul.mubr.msk.bf16.gmra.mrb[36].mxu0 %vm590_vm2, %v4498_v1  ;;  %v9804_v1 = vsub.s32 %v4962_v18, %v5047_v62  ;;  %v5068_v41 = vshrl.u32 %v9790_v19, 4  ;;  %vm9933_vm14 = vmand %vm5589_vm7, %vm5541_vm4 }
 0x1c4   : > { %7901 = vmatprep.mubr.msk.bf16.mxu0 %vm590_vm2, %v4500_v30  ;;  %v9827_v37 = vsub.s32 %v4960_v22, %v5025_v11  ;;  %v9873_v22 = vmul.u32.u64.low 2863311531, %v9839_v49  ;;  %v9874_v36 = vmul.u32.u64.high 2863311531, %v9839_v49, %v9873_v22  ;;  %v12251_v11 = vmov 0 }
 0x1c5   : > { %vm5538_vm15 = vcmp.ne.s32.totalorder %v9804_v1, 0  ;;  %vm5586_vm0 = vcmp.lt.s32.totalorder %v9804_v1, 0  ;;  %v9843_v8 = vadd.s32 24, %v9804_v1  ;;  %v5069_v28 = vmul.u32 24, %v5068_v41 }
 0x1c6   : > { %vm5584_vm3 = vcmp.lt.s32.totalorder %v9827_v37, 0  ;;  %vm9907_vm8 = vmand %vm5586_vm0, %vm5538_vm15  ;;  %v5102_v41 = vmul.u32 24, %v5101_v9  ;;  %v5156_v9 = vshrl.u32 %v9931_v42, 4  ;;  %v12468_v30 = vsel %vm9853_vm1, %v9814_v61, %v9793_v33 }
 0x1c7   : > { %v9901_v16 = vsub.s32 %v9776_v0, %v5069_v28  ;;  %v12481_v0 = vmov 0 }
 0x1c8   : > { %v10023_v32 = vsub.s32 %v9817_v45, %v5102_v41 }
 0x1c9   : > { %7702 = vmatmul.mubr.msk.bf16.gmra.mrb[40].mxu1 %vm590_vm2, %v2444_v40  ;;  %v9821_v39 = vmul.u32.u64.low 2863311531, %v9798_v26  ;;  %v9822_v40 = vmul.u32.u64.high 2863311531, %v9798_v26, %v9821_v39  ;;  %12244 = vst [vmem:[#allocation9_spill] sm:$0xff] %v9901_v16  ;;  %v9982_v35 = vadd.s32 24, %v9901_v16 }
 0x1ca   : > { %7705 = vmatprep.mubr.msk.bf16.mxu1 %vm590_vm2, %v2452_v17  ;;  %v9831_v17 = vadd.s32 72, %v9724_v3  ;;  %v12253_v39 = vmov 0  ;;  %12261 = vst [vmem:[#allocation14_spill] sm:$0xff] %v10023_v32 }
 0x1cb   : > { %7902 = vmatmul.mubr.msk.bf16.gmra.mrb[40].mxu0 %vm590_vm2, %v4502_v51  ;;  %v5123_v48 = vshrl.u32 %v9822_v40, 4  ;;  %12256 = vst [vmem:[#allocation11_spill] sm:$0xff] %v9982_v35  ;;  %v10149_v51 = vadd.s32 208, %v9724_v3 }
 0x1cc   : > { %7905 = vmatprep.mubr.msk.bf16.mxu0 %vm590_vm2, %v4504_v59  ;;  %v5058_v59 = vmul.u32 24, %v5057_v43  ;;  %v9867_v18 = vmul.u32.u64.low 2863311531, %v9831_v17  ;;  %v9868_v6 = vmul.u32.u64.high 2863311531, %v9831_v17, %v9867_v18  ;;  %v5167_v43 = vshrl.u32 %v9874_v36, 4 }
 0x1cd   : > { %v5124_v63 = vmul.u32 24, %v5123_v48  ;;  %v10000_v28 = vmul.u32.u64.low 2863311531, %v9944_v50  ;;  %v10001_v18 = vmul.u32.u64.high 2863311531, %v9944_v50, %v10000_v28  ;;  %v5178_v36 = vshrl.u32 %v9917_v54, 4 }
 0x1ce   : > { %v9870_v34 = vsub.s32 %v4963_v44, %v5058_v59  ;;  %v9896_v44 = vadd.s32 24, %v9827_v37  ;;  %v5112_v53 = vshrl.u32 %v9868_v6, 4  ;;  %v12257_v59 = vmov 0 }
 0x1cf   : > { %v9993_v21 = vsub.s32 %v9798_v26, %v5124_v63  ;;  %v10004_v6 = vadd.s32 152, %v9724_v3  ;;  %v5168_v22 = vmul.u32 24, %v5167_v43  ;;  %v10012_v48 = vadd.s32 136, %v9724_v3 }
 0x1d0   : > { %vm5539_vm10 = vcmp.ne.s32.totalorder %v9870_v34, 0  ;;  %vm5587_vm13 = vcmp.lt.s32.totalorder %v9870_v34, 0  ;;  %v9963_v52 = vadd.s32 24, %v9870_v34  ;;  %v5113_v12 = vmul.u32 24, %v5112_v53 }
 0x1d1   : > { %7706 = vmatmul.mubr.msk.bf16.gmra.mrb[44].mxu1 %vm590_vm2, %v2460_v2  ;;  %vm9958_vm4 = vmand %vm5587_vm13, %vm5539_vm10  ;;  %12260 = vst [vmem:[#allocation13_spill] sm:$0xff] %v9993_v21  ;;  %v10027_v54 = vsub.s32 %v9825_v5, %v5135_v46  ;;  %v10030_v63 = vmul.u32.u64.low 2863311531, %v9997_v27  ;;  %v10031_v58 = vmul.u32.u64.high 2863311531, %v9997_v27, %v10030_v63  ;;  %vm5545_vm13 = vcmp.ne.s32.totalorder %v9993_v21, 0 }
 0x1d2   : > { %v12252_v11 = vsel %vm9958_vm4, 4294967295, %v12251_v11  ;;  %v10035_v53 = vsub.s32 %v9831_v17, %v5113_v12  ;;  %v10038_v43 = vmul.u32.u64.low 2863311531, %v10004_v6  ;;  %v10039_v28 = vmul.u32.u64.high 2863311531, %v10004_v6, %v10038_v43 }
 0x1d3   : > { %7906 = vmatmul.mubr.msk.bf16.gmra.mrb[44].mxu0 %vm590_vm2, %v4506_v10  ;;  %v5091_v10 = vmul.u32 24, %v5090_v31  ;;  %vm5536_vm2 = vcmp.ne.s32.totalorder %v9827_v37, 0  ;;  %12262 = vst [vmem:[#allocation15_spill] sm:$0xff] %v10027_v54  ;;  %v10042_v45 = vsub.s32 %v9839_v49, %v5168_v22  ;;  %v5179_v42 = vmul.u32 24, %v5178_v36 }
 0x1d4   : > { %vm9923_vm11 = vmand %vm5584_vm3, %vm5536_vm2  ;;  %vm5540_vm2 = vcmp.ne.s32.totalorder %v9901_v16, 0  ;;  %vm5588_vm3 = vcmp.lt.s32.totalorder %v9901_v16, 0  ;;  %12263 = vst [vmem:[#allocation16_spill] sm:$0xff] %v10035_v53  ;;  %v10045_v5 = vmul.u32.u64.low 2863311531, %v10012_v48  ;;  %v10046_v41 = vmul.u32.u64.high 2863311531, %v10012_v48, %v10045_v5 }
 0x1d5   : > { %v9888_v38 = vsub.s32 %v4966_v25, %v5091_v10  ;;  %v9912_v25 = vadd.s32 24, %v9864_v23  ;;  %vm9988_vm10 = vmand %vm5588_vm3, %vm5540_vm2  ;;  %v5145_v10 = vshrl.u32 %v9893_v14, 4  ;;  %12264 = vst [vmem:[#allocation17_spill] sm:$0xff] %v10042_v45  ;;  %v10050_v46 = vadd.s32 24, %v9993_v21 }
 0x1d6   : > { %v12258_v59 = vsel %vm9988_vm10, 4294967295, %v12257_v59  ;;  %v5157_v17 = vmul.u32 24, %v5156_v9  ;;  %v10063_v12 = vadd.s32 24, %v10027_v54  ;;  %v5211_v22 = vshrl.u32 %v10001_v18, 4 }
 0x1d7   : > { %12243 = vst [vmem:[#allocation8_spill] sm:$0xff] %v9888_v38  ;;  %vm5542_vm15 = vcmp.ne.s32.totalorder %v9888_v38, 0  ;;  %vm5590_vm0 = vcmp.lt.s32.totalorder %v9888_v38, 0  ;;  %v9979_v40 = vadd.s32 24, %v9888_v38  ;;  %12259 = vst [vmem:[#allocation12_spill] sm:$0xff] %v12258_v59  ;;  %v5146_v47 = vmul.u32 24, %v5145_v10 }
 0x1d8   : > { %vm9974_vm7 = vmand %vm5590_vm0, %vm5542_vm15  ;;  %12265 = vst [vmem:[#allocation18_spill] sm:$0xff] %v10050_v46  ;;  %v10055_v10 = vadd.s32 24, %v10023_v32  ;;  %v10069_v36 = vadd.s32 24, %v10035_v53  ;;  %v10073_v9 = vsub.s32 %v9877_v4, %v5179_v42  ;;  %v10083_v18 = vadd.s32 176, %v9724_v3 }
 0x1d9   : > { %v12254_v39 = vsel %vm9974_vm7, 4294967295, %v12253_v39  ;;  %12255 = vst [vmem:[#allocation10_spill] sm:$0xff] %v9979_v40  ;;  %v10059_v49 = vsub.s32 %v9862_v7, %v5146_v47  ;;  %12268 = vst [vmem:[#allocation21_spill] sm:$0xff] %v10063_v12  ;;  %v10077_v7 = vadd.s32 24, %v10042_v45  ;;  %v10080_v47 = vsub.s32 %v9886_v24, %v5157_v17 }
 0x1da   : > { %12266 = vst [vmem:[#allocation19_spill] sm:$0xff] %v10055_v10  ;;  %12269 = vst [vmem:[#allocation22_spill] sm:$0xff] %v10069_v36  ;;  %v5189_v63 = vshrl.u32 %v10031_v58, 4  ;;  %v10089_v4 = vadd.s32 160, %v9724_v3  ;;  %vm12273_vm3 = vcmp.lt.s32.totalorder %v9993_v21, 0  ;;  %v12274_v43 = vmov 0 }
 0x1db   : > { %12267 = vst [vmem:[#allocation20_spill] sm:$0xff] %v10059_v49  ;;  %12270 = vst [vmem:[#allocation23_spill] sm:$0xff] %v10073_v9  ;;  %v10100_v24 = vadd.s32 24, %v10059_v49  ;;  %v5212_v42 = vmul.u32 24, %v5211_v22  ;;  %v5222_v5 = vshrl.u32 %v10039_v28, 4  ;;  %v10104_v17 = vadd.s32 184, %v9724_v3 }
 0x1dc   : > { %12271 = vst [vmem:[#allocation24_spill] sm:$0xff] %v10077_v7  ;;  %12272 = vst [vmem:[#allocation25_spill] sm:$0xff] %v10080_v47  ;;  %vm12277_vm15 = vcmp.ne.s32.totalorder %v10023_v32, 0  ;;  %vm12278_vm0 = vcmp.lt.s32.totalorder %v10023_v32, 0  ;;  %v12279_v58 = vmov 0  ;;  %v5200_v14 = vshrl.u32 %v10046_v41, 4 }
 0x1dd   : > { %vm10095_vm2 = vmand %vm12273_vm3, %vm5545_vm13  ;;  %12276 = vst [vmem:[#allocation26_spill] sm:$0xff] %v10100_v24  ;;  %v10118_v22 = vadd.s32 168, %v9724_v3  ;;  %vm12282_vm6 = vcmp.ne.s32.totalorder %v10027_v54, 0  ;;  %vm12283_vm9 = vcmp.lt.s32.totalorder %v10027_v54, 0  ;;  %v12284_v28 = vmov 0 }
 0x1de   : > { %v12275_v43 = vsel %vm10095_vm2, 4294967295, %v12274_v43  ;;  %vm10110_vm5 = vmand %vm12278_vm0, %vm12277_vm15  ;;  %v10129_v20 = vadd.s32 24, %v10073_v9  ;;  %v10133_v26 = vmul.u32.u64.low 2863311531, %v10083_v18  ;;  %v10134_v31 = vmul.u32.u64.high 2863311531, %v10083_v18, %v10133_v26 }
 0x1df   : > { %v12280_v58 = vsel %vm10110_vm5, 4294967295, %v12279_v58  ;;  %vm10124_vm10 = vmand %vm12283_vm9, %vm12282_vm6  ;;  %vm12288_vm0 = vcmp.ne.s32.totalorder %v10035_v53, 0  ;;  %vm12289_vm3 = vcmp.lt.s32.totalorder %v10035_v53, 0  ;;  %v12290_v41 = vmov 0 }
 0x1e0   : > { %12281 = vst [vmem:[#allocation27_spill] sm:$0xff] %v12280_v58  ;;  %v12285_v28 = vsel %vm10124_vm10, 4294967295, %v12284_v28  ;;  %12287 = vst [vmem:[#allocation29_spill] sm:$0xff] %v10129_v20  ;;  %v5190_v62 = vmul.u32 24, %v5189_v63  ;;  %v10145_v19 = vmul.u32.u64.low 2863311531, %v10089_v4  ;;  %v10146_v60 = vmul.u32.u64.high 2863311531, %v10089_v4, %v10145_v19 }
 0x1e1   : > { %12286 = vst [vmem:[#allocation28_spill] sm:$0xff] %v12285_v28  ;;  %vm10140_vm13 = vmand %vm12289_vm3, %vm12288_vm0  ;;  %vm12293_vm6 = vcmp.ne.s32.totalorder %v10042_v45, 0  ;;  %vm12294_vm9 = vcmp.lt.s32.totalorder %v10042_v45, 0  ;;  %v12295_v26 = vmov 0  ;;  %v5223_v29 = vmul.u32 24, %v5222_v5 }
 0x1e2   : > { %v12291_v41 = vsel %vm10140_vm13, 4294967295, %v12290_v41  ;;  %vm10155_vm15 = vmand %vm12294_vm9, %vm12293_vm6  ;;  %v10160_v56 = vmul.u32.u64.low 2863311531, %v10104_v17  ;;  %v10161_v16 = vmul.u32.u64.high 2863311531, %v10104_v17, %v10160_v56  ;;  %v10164_v63 = vadd.s32 192, %v9724_v3 }
 0x1e3   : > { %12292 = vst [vmem:[#allocation30_spill] sm:$0xff] %v12291_v41  ;;  %v12296_v26 = vsel %vm10155_vm15, 4294967295, %v12295_v26  ;;  %vm12298_vm3 = vcmp.ne.s32.totalorder %v10059_v49, 0  ;;  %vm12299_vm0 = vcmp.lt.s32.totalorder %v10059_v49, 0  ;;  %v12300_v19 = vmov 0 }
 0x1e4   : > { %12297 = vst [vmem:[#allocation31_spill] sm:$0xff] %v12296_v26  ;;  %vm10170_vm7 = vmand %vm12299_vm0, %vm12298_vm3  ;;  %vm5596_vm6 = vcmp.lt.s32.totalorder %v10080_v47, 0  ;;  %v5201_v35 = vmul.u32 24, %v5200_v14  ;;  %v10176_v5 = vmul.u32.u64.low 2863311531, %v10118_v22  ;;  %v10177_v59 = vmul.u32.u64.high 2863311531, %v10118_v22, %v10176_v5 }
 0x1e5   : > { %v12301_v19 = vsel %vm10170_vm7, 4294967295, %v12300_v19  ;;  %vm12303_vm9 = vcmp.ne.s32.totalorder %v10073_v9, 0  ;;  %vm12304_vm3 = vcmp.lt.s32.totalorder %v10073_v9, 0  ;;  %v12305_v14 = vmov 0 }
 0x1e6   : > { %12302 = vst [vmem:[#allocation32_spill] sm:$0xff] %v12301_v19  ;;  %vm10195_vm0 = vmand %vm12304_vm3, %vm12303_vm9  ;;  %v10200_v5 = vsub.s32 %v9944_v50, %v5212_v42  ;;  %v10203_v56 = vadd.s32 24, %v10080_v47  ;;  %v10206_v38 = vsub.s32 %v9997_v27, %v5190_v62  ;;  %vm12311_vm9 = vcmp.ne.s32.totalorder %v10080_v47, 0 }
 0x1e7   : > { %v12306_v14 = vsel %vm10195_vm0, 4294967295, %v12305_v14  ;;  %v10209_v28 = vmul.u32.u64.low 2863311531, %v10149_v51  ;;  %v10210_v40 = vmul.u32.u64.high 2863311531, %v10149_v51, %v10209_v28  ;;  %vm10218_vm3 = vmand %vm5596_vm6, %vm12311_vm9  ;;  %v12312_v50 = vmov 0 }
 0x1e8   : > { %12307 = vst [vmem:[#allocation33_spill] sm:$0xff] %v12306_v14  ;;  %12308 = vst [vmem:[#allocation34_spill] sm:$0xff] %v10200_v5  ;;  %v12313_v50 = vsel %vm10218_vm3, 4294967295, %v12312_v50  ;;  %v10223_v42 = vsub.s32 %v10004_v6, %v5223_v29  ;;  %v10226_v62 = vmul.u32.u64.low 2863311531, %v10164_v63  ;;  %v10227_v27 = vmul.u32.u64.high 2863311531, %v10164_v63, %v10226_v62 }
 0x1e9   : > { %12309 = vst [vmem:[#allocation35_spill] sm:$0xff] %v10203_v56  ;;  %12310 = vst [vmem:[#allocation36_spill] sm:$0xff] %v10206_v38  ;;  %v10242_v6 = vsub.s32 %v10012_v48, %v5201_v35  ;;  %v5255_v62 = vshrl.u32 %v10134_v31, 4  ;;  %v10248_v28 = vadd.s32 216, %v9724_v3  ;;  %v10255_v14 = vadd.s32 24, %v10200_v5 }
 0x1ea   : > { %12314 = vst [vmem:[#allocation37_spill] sm:$0xff] %v12313_v50  ;;  %12315 = vst [vmem:[#allocation38_spill] sm:$0xff] %v10223_v42  ;;  %vm5551_vm0 = vcmp.ne.s32.totalorder %v10206_v38, 0  ;;  %v5233_v35 = vshrl.u32 %v10146_v60, 4  ;;  %v10261_v48 = vadd.s32 24, %v10206_v38  ;;  %v5266_v31 = vshrl.u32 %v10161_v16, 4 }
 0x1eb   : > { %12316 = vst [vmem:[#allocation39_spill] sm:$0xff] %v10242_v6  ;;  %12317 = vst [vmem:[#allocation40_spill] sm:$0xff] %v10255_v14  ;;  %v5244_v54 = vshrl.u32 %v10177_v59, 4  ;;  %v10269_v29 = vadd.s32 200, %v9724_v3  ;;  %v5256_v47 = vmul.u32 24, %v5255_v62  ;;  %v10276_v50 = vadd.s32 240, %v9724_v3 }
 0x1ec   : > { %12318 = vst [vmem:[#allocation41_spill] sm:$0xff] %v10261_v48  ;;  %v10272_v60 = vmul.u32.u64.low 2863311531, %v10248_v28  ;;  %v10273_v56 = vmul.u32.u64.high 2863311531, %v10248_v28, %v10272_v60  ;;  %vm12319_vm9 = vcmp.ne.s32.totalorder %v10200_v5, 0  ;;  %vm12320_vm6 = vcmp.lt.s32.totalorder %v10200_v5, 0 }
 0x1ed   : > { %vm10282_vm7 = vmand %vm12320_vm6, %vm12319_vm9  ;;  %v12321_v16 = vmov 0  ;;  %v5234_v59 = vmul.u32 24, %v5233_v35  ;;  %v5299_v62 = vshrl.u32 %v10210_v40, 4  ;;  %v10289_v9 = vadd.s32 224, %v9724_v3 }
 0x1ee   : > { %v12322_v16 = vsel %vm10282_vm7, 4294967295, %v12321_v16  ;;  %vm12324_vm15 = vcmp.lt.s32.totalorder %v10206_v38, 0  ;;  %v12325_v60 = vmov 0  ;;  %v10300_v20 = vadd.s32 24, %v10223_v42 }
 0x1ef   : > { %12323 = vst [vmem:[#allocation42_spill] sm:$0xff] %v12322_v16  ;;  %vm10295_vm13 = vmand %vm12324_vm15, %vm5551_vm0  ;;  %v10303_v49 = vadd.s32 24, %v10242_v6  ;;  %v5267_v35 = vmul.u32 24, %v5266_v31  ;;  %v5277_v40 = vshrl.u32 %v10227_v27, 4  ;;  %vm12330_vm6 = vcmp.ne.s32.totalorder %v10223_v42, 0 }
 0x1f0   : > { %v12326_v60 = vsel %vm10295_vm13, 4294967295, %v12325_v60  ;;  %12328 = vst [vmem:[#allocation44_spill] sm:$0xff] %v10300_v20  ;;  %vm12331_vm9 = vcmp.lt.s32.totalorder %v10223_v42, 0  ;;  %v12332_v19 = vmov 0  ;;  %v5245_v45 = vmul.u32 24, %v5244_v54 }
 0x1f1   : > { %12327 = vst [vmem:[#allocation43_spill] sm:$0xff] %v12326_v60  ;;  %12329 = vst [vmem:[#allocation45_spill] sm:$0xff] %v10303_v49  ;;  %v10317_v7 = vmul.u32.u64.low 2863311531, %v10269_v29  ;;  %v10318_v26 = vmul.u32.u64.high 2863311531, %v10269_v29, %v10317_v7  ;;  %v10321_v53 = vadd.s32 248, %v9724_v3  ;;  %vm12335_vm15 = vcmp.ne.s32.totalorder %v10242_v6, 0 }
 0x1f2   : > { %vm10312_vm3 = vmand %vm12331_vm9, %vm12330_vm6  ;;  %vm12336_vm0 = vcmp.lt.s32.totalorder %v10242_v6, 0  ;;  %v12337_v54 = vmov 0  ;;  %v10338_v7 = vsub.s32 %v10083_v18, %v5256_v47  ;;  %v10347_v16 = vsub.s32 %v10089_v4, %v5234_v59 }
 0x1f3   : > { %v12333_v19 = vsel %vm10312_vm3, 4294967295, %v12332_v19  ;;  %vm10333_vm6 = vmand %vm12336_vm0, %vm12335_vm15  ;;  %v10341_v36 = vmul.u32.u64.low 2863311531, %v10276_v50  ;;  %v10342_v41 = vmul.u32.u64.high 2863311531, %v10276_v50, %v10341_v36  ;;  %v5300_v27 = vmul.u32 24, %v5299_v62 }
 0x1f4   : > { %12334 = vst [vmem:[#allocation46_spill] sm:$0xff] %v12333_v19  ;;  %v12338_v54 = vsel %vm10333_vm6, 4294967295, %v12337_v54  ;;  %12340 = vst [vmem:[#allocation48_spill] sm:$0xff] %v10338_v7  ;;  %v10350_v5 = vmul.u32.u64.low 2863311531, %v10289_v9  ;;  %v10351_v14 = vmul.u32.u64.high 2863311531, %v10289_v9, %v10350_v5  ;;  %v10356_v10 = vsub.s32 %v10104_v17, %v5267_v35 }
 0x1f5   : > { %12339 = vst [vmem:[#allocation47_spill] sm:$0xff] %v12338_v54  ;;  %12341 = vst [vmem:[#allocation49_spill] sm:$0xff] %v10347_v16  ;;  %v5278_v47 = vmul.u32 24, %v5277_v40  ;;  %v10359_v18 = vmul.u32.u64.low 2863311531, %v10321_v53  ;;  %v10360_v58 = vmul.u32.u64.high 2863311531, %v10321_v53, %v10359_v18  ;;  %v10375_v5 = vsub.s32 %v10118_v22, %v5245_v45 }
 0x1f6   : > { %12342 = vst [vmem:[#allocation50_spill] sm:$0xff] %v10356_v10  ;;  %vm5605_vm15 = vcmp.lt.s32.totalorder %v10338_v7, 0  ;;  %v10380_v59 = vadd.s32 24, %v10338_v7  ;;  %v5310_v62 = vshrl.u32 %v10273_v56, 4  ;;  %v10386_v35 = vadd.s32 24, %v10347_v16 }
 0x1f7   : > { %12343 = vst [vmem:[#allocation51_spill] sm:$0xff] %v10375_v5  ;;  %v10389_v40 = vsub.s32 %v10149_v51, %v5300_v27  ;;  %v10394_v45 = vadd.s32 24, %v10356_v10  ;;  %v10397_v22 = vsub.s32 %v10164_v63, %v5278_v47  ;;  %v5288_v18 = vshrl.u32 %v10318_v26, 4 }
 0x1f8   : > { %12344 = vst [vmem:[#allocation52_spill] sm:$0xff] %v10380_v59  ;;  %12345 = vst [vmem:[#allocation53_spill] sm:$0xff] %v10386_v35  ;;  %v10405_v51 = vadd.s32 232, %v9724_v3  ;;  %v10410_v17 = vadd.s32 24, %v10375_v5  ;;  %v5311_v4 = vmul.u32 24, %v5310_v62  ;;  %v5343_v63 = vshrl.u32 %v10342_v41, 4 }
 0x1f9   : > { %12346 = vst [vmem:[#allocation54_spill] sm:$0xff] %v10389_v40  ;;  %12347 = vst [vmem:[#allocation55_spill] sm:$0xff] %v10394_v45  ;;  %v10414_v47 = vadd.s32 272, %v9724_v3  ;;  %vm12351_vm0 = vcmp.ne.s32.totalorder %v10338_v7, 0  ;;  %v12352_v26 = vmov 0  ;;  %v5321_v62 = vshrl.u32 %v10351_v14, 4 }
 0x1fa   : > { %12348 = vst [vmem:[#allocation56_spill] sm:$0xff] %v10397_v22  ;;  %12349 = vst [vmem:[#allocation57_spill] sm:$0xff] %v10410_v17  ;;  %v10430_v41 = vadd.s32 256, %v9724_v3  ;;  %vm12356_vm13 = vcmp.ne.s32.totalorder %v10347_v16, 0  ;;  %vm12357_vm7 = vcmp.lt.s32.totalorder %v10347_v16, 0  ;;  %v12358_v49 = vmov 0 }
 0x1fb   : > { %vm10422_vm3 = vmand %vm5605_vm15, %vm12351_vm0  ;;  %v10443_v54 = vadd.s32 24, %v10389_v40  ;;  %vm5559_vm15 = vcmp.ne.s32.totalorder %v10397_v22, 0  ;;  %v5354_v14 = vshrl.u32 %v10360_v58, 4  ;;  %vm12362_vm6 = vcmp.ne.s32.totalorder %v10356_v10, 0 }
 0x1fc   : > { %v12353_v26 = vsel %vm10422_vm3, 4294967295, %v12352_v26  ;;  %vm10438_vm10 = vmand %vm12357_vm7, %vm12356_vm13  ;;  %vm12363_vm9 = vcmp.lt.s32.totalorder %v10356_v10, 0  ;;  %v12364_v42 = vmov 0  ;;  %v5289_v20 = vmul.u32 24, %v5288_v18 }
 0x1fd   : > { %12354 = vst [vmem:[#allocation59_spill] sm:$0xff] %v12353_v26  ;;  %v12359_v49 = vsel %vm10438_vm10, 4294967295, %v12358_v49  ;;  %12361 = vst [vmem:[#allocation62_spill] sm:$0xff] %v10443_v54  ;;  %v10457_v19 = vmul.u32.u64.low 2863311531, %v10405_v51  ;;  %v10458_v38 = vmul.u32.u64.high 2863311531, %v10405_v51, %v10457_v19  ;;  %v10461_v48 = vadd.s32 280, %v9724_v3 }
 0x1fe   : > { %12360 = vst [vmem:[#allocation61_spill] sm:$0xff] %v12359_v49  ;;  %vm10452_vm5 = vmand %vm12363_vm9, %vm12362_vm6  ;;  %vm12367_vm7 = vcmp.ne.s32.totalorder %v10375_v5, 0  ;;  %vm12368_vm13 = vcmp.lt.s32.totalorder %v10375_v5, 0  ;;  %v12369_v58 = vmov 0  ;;  %v10472_v60 = vsub.s32 %v10248_v28, %v5311_v4 }
 0x1ff   : > { %v12365_v42 = vsel %vm10452_vm5, 4294967295, %v12364_v42  ;;  %vm10467_vm0 = vmand %vm12368_vm13, %vm12367_vm7  ;;  %vm12373_vm6 = vcmp.ne.s32.totalorder %v10389_v40, 0  ;;  %vm12374_vm9 = vcmp.lt.s32.totalorder %v10389_v40, 0  ;;  %v12375_v21 = vmov 0 }
 0x200   : > { %12366 = vst [vmem:[#allocation63_spill] sm:$0xff] %v12365_v42  ;;  %v12370_v58 = vsel %vm10467_vm0, 4294967295, %v12369_v58  ;;  %12372 = vst [vmem:[#allocation65_spill] sm:$0xff] %v10472_v60  ;;  %v5322_v28 = vmul.u32 24, %v5321_v62  ;;  %v10499_v19 = vadd.s32 24, %v10397_v22  ;;  %v5355_v7 = vmul.u32 24, %v5354_v14 }
 0x201   : > { %12371 = vst [vmem:[#allocation64_spill] sm:$0xff] %v12370_v58  ;;  %vm10486_vm7 = vmand %vm12374_vm9, %vm12373_vm6  ;;  %v10502_v59 = vadd.s32 264, %v9724_v3  ;;  %vm12380_vm13 = vcmp.lt.s32.totalorder %v10397_v22, 0  ;;  %v10519_v14 = vsub.s32 %v10269_v29, %v5289_v20  ;;  %vm5610_vm9 = vcmp.lt.s32.totalorder %v10472_v60, 0 }
 0x202   : > { %v12376_v21 = vsel %vm10486_vm7, 4294967295, %v12375_v21  ;;  %12378 = vst [vmem:[#allocation67_spill] sm:$0xff] %v10499_v19  ;;  %vm10514_vm6 = vmand %vm12380_vm13, %vm5559_vm15  ;;  %v12394_v10 = vmov 0  ;;  %v10586_v22 = vadd.s32 288, %v9724_v3  ;;  %v12399_v19 = vmov 0 }
 0x203   : > { %12377 = vst [vmem:[#allocation66_spill] sm:$0xff] %v12376_v21  ;;  %12384 = vst [vmem:[#allocation70_spill] sm:$0xff] %v10519_v14  ;;  %v10546_v58 = vmul.u32.u64.low 2863311531, %v10502_v59  ;;  %v10547_v62 = vmul.u32.u64.high 2863311531, %v10502_v59, %v10546_v58  ;;  %vm5608_vm15 = vcmp.lt.s32.totalorder %v10519_v14, 0  ;;  %v12404_v54 = vmov 0 }
 0x204   : > { %v10567_v58 = vadd.s32 24, %v10519_v14  ;;  %v10614_v45 = vadd.s32 312, %v9724_v3  ;;  %v12408_v42 = vmov 0  ;;  %v12473_v2 = vsel %vm9907_vm8, %v9843_v8, %v9804_v1  ;;  %v12522_v8 = vld [vmem:[#allocation10_spill] sm:$0xff] }
 0x205   : > { %v12477_v1 = vsel %vm9923_vm11, %v9896_v44, %v9827_v37 }
 0x206   : > { %12392 = vst [vmem:[#allocation78_spill] sm:$0xff] %v10567_v58  ;;  %v10795_v58 = vadd.s32 368, %v9724_v3  ;;  %vm10942_vm8 = vcmp.lt.s32.totalorder %v12477_v1, 16 }
 0x21c   : > { %v10306_v24 = vpop.f32.mrb[0].mxu1 }
 0x21d   : > { %v10323_v31 = vpop.f32.mrb[1].mxu1 }
 0x21e   : > { %v10344_v12 = vpop.f32.mrb[2].mxu1 }
 0x21f   : > { %v10353_v32 = vpop.f32.mrb[3].mxu1 }
 0x224   : > { %v10399_v56 = vpop.f32.mrb[4].mxu1 }
 0x225   : > { %v10407_v27 = vpop.f32.mrb[5].mxu1 }
 0x226   : > { %v10416_v36 = vpop.f32.mrb[6].mxu1 }
 0x227   : > { %12350 = vst [vmem:[#allocation58_spill] sm:$0xff] %v10416_v36  ;;  %v10432_v6 = vpop.f32.mrb[7].mxu1  ;;  %v10475_v18 = vmul.u32.u64.low 2863311531, %v10414_v47  ;;  %v10476_v36 = vmul.u32.u64.high 2863311531, %v10414_v47, %v10475_v18 }
 0x228   : > { %12355 = vst [vmem:[#allocation60_spill] sm:$0xff] %v10432_v6  ;;  %v5344_v6 = vmul.u32 24, %v5343_v63  ;;  %v10491_v4 = vmul.u32.u64.low 2863311531, %v10430_v41  ;;  %v10492_v63 = vmul.u32.u64.high 2863311531, %v10430_v41, %v10491_v4 }
 0x229   : > { %v12381_v4 = vmov 0  ;;  %v10522_v18 = vmul.u32.u64.low 2863311531, %v10461_v48  ;;  %v10523_v16 = vmul.u32.u64.high 2863311531, %v10461_v48, %v10522_v18 }
 0x22a   : > { %v12382_v4 = vsel %vm10514_vm6, 4294967295, %v12381_v4  ;;  %v10537_v20 = vsub.s32 %v10276_v50, %v5344_v6  ;;  %v10543_v18 = vsub.s32 %v10289_v9, %v5322_v28  ;;  %v10556_v50 = vadd.s32 24, %v10472_v60 }
 0x22b   : > { %12383 = vst [vmem:[#allocation69_spill] sm:$0xff] %v12382_v4  ;;  %v10559_v6 = vsub.s32 %v10321_v53, %v5355_v7  ;;  %v10562_v9 = vadd.s32 304, %v9724_v3  ;;  %v5332_v28 = vshrl.u32 %v10458_v38, 4  ;;  %vm12393_vm6 = vcmp.ne.s32.totalorder %v10472_v60, 0 }
 0x22c   : > { %v10504_v26 = vpop.f32.mrb[8].mxu1  ;;  %12386 = vst [vmem:[#allocation72_spill] sm:$0xff] %v10537_v20  ;;  %12388 = vst [vmem:[#allocation74_spill] sm:$0xff] %v10543_v18  ;;  %vm5613_vm5 = vcmp.lt.s32.totalorder %v10537_v20, 0  ;;  %v10579_v53 = vadd.s32 24, %v10537_v20  ;;  %v5387_v7 = vshrl.u32 %v10476_v36, 4 }
 0x22d   : > { %12379 = vst [vmem:[#allocation68_spill] sm:$0xff] %v10504_v26  ;;  %v10525_v35 = vpop.f32.mrb[9].mxu1  ;;  %12390 = vst [vmem:[#allocation76_spill] sm:$0xff] %v10556_v50  ;;  %vm5563_vm13 = vcmp.ne.s32.totalorder %v10543_v18, 0  ;;  %vm5611_vm10 = vcmp.lt.s32.totalorder %v10543_v18, 0  ;;  %v5365_v38 = vshrl.u32 %v10492_v63, 4 }
 0x22e   : > { %12385 = vst [vmem:[#allocation71_spill] sm:$0xff] %v10525_v35  ;;  %v10539_v29 = vpop.f32.mrb[10].mxu1  ;;  %12391 = vst [vmem:[#allocation77_spill] sm:$0xff] %v10559_v6  ;;  %vm5566_vm0 = vcmp.ne.s32.totalorder %v10559_v6, 0  ;;  %v10597_v36 = vmul.u32.u64.low 2863311531, %v10562_v9  ;;  %v10598_v4 = vmul.u32.u64.high 2863311531, %v10562_v9, %v10597_v36 }
 0x22f   : > { %12387 = vst [vmem:[#allocation73_spill] sm:$0xff] %v10539_v29  ;;  %v10549_v5 = vpop.f32.mrb[11].mxu1  ;;  %vm10572_vm7 = vmand %vm5610_vm9, %vm12393_vm6  ;;  %vm12398_vm6 = vcmp.ne.s32.totalorder %v10519_v14, 0  ;;  %v5333_v21 = vmul.u32 24, %v5332_v28  ;;  %v5398_v17 = vshrl.u32 %v10523_v16, 4  ;;  %v10625_v63 = vadd.s32 24, %v10543_v18 }
 0x230   : > { %12389 = vst [vmem:[#allocation75_spill] sm:$0xff] %v10549_v5  ;;  %v12395_v10 = vsel %vm10572_vm7, 4294967295, %v12394_v10  ;;  %12397 = vst [vmem:[#allocation80_spill] sm:$0xff] %v10579_v53  ;;  %v10628_v60 = vadd.s32 24, %v10559_v6  ;;  %v5388_v28 = vmul.u32 24, %v5387_v7  ;;  %v5376_v16 = vshrl.u32 %v10547_v62, 4 }
 0x231   : > { %12396 = vst [vmem:[#allocation79_spill] sm:$0xff] %v12395_v10  ;;  %vm10590_vm9 = vmand %vm5608_vm15, %vm12398_vm6  ;;  %vm12403_vm15 = vcmp.ne.s32.totalorder %v10537_v20, 0  ;;  %v12415_v10 = vmov 0  ;;  %v5366_v49 = vmul.u32 24, %v5365_v38  ;;  %v10646_v5 = vadd.s32 296, %v9724_v3 }
 0x232   : > { %v12400_v19 = vsel %vm10590_vm9, 4294967295, %v12399_v19  ;;  %vm10608_vm6 = vmand %vm5613_vm5, %vm12403_vm15  ;;  %12411 = vst [vmem:[#allocation86_spill] sm:$0xff] %v10625_v63  ;;  %vm12414_vm5 = vcmp.lt.s32.totalorder %v10559_v6, 0  ;;  %v5431_v38 = vshrl.u32 %v10598_v4, 4  ;;  %v10660_v29 = vadd.s32 336, %v9724_v3 }
 0x233   : > { %12401 = vst [vmem:[#allocation81_spill] sm:$0xff] %v12400_v19  ;;  %v12405_v54 = vsel %vm10608_vm6, 4294967295, %v12404_v54  ;;  %vm10620_vm3 = vmand %vm5611_vm10, %vm5563_vm13  ;;  %v5399_v35 = vmul.u32 24, %v5398_v17  ;;  %v10681_v17 = vsub.s32 %v10430_v41, %v5366_v49  ;;  %v10693_v4 = vadd.s32 320, %v9724_v3 }
 0x234   : > { %v10600_v40 = vpop.f32.mrb[12].mxu1  ;;  %12406 = vst [vmem:[#allocation83_spill] sm:$0xff] %v12405_v54  ;;  %v12409_v42 = vsel %vm10620_vm3, 4294967295, %v12408_v42  ;;  %12412 = vst [vmem:[#allocation87_spill] sm:$0xff] %v10628_v60  ;;  %v10689_v62 = vmul.u32.u64.low 2863311531, %v10660_v29  ;;  %v10690_v18 = vmul.u32.u64.high 2863311531, %v10660_v29, %v10689_v62 }
 0x235   : > { %12402 = vst [vmem:[#allocation82_spill] sm:$0xff] %v10600_v40  ;;  %v10616_v36 = vpop.f32.mrb[13].mxu1  ;;  %12410 = vst [vmem:[#allocation85_spill] sm:$0xff] %v12409_v42  ;;  %v5432_v42 = vmul.u32 24, %v5431_v38  ;;  %v10700_v49 = vsub.s32 %v10461_v48, %v5399_v35  ;;  %v10720_v48 = vadd.s32 344, %v9724_v3  ;;  %v10733_v6 = vadd.s32 24, %v10681_v17 }
 0x236   : > { %12407 = vst [vmem:[#allocation84_spill] sm:$0xff] %v10616_v36  ;;  %v10631_v50 = vpop.f32.mrb[14].mxu1  ;;  %vm10637_vm15 = vmand %vm12414_vm5, %vm5566_vm0  ;;  %v10642_v36 = vmul.u32.u64.low 2863311531, %v10586_v22  ;;  %v10643_v40 = vmul.u32.u64.high 2863311531, %v10586_v22, %v10642_v36  ;;  %vm12437_vm3 = vcmp.lt.s32.totalorder %v10681_v17, 0  ;;  %v12449_v19 = vmov 0 }
 0x237   : > { %12413 = vst [vmem:[#allocation88_spill] sm:$0xff] %v10631_v50  ;;  %v12416_v10 = vsel %vm10637_vm15, 4294967295, %v12415_v10  ;;  %v10648_v7 = vpop.f32.mrb[15].mxu1  ;;  %v10663_v36 = vsub.s32 %v10405_v51, %v5333_v21  ;;  %v10678_v50 = vsub.s32 %v10414_v47, %v5388_v28  ;;  %v5377_v21 = vmul.u32 24, %v5376_v16  ;;  %12420 = vst [vmem:[#allocation92_spill] sm:$0xff] %v10681_v17 }
 0x238   : > { %12417 = vst [vmem:[#allocation89_spill] sm:$0xff] %v12416_v10  ;;  %12418 = vst [vmem:[#allocation90_spill] sm:$0xff] %v10648_v7  ;;  %v10666_v7 = vmul.u32.u64.low 2863311531, %v10614_v45  ;;  %v10667_v26 = vmul.u32.u64.high 2863311531, %v10614_v45, %v10666_v7  ;;  %v5409_v51 = vshrl.u32 %v10643_v40, 4  ;;  %vm12443_vm7 = vcmp.lt.s32.totalorder %v10700_v49, 0 }
 0x239   : > { %12419 = vst [vmem:[#allocation91_spill] sm:$0xff] %v10678_v50  ;;  %v10685_v7 = vmul.u32.u64.low 2863311531, %v10646_v5  ;;  %v10686_v20 = vmul.u32.u64.high 2863311531, %v10646_v5, %v10685_v7  ;;  %12422 = vst [vmem:[#allocation94_spill] sm:$0xff] %v10700_v49  ;;  %v10705_v28 = vadd.s32 24, %v10663_v36  ;;  %v10710_v16 = vsub.s32 %v10502_v59, %v5377_v21 }
 0x23a   : > { %v5410_v40 = vmul.u32 24, %v5409_v51  ;;  %v10715_v38 = vadd.s32 24, %v10678_v50  ;;  %v10725_v51 = vsub.s32 %v10562_v9, %v5432_v42  ;;  %v5442_v59 = vshrl.u32 %v10667_v26, 4 }
 0x23b   : > { %v10729_v21 = vmul.u32.u64.low 2863311531, %v10693_v4  ;;  %v10730_v7 = vmul.u32.u64.high 2863311531, %v10693_v4, %v10729_v21  ;;  %vm12428_vm5 = vcmp.ne.s32.totalorder %v10663_v36, 0  ;;  %vm12429_vm13 = vcmp.lt.s32.totalorder %v10663_v36, 0 }
 0x23c   : > { %v10695_v47 = vpop.f32.mrb[16].mxu1  ;;  %12425 = vst [vmem:[#allocation97_spill] sm:$0xff] %v10715_v38  ;;  %v10738_v60 = vsub.s32 %v10586_v22, %v5410_v40  ;;  %vm10744_vm15 = vmand %vm12429_vm13, %vm12428_vm5  ;;  %v10749_v26 = vadd.s32 24, %v10700_v49  ;;  %v5420_v9 = vshrl.u32 %v10686_v20, 4  ;;  %v5000_v21 = vadd.s32 328, %v9724_v3 }
 0x23d   : > { %12421 = vst [vmem:[#allocation93_spill] sm:$0xff] %v10695_v47  ;;  %v10702_v41 = vpop.f32.mrb[17].mxu1  ;;  %vm12432_vm10 = vcmp.ne.s32.totalorder %v10678_v50, 0  ;;  %vm12433_vm0 = vcmp.lt.s32.totalorder %v10678_v50, 0  ;;  %v5475_v40 = vshrl.u32 %v10690_v18, 4  ;;  %vm12436_vm5 = vcmp.ne.s32.totalorder %v10681_v17, 0 }
 0x23e   : > { %12423 = vst [vmem:[#allocation95_spill] sm:$0xff] %v10702_v41  ;;  %v10712_v62 = vpop.f32.mrb[18].mxu1  ;;  %12427 = vst [vmem:[#allocation99_spill] sm:$0xff] %v10738_v60  ;;  %v10765_v10 = vmul.u32.u64.low 2863311531, %v10720_v48  ;;  %v10766_v63 = vmul.u32.u64.high 2863311531, %v10720_v48, %v10765_v10  ;;  %v12438_v20 = vmov 0 }
 0x23f   : > { %12424 = vst [vmem:[#allocation96_spill] sm:$0xff] %v10712_v62  ;;  %v10722_v35 = vpop.f32.mrb[19].mxu1  ;;  %vm10758_vm6 = vmand %vm12433_vm0, %vm12432_vm10  ;;  %v10777_v53 = vadd.s32 24, %v10710_v16  ;;  %v5443_v18 = vmul.u32 24, %v5442_v59  ;;  %vm12442_vm13 = vcmp.ne.s32.totalorder %v10700_v49, 0  ;;  %v12444_v10 = vmov 0 }
 0x240   : > { %12426 = vst [vmem:[#allocation98_spill] sm:$0xff] %v10722_v35  ;;  %vm10772_vm9 = vmand %vm12437_vm3, %vm12436_vm5  ;;  %vm5571_vm3 = vcmp.ne.s32.totalorder %v10738_v60, 0  ;;  %vm5619_vm5 = vcmp.lt.s32.totalorder %v10738_v60, 0  ;;  %v5453_v14 = vshrl.u32 %v10730_v7, 4  ;;  %vm12447_vm0 = vcmp.ne.s32.totalorder %v10710_v16, 0 }
 0x241   : > { %v12439_v20 = vsel %vm10772_vm9, 4294967295, %v12438_v20  ;;  %vm10787_vm2 = vmand %vm12443_vm7, %vm12442_vm13  ;;  %vm12448_vm10 = vcmp.lt.s32.totalorder %v10710_v16, 0  ;;  %v5421_v35 = vmul.u32 24, %v5420_v9  ;;  %vm12453_vm7 = vcmp.ne.s32.totalorder %v10725_v51, 0 }
 0x242   : > { %12440 = vst [vmem:[#allocation100_spill] sm:$0xff] %v12439_v20  ;;  %v12445_v10 = vsel %vm10787_vm2, 4294967295, %v12444_v10  ;;  %vm10803_vm4 = vmand %vm12448_vm10, %vm12447_vm0  ;;  %v10810_v62 = vmul.u32.u64.low 2863311531, %v5000_v21  ;;  %v10811_v41 = vmul.u32.u64.high 2863311531, %v5000_v21, %v10810_v62  ;;  %vm12454_vm13 = vcmp.lt.s32.totalorder %v10725_v51, 0 }
 0x243   : > { %v12450_v19 = vsel %vm10803_vm4, 4294967295, %v12449_v19  ;;  %vm10827_vm10 = vmand %vm12454_vm13, %vm12453_vm7  ;;  %v12455_v9 = vmov 0  ;;  %v10832_v62 = vadd.s32 24, %v10738_v60  ;;  %v12458_v50 = vmov 0 }
 0x244   : > { %v10781_v54 = vpop.f32.mrb[20].mxu1  ;;  %12451 = vst [vmem:[#allocation103_spill] sm:$0xff] %v12450_v19  ;;  %v12456_v9 = vsel %vm10827_vm10, 4294967295, %v12455_v9  ;;  %vm10848_vm0 = vmand %vm5619_vm5, %vm5571_vm3  ;;  %v5454_v38 = vmul.u32 24, %v5453_v14  ;;  %v5486_v20 = vshrl.u32 %v10766_v63, 4  ;;  %v10861_v47 = vadd.s32 352, %v9724_v3 }
 0x245   : > { %12441 = vst [vmem:[#allocation101_spill] sm:$0xff] %v10781_v54  ;;  %v10797_v59 = vpop.f32.mrb[21].mxu1  ;;  %v10808_v54 = vadd.s32 24, %v10725_v51  ;;  %12457 = vst [vmem:[#allocation105_spill] sm:$0xff] %v10832_v62  ;;  %v12459_v50 = vsel %vm10848_vm0, 4294967295, %v12458_v50  ;;  %v10872_v14 = vsub.s32 %v10646_v5, %v5421_v35  ;;  %v5464_v63 = vshrl.u32 %v10811_v41, 4 }
 0x246   : > { %12446 = vst [vmem:[#allocation102_spill] sm:$0xff] %v10797_v59  ;;  %v10813_v7 = vpop.f32.mrb[22].mxu1  ;;  %v10857_v59 = vmul.u32.u64.low 2863311531, %v10795_v58  ;;  %v10858_v17 = vmul.u32.u64.high 2863311531, %v10795_v58, %v10857_v59  ;;  %v5487_v19 = vmul.u32 24, %v5486_v20  ;;  %v10883_v49 = vadd.s32 376, %v9724_v3 }
 0x247   : > { %12452 = vst [vmem:[#allocation104_spill] sm:$0xff] %v10813_v7  ;;  %v5476_v7 = vmul.u32 24, %v5475_v40  ;;  %v10834_v46 = vpop.f32.mrb[23].mxu1  ;;  %v10853_v40 = vsub.s32 %v10614_v45, %v5443_v18  ;;  %12461 = vst [vmem:[#allocation107_spill] sm:$0xff] %v10872_v14  ;;  %v12464_v5 = vsel %vm9807_vm12, %v9802_v55, %v9782_v57  ;;  %v5465_v41 = vmul.u32 24, %v5464_v63 }
 0x248   : > { %12463 = vst [vmem:[#allocation109_spill] sm:$0xff] %v10883_v49  ;;  %vm10890_vm3 = vcmp.lt.s32.totalorder %v12464_v5, 16  ;;  %vm10904_vm13 = vcmp.lt.s32.totalorder %v12468_v30, 16  ;;  %v10912_v55 = vsub.s32 %v10720_v48, %v5487_v19  ;;  %vm10923_vm12 = vcmp.lt.s32.totalorder %v12473_v2, 16 }
 0x249   : > { %12460 = vst [vmem:[#allocation106_spill] sm:$0xff] %v10853_v40  ;;  %v10880_v59 = vsub.s32 %v10660_v29, %v5476_v7  ;;  %vm5574_vm5 = vcmp.ne.s32.totalorder %v10853_v40, 0  ;;  %v10897_v29 = vsub.s32 %v10693_v4, %v5454_v38  ;;  %v10909_v57 = vadd.s32 24, %v10853_v40  ;;  %v10935_v38 = vld [vmem:[%s12089_s2] ss:$0 sm:$0xff] }
 0x24a   : > { %12472 = vst [vmem:[#allocation112_spill] sm:$0xff] %v10912_v55  ;;  %v10915_v7 = vmul.u32.u64.low 2863311531, %v10861_v47  ;;  %v10916_v4 = vmul.u32.u64.high 2863311531, %v10861_v47, %v10915_v7  ;;  %v10929_v61 = vsub.s32 %v5000_v21, %v5465_v41  ;;  %v5519_v19 = vshrl.u32 %v10858_v17, 4 }
 0x24b   : > { %12462 = vst [vmem:[#allocation108_spill] sm:$0xff] %v10880_v59  ;;  %12467 = vst [vmem:[#allocation110_spill] sm:$0xff] %v10897_v29  ;;  %v10949_v13 = vmul.u32.u64.low 2863311531, %v10883_v49  ;;  %v10950_v17 = vmul.u32.u64.high 2863311531, %v10883_v49, %v10949_v13  ;;  %vm12480_vm0 = vcmp.lt.s32.totalorder %v10853_v40, 0  ;;  %v10961_v37 = vadd.s32 24, %v10872_v14 }
 0x24c   : > { %12471 = vst [vmem:[#allocation111_spill] sm:$0xff] %v10909_v57  ;;  %12476 = vst [vmem:[#allocation113_spill] sm:$0xff] %v10929_v61  ;;  %v10964_v44 = vadd.s32 24, %v10880_v59  ;;  %vm12486_vm7 = vcmp.ne.s32.totalorder %v10872_v14, 0  ;;  %v12488_v5 = vmov 0  ;;  %v10978_v41 = vadd.s32 24, %v10897_v29 }
 0x24d   : > { %vm10956_vm10 = vmand %vm12480_vm0, %vm5574_vm5  ;;  %12484 = vst [vmem:[#allocation115_spill] sm:$0xff] %v10961_v37  ;;  %vm12487_vm0 = vcmp.lt.s32.totalorder %v10872_v14, 0  ;;  %vm5578_vm4 = vcmp.ne.s32.totalorder %v10912_v55, 0  ;;  %vm12492_vm1 = vcmp.ne.s32.totalorder %v10880_v59, 0  ;;  %vm12493_vm2 = vcmp.lt.s32.totalorder %v10880_v59, 0  ;;  %v12589_v59 = vld [vmem:[#allocation33_spill] sm:$0xff] }
 0x24e   : > { %v7863_v48 = vpop.f32.mrb[0].mxu0  ;;  %v12482_v0 = vsel %vm10956_vm10, 4294967295, %v12481_v0  ;;  %12485 = vst [vmem:[#allocation116_spill] sm:$0xff] %v10964_v44  ;;  %vm10973_vm5 = vmand %vm12487_vm0, %vm12486_vm7  ;;  %v5520_v2 = vmul.u32 24, %v5519_v19  ;;  %v11008_v19 = vadd.s32 24, %v10912_v55  ;;  %v11034_v15 = vadd.s32 24, %v10929_v61 }
 0x24f   : > { %12483 = vst [vmem:[#allocation114_spill] sm:$0xff] %v12482_v0  ;;  %v7911_v21 = vadd.f32 %v7863_v48, %v10306_v24  ;;  %v4616_v63 = vpop.f32.mrb[1].mxu0  ;;  %v12489_v5 = vsel %vm10973_vm5, 4294967295, %v12488_v5  ;;  %12491 = vst [vmem:[#allocation118_spill] sm:$0xff] %v10978_v41  ;;  %v12494_v24 = vmov 0  ;;  %vm12512_vm0 = vcmp.lt.s32.totalorder %v10929_v61, 0 }
 0x250   : > { %12490 = vst [vmem:[#allocation117_spill] sm:$0xff] %v12489_v5  ;;  %v7912_v30 = vadd.f32 %v4616_v63, %v10323_v31  ;;  %v7864_v7 = vpop.f32.mrb[2].mxu0  ;;  %vm10987_vm9 = vmand %vm12493_vm2, %vm12492_vm1  ;;  %vm12497_vm2 = vcmp.ne.s32.totalorder %v10897_v29, 0  ;;  %vm12498_vm1 = vcmp.lt.s32.totalorder %v10897_v29, 0  ;;  %v12499_v63 = vmov 0  ;;  %v12553_v41 = vld [vmem:[#allocation58_spill] sm:$0xff] }
 0x251   : > { %v12495_v24 = vsel %vm10987_vm9, 4294967295, %v12494_v24  ;;  %v4864_v1 = vadd.f32 %v7911_v21, %v10935_v38  ;;  %v7913_v13 = vadd.f32 %v7864_v7, %v10344_v12  ;;  %v4619_v48 = vpop.f32.mrb[3].mxu0  ;;  %vm11003_vm11 = vmand %vm12498_vm1, %vm12497_vm2  ;;  %12502 = vst [vmem:[#allocation121_spill] sm:$0xff] %v11008_v19  ;;  %v12503_v7 = vsel %vm9933_vm14, %v9912_v25, %v9864_v23  ;;  %v6613_v19 = vld [vmem:[%s9741_s9 + $0xc] sm:$0xf]  ;;  %v12640_v5 = vld [vmem:[#allocation48_spill] sm:$0xff] }
 0x252   : > { %12496 = vst [vmem:[#allocation119_spill] sm:$0xff] %v12495_v24  ;;  %v12500_v63 = vsel %vm11003_vm11, 4294967295, %v12499_v63  ;;  %v4862_v21 = vadd.f32 %v7912_v30, %v10935_v38  ;;  %v7914_v12 = vadd.f32 %v4619_v48, %v10353_v32  ;;  %vm11017_vm7 = vcmp.lt.s32.totalorder %v12503_v7, 16  ;;  %12510 = vst [vmem:[#allocation123_spill] sm:$0xff] %v11034_v15 }
 0x253   : > { %12501 = vst [vmem:[#allocation120_spill] sm:$0xff] %v12500_v63  ;;  %vm12506_vm2 = vcmp.lt.s32.totalorder %v10912_v55, 0  ;;  %v12507_v32 = vmov 0  ;;  %v4912_v23 = vmax.f32 %v4864_v1, 0.0  ;;  %v4865_v25 = vadd.f32 %v7913_v13, %v10935_v38  ;;  %v12557_v63 = vld [vmem:[#allocation15_spill] sm:$0xff] }
 0x254   : > { %vm11029_vm1 = vmand %vm12506_vm2, %vm5578_vm4  ;;  %vm12511_vm14 = vcmp.ne.s32.totalorder %v10929_v61, 0  ;;  %v12513_v48 = vmov 0  ;;  %v5497_v7 = vshrl.u32 %v10916_v4, 4  ;;  %v4910_v18 = vmax.f32 %v4862_v21, 0.0 }
 0x255   : > { %v12508_v32 = vsel %vm11029_vm1, 4294967295, %v12507_v32  ;;  %vm11045_vm5 = vmand %vm12512_vm0, %vm12511_vm14  ;;  %v4863_v1 = vadd.f32 %v7914_v12, %v10935_v38  ;;  %v11056_v30 = vsub.s32 %v10795_v58, %v5520_v2  ;;  %v5921_v45 = vsel %vm10890_vm3, %v4912_v23, 0.0 }
 0x256   : > { %12509 = vst [vmem:[#allocation122_spill] sm:$0xff] %v12508_v32  ;;  %v12514_v48 = vsel %vm11045_vm5, 4294967295, %v12513_v48  ;;  %v4913_v3 = vmax.f32 %v4865_v25, 0.0  ;;  %vm12516_vm4 = vnez %v12252_v11  ;;  %v7188_v2 = vpack.c.bf16 %v5921_v45, %v5921_v45  ;;  %v7867_v11 = vpop.f32.mrb[4].mxu0  ;;  %v12547_v32 = vld [vmem:[#allocation14_spill] sm:$0xff] }
 0x257   : > { %12515 = vst [vmem:[#allocation124_spill] sm:$0xff] %v12514_v48  ;;  %v12517_v4 = vsel %vm12516_vm4, %v9963_v52, %v9870_v34  ;;  %v5919_v35 = vsel %vm10904_vm13, %v4910_v18, 0.0  ;;  %v4911_v23 = vmax.f32 %v4863_v1, 0.0  ;;  %v4632_v12 = vpop.f32.mrb[5].mxu0  ;;  %v11083_v13 = vmul.u32 24, %v5497_v7 }
 0x258   : > { %vm11065_vm0 = vcmp.lt.s32.totalorder %v12517_v4, 16  ;;  %v7186_v52 = vpack.c.bf16 %v5919_v35, %v5919_v35  ;;  %v5922_v25 = vsel %vm10923_vm12, %v4913_v3, 0.0  ;;  %v7915_v4 = vadd.f32 %v7867_v11, %v10399_v56  ;;  %v7868_v20 = vpop.f32.mrb[6].mxu0 }
 0x259   : > { %v6151_v45 = vshrl.u32 %v7188_v2, 16  ;;  %v7189_v58 = vpack.c.bf16 %v5922_v25, %v5922_v25  ;;  %v5920_v18 = vsel %vm10942_vm8, %v4911_v23, 0.0  ;;  %v11088_v1 = vadd.s32 24, %v11056_v30  ;;  %v4635_v33 = vpop.f32.mrb[7].mxu0  ;;  %v12523_v23 = vld [vmem:[#allocation8_spill] sm:$0xff] }
 0x25a   : > { %v6154_v34 = vshll.u32 %v7188_v2, 16  ;;  %v6134_v35 = vshrl.u32 %v7186_v52, 16  ;;  %v7187_v49 = vpack.c.bf16 %v5920_v18, %v5920_v18  ;;  %v4868_v3 = vadd.f32 %v7915_v4, %v10935_v38 }
 0x25b   : > { %12520 = vst [vmem:[#allocation125_spill] sm:$0xff] %v11088_v1  ;;  %v6153_v56 = vrot.slane %v6151_v45, 7  ;;  %v6137_v11 = vshll.u32 %v7186_v52, 16  ;;  %v6160_v7 = vshrl.u32 %v7189_v58, 16  ;;  %v7916_v61 = vadd.f32 %v4632_v12, %v10407_v27 }
 0x25c   : > { %vm12521_vm3 = vnez %v12254_v39  ;;  %v6136_v2 = vrot.slane %v6134_v35, 7  ;;  %v6163_v48 = vshll.u32 %v7189_v58, 16  ;;  %v6142_v18 = vshrl.u32 %v7187_v49, 16  ;;  %v12533_v35 = vld [vmem:[#allocation11_spill] sm:$0xff] }
 0x25d   : > { %v12524_v25 = vsel %vm12521_vm3, %v12522_v8, %v12523_v23  ;;  %v4916_v55 = vmax.f32 %v4868_v3, 0.0  ;;  %v6156_v4 = vor.u32 %v6154_v34, %v6153_v56  ;;  %v11102_v45 = vrot.slane %v6160_v7, 7  ;;  %v12531_v34 = vld [vmem:[#allocation12_spill] sm:$0xff]  ;;  %v12534_v3 = vld [vmem:[#allocation9_spill] sm:$0xff] }
 0x25e   : > { %vm11097_vm13 = vcmp.lt.s32.totalorder %v12524_v25, 16  ;;  %v6145_v52 = vshll.u32 %v7187_v49, 16  ;;  %v4866_v27 = vadd.f32 %v7916_v61, %v10935_v38  ;;  %v6158_v12 = vrot.slane %v6153_v56, 4  ;;  %v12539_v56 = vld [vmem:[#allocation18_spill] sm:$0xff]  ;;  %v12540_v7 = vld [vmem:[#allocation13_spill] sm:$0xff] }
 0x25f   : > { %vm12527_vm12 = vsmask.f32 4368  ;;  %vm12528_vm8 = vsmask.f32 256  ;;  %v6139_v8 = vor.u32 %v6137_v11, %v6136_v2  ;;  %v6144_v23 = vrot.slane %v6142_v18, 7  ;;  %v12573_v11 = vld [vmem:[#allocation31_spill] sm:$0xff] }
 0x260   : > { %vm11107_vm2 = vmor %vm12528_vm8, %vm12527_vm12  ;;  %v5925_v58 = vsel %vm11017_vm7, %v4916_v55, 0.0  ;;  %vm12532_vm14 = vnez %v12531_v34  ;;  %vm12538_vm3 = vnez %v12275_v43  ;;  %v6140_v31 = vrot.slane %v6136_v2, 4 }
 0x261   : > { %v12535_v49 = vsel %vm12532_vm14, %v12533_v35, %v12534_v3  ;;  %v12541_v25 = vsel %vm12538_vm3, %v12539_v56, %v12540_v7  ;;  %v6165_v55 = vor.u32 %v6163_v48, %v11102_v45  ;;  %v7192_v18 = vpack.c.bf16 %v5925_v58, %v5925_v58  ;;  %v7871_v35 = vpop.f32.mrb[8].mxu0  ;;  %v12544_v3 = vld [vmem:[#allocation27_spill] sm:$0xff]  ;;  %v12554_v58 = vld [vmem:[#allocation28_spill] sm:$0xff] }
 0x262   : > { %vm11118_vm4 = vcmp.lt.s32.totalorder %v12535_v49, 16  ;;  %vm11127_vm12 = vcmp.lt.s32.totalorder %v12541_v25, 16  ;;  %v4914_v34 = vmax.f32 %v4866_v27, 0.0  ;;  %vm12545_vm7 = vnez %v12544_v3  ;;  %v12546_v49 = vld [vmem:[#allocation19_spill] sm:$0xff]  ;;  %v4648_v27 = vpop.f32.mrb[9].mxu0  ;;  %v12556_v3 = vld [vmem:[#allocation21_spill] sm:$0xff] }
 0x263   : > { %v12548_v29 = vsel %vm12545_vm7, %v12546_v49, %v12547_v32  ;;  %v12551_v56 = vld [vmem:[#allocation7_spill] sm:$0xff]  ;;  %v6147_v25 = vor.u32 %v6145_v52, %v6144_v23  ;;  %v6149_v2 = vrot.slane %v6144_v23, 4  ;;  %v7917_v48 = vadd.f32 %v7868_v20, %v12553_v41  ;;  %v7872_v20 = vpop.f32.mrb[10].mxu0 }
 0x264   : > { %vm11137_vm8 = vcmp.lt.s32.totalorder %v12548_v29, 16  ;;  %vm12552_vm14 = vnez %v12551_v56  ;;  %vm12555_vm3 = vnez %v12554_v58  ;;  %v6187_v32 = vshrl.u32 %v7192_v18, 16  ;;  %v4651_v49 = vpop.f32.mrb[11].mxu0  ;;  %v12562_v56 = vld [vmem:[#allocation68_spill] sm:$0xff] }
 0x265   : > { %v6614_v7 = vsel %vm12552_vm14, %v6139_v8, %v6613_v19  ;;  %v12558_v1 = vsel %vm12555_vm3, %v12556_v3, %v12557_v63  ;;  %v6166_v19 = vsel %vm11107_vm2, %v6158_v12, %v6165_v55  ;;  %v6190_v52 = vshll.u32 %v7192_v18, 16  ;;  %v12561_v55 = vld [vmem:[#allocation60_spill] sm:$0xff] }
 0x266   : > { %vm11149_vm7 = vcmp.lt.s32.totalorder %v12558_v1, 16  ;;  %6615 = vst [vmem:[%s9741_s9 + $0xc] sm:$0xf] %v6614_v7  ;;  %v5923_v41 = vsel %vm11065_vm0, %v4914_v34, 0.0  ;;  %6618 = vst [vmem:[%s9741_s9 + $0x18] sm:$0xf] %v6166_v19  ;;  %v6148_v8 = vsel %vm11107_vm2, %v6140_v31, %v6147_v25  ;;  %v6157_v63 = vsel %vm11107_vm2, %v6149_v2, %v6156_v4 }
 0x267   : > { %v7190_v1 = vpack.c.bf16 %v5923_v41, %v5923_v41  ;;  %v4869_v23 = vadd.f32 %v7917_v48, %v10935_v38  ;;  %6616 = vst [vmem:[%s9741_s9 + $0x10] sm:$0xf] %v6148_v8  ;;  %6617 = vst [vmem:[%s9741_s9 + $0x14] sm:$0xf] %v6157_v63  ;;  %v6189_v12 = vrot.slane %v6187_v32, 7  ;;  %v7918_v18 = vadd.f32 %v4635_v33, %v12561_v55  ;;  %v12563_v34 = vld [vmem:[#allocation71_spill] sm:$0xff] }
 0x268   : > { %v7919_v21 = vadd.f32 %v7871_v35, %v12562_v56  ;;  %v7920_v7 = vadd.f32 %v4648_v27, %v12563_v34  ;;  %v6167_v58 = vrot.slane %v11102_v45, 4  ;;  %v12564_v25 = vld [vmem:[#allocation73_spill] sm:$0xff]  ;;  %v12569_v55 = vld [vmem:[#allocation16_spill] sm:$0xff]  ;;  %v7875_v15 = vpop.f32.mrb[12].mxu0  ;;  %vm12590_vm3 = vnez %v12589_v59  ;;  %v12611_v56 = vld [vmem:[#allocation90_spill] sm:$0xff] }
 0x269   : > { %v6169_v3 = vshrl.u32 %v7190_v1, 16  ;;  %v4917_v31 = vmax.f32 %v4869_v23, 0.0  ;;  %v7921_v19 = vadd.f32 %v7872_v20, %v12564_v25  ;;  %v11171_v4 = vor.u32 %v6190_v52, %v6189_v12  ;;  %v12565_v20 = vld [vmem:[#allocation75_spill] sm:$0xff]  ;;  %v12566_v23 = vld [vmem:[#allocation30_spill] sm:$0xff] }
 0x26a   : > { %v6172_v2 = vshll.u32 %v7190_v1, 16  ;;  %v4867_v48 = vadd.f32 %v7918_v18, %v10935_v38  ;;  %v4872_v41 = vadd.f32 %v7919_v21, %v10935_v38  ;;  %v4870_v35 = vadd.f32 %v7920_v7, %v10935_v38  ;;  %v12568_v1 = vld [vmem:[#allocation22_spill] sm:$0xff] }
 0x26b   : > { %v11175_v32 = vrot.slane %v6169_v3, 7  ;;  %v5926_v33 = vsel %vm11097_vm13, %v4917_v31, 0.0  ;;  %v4873_v45 = vadd.f32 %v7921_v19, %v10935_v38  ;;  %v7922_v52 = vadd.f32 %v4651_v49, %v12565_v20  ;;  %v4664_v31 = vpop.f32.mrb[13].mxu0 }
 0x26c   : > { %v7193_v27 = vpack.c.bf16 %v5926_v33, %v5926_v33  ;;  %v4915_v8 = vmax.f32 %v4867_v48, 0.0  ;;  %v4920_v63 = vmax.f32 %v4872_v41, 0.0  ;;  %vm12567_vm0 = vnez %v12566_v23  ;;  %v7876_v41 = vpop.f32.mrb[14].mxu0 }
 0x26d   : > { %v12570_v18 = vsel %vm12567_vm0, %v12568_v1, %v12569_v55  ;;  %v6194_v21 = vrot.slane %v6189_v12, 4  ;;  %v6174_v34 = vor.u32 %v6172_v2, %v11175_v32  ;;  %v4918_v7 = vmax.f32 %v4870_v35, 0.0  ;;  %v4667_v2 = vpop.f32.mrb[15].mxu0 }
 0x26e   : > { %vm11187_vm14 = vcmp.lt.s32.totalorder %v12570_v18, 16  ;;  %v4921_v3 = vmax.f32 %v4873_v45, 0.0  ;;  %v6196_v25 = vshrl.u32 %v7193_v27, 16  ;;  %v6199_v19 = vshll.u32 %v7193_v27, 16 }
 0x26f   : > { %v5924_v49 = vsel %vm11118_vm4, %v4915_v8, 0.0  ;;  %v5929_v48 = vsel %vm11127_vm12, %v4920_v63, 0.0  ;;  %v6175_v33 = vsel %vm11107_vm2, %v6167_v58, %v6174_v34  ;;  %v5927_v12 = vsel %vm11137_vm8, %v4918_v7, 0.0  ;;  %v12575_v8 = vld [vmem:[#allocation24_spill] sm:$0xff]  ;;  %v12576_v63 = vld [vmem:[#allocation17_spill] sm:$0xff] }
 0x270   : > { %v7191_v20 = vpack.c.bf16 %v5924_v49, %v5924_v49  ;;  %v7196_v23 = vpack.c.bf16 %v5929_v48, %v5929_v48  ;;  %6619 = vst [vmem:[%s9741_s9 + $0x1c] sm:$0xf] %v6175_v33  ;;  %v6198_v35 = vrot.slane %v6196_v25, 7  ;;  %v7194_v45 = vpack.c.bf16 %v5927_v12, %v5927_v12  ;;  %v12582_v49 = vld [vmem:[#allocation26_spill] sm:$0xff]  ;;  %v12583_v48 = vld [vmem:[#allocation20_spill] sm:$0xff] }
 0x271   : > { %v5930_v61 = vsel %vm11149_vm7, %v4921_v3, 0.0  ;;  %v4871_v27 = vadd.f32 %v7922_v52, %v10935_v38  ;;  %vm12574_vm13 = vnez %v12573_v11  ;;  %v6176_v43 = vrot.slane %v11175_v32, 4  ;;  %v12580_v52 = vld [vmem:[#allocation32_spill] sm:$0xff] }
 0x272   : > { %v12577_v1 = vsel %vm12574_vm13, %v12575_v8, %v12576_v63  ;;  %v6178_v55 = vshrl.u32 %v7191_v20, 16  ;;  %v6181_v18 = vshll.u32 %v7191_v20, 16  ;;  %v6223_v34 = vshrl.u32 %v7196_v23, 16 }
 0x273   : > { %vm11209_vm4 = vcmp.lt.s32.totalorder %v12577_v1, 16  ;;  %v6201_v7 = vor.u32 %v6199_v19, %v6198_v35  ;;  %v6226_v25 = vshll.u32 %v7196_v23, 16  ;;  %v6205_v29 = vshrl.u32 %v7194_v45, 16  ;;  %v12587_v23 = vld [vmem:[#allocation82_spill] sm:$0xff]  ;;  %v12588_v1 = vld [vmem:[#allocation84_spill] sm:$0xff] }
 0x274   : > { %v6208_v3 = vshll.u32 %v7194_v45, 16  ;;  %vm12581_vm12 = vnez %v12580_v52  ;;  %v6180_v11 = vrot.slane %v6178_v55, 7  ;;  %v6225_v8 = vrot.slane %v6223_v34, 7  ;;  %v12599_v55 = vld [vmem:[#allocation25_spill] sm:$0xff] }
 0x275   : > { %v12584_v33 = vsel %vm12581_vm12, %v12582_v49, %v12583_v48  ;;  %v7197_v32 = vpack.c.bf16 %v5930_v61, %v5930_v61  ;;  %v4919_v63 = vmax.f32 %v4871_v27, 0.0  ;;  %v6202_v19 = vsel %vm11107_vm2, %v6194_v21, %v6201_v7  ;;  %v12591_v49 = vld [vmem:[#allocation29_spill] sm:$0xff]  ;;  %v12592_v48 = vld [vmem:[#allocation23_spill] sm:$0xff] }
 0x276   : > { %vm11219_vm8 = vcmp.lt.s32.totalorder %v12584_v33, 16  ;;  %v11225_v20 = vrot.slane %v6205_v29, 7  ;;  %v7923_v45 = vadd.f32 %v7875_v15, %v12587_v23  ;;  %v7924_v52 = vadd.f32 %v4664_v31, %v12588_v1  ;;  %v12596_v61 = vld [vmem:[#allocation37_spill] sm:$0xff]  ;;  %v12598_v27 = vld [vmem:[#allocation35_spill] sm:$0xff]  ;;  %v7879_v15 = vpop.f32.mrb[16].mxu0 }
 0x277   : > { %v12593_v33 = vsel %vm12590_vm3, %v12591_v49, %v12592_v48  ;;  %vm12597_vm0 = vnez %v12596_v61  ;;  %v6203_v31 = vrot.slane %v6198_v35, 4  ;;  %6622 = vst [vmem:[%s9741_s9 + $0x28] sm:$0xf] %v6202_v19  ;;  %v6183_v59 = vor.u32 %v6181_v18, %v6180_v11  ;;  %v4680_v23 = vpop.f32.mrb[17].mxu0  ;;  %v12603_v61 = vld [vmem:[#allocation42_spill] sm:$0xff] }
 0x278   : > { %vm11234_vm7 = vcmp.lt.s32.totalorder %v12593_v33, 16  ;;  %v12600_v21 = vsel %vm12597_vm0, %v12598_v27, %v12599_v55  ;;  %v6185_v7 = vrot.slane %v6180_v11, 4  ;;  %v6228_v29 = vor.u32 %v6226_v25, %v6225_v8  ;;  %v12605_v27 = vld [vmem:[#allocation40_spill] sm:$0xff]  ;;  %v12606_v55 = vld [vmem:[#allocation34_spill] sm:$0xff]  ;;  %v11258_v18 = vpop.f32.mrb[18].mxu0 }
 0x279   : > { %vm11243_vm13 = vcmp.lt.s32.totalorder %v12600_v21, 16  ;;  %v6230_v1 = vrot.slane %v6225_v8, 4  ;;  %v6210_v49 = vor.u32 %v6208_v3, %v11225_v20  ;;  %v6232_v48 = vshrl.u32 %v7197_v32, 16 }
 0x27a   : > { %v6235_v33 = vshll.u32 %v7197_v32, 16  ;;  %vm12604_vm12 = vnez %v12603_v61  ;;  %v6184_v25 = vsel %vm11107_vm2, %v6176_v43, %v6183_v59  ;;  %v6193_v3 = vsel %vm11107_vm2, %v6185_v7, %v11171_v4  ;;  %v11268_v32 = vpop.f32.mrb[19].mxu0  ;;  %v12610_v4 = vld [vmem:[#allocation88_spill] sm:$0xff] }
 0x27b   : > { %v12607_v21 = vsel %vm12604_vm12, %v12605_v27, %v12606_v55  ;;  %v5928_v11 = vsel %vm11187_vm14, %v4919_v63, 0.0  ;;  %v4876_v8 = vadd.f32 %v7923_v45, %v10935_v38  ;;  %6620 = vst [vmem:[%s9741_s9 + $0x20] sm:$0xf] %v6184_v25  ;;  %6621 = vst [vmem:[%s9741_s9 + $0x24] sm:$0xf] %v6193_v3  ;;  %v6211_v19 = vsel %vm11107_vm2, %v6203_v31, %v6210_v49  ;;  %v12612_v45 = vld [vmem:[#allocation93_spill] sm:$0xff] }
 0x27c   : > { %vm11254_vm3 = vcmp.lt.s32.totalorder %v12607_v21, 16  ;;  %v11274_v61 = vrot.slane %v6232_v48, 7  ;;  %v7195_v27 = vpack.c.bf16 %v5928_v11, %v5928_v11  ;;  %v4874_v43 = vadd.f32 %v7924_v52, %v10935_v38  ;;  %6623 = vst [vmem:[%s9741_s9 + $0x2c] sm:$0xf] %v6211_v19  ;;  %v7687_v35 = vpop.f32.mrb[24].mxu1 }
 0x27d   : > { %v4924_v59 = vmax.f32 %v4876_v8, 0.0  ;;  %v7925_v7 = vadd.f32 %v7876_v41, %v12610_v4  ;;  %v7926_v63 = vadd.f32 %v4667_v2, %v12611_v56  ;;  %v7927_v55 = vadd.f32 %v7879_v15, %v12612_v45  ;;  %v12616_v4 = vld [vmem:[#allocation41_spill] sm:$0xff] }
 0x27e   : > { %v6212_v21 = vrot.slane %v11225_v20, 4  ;;  %v6237_v25 = vor.u32 %v6235_v33, %v11274_v61  ;;  %v6214_v3 = vshrl.u32 %v7195_v27, 16  ;;  %v6217_v31 = vshll.u32 %v7195_v27, 16  ;;  %v11290_v20 = vpop.f32.mrb[20].mxu0  ;;  %v12613_v27 = vld [vmem:[#allocation95_spill] sm:$0xff] }
 0x27f   : > { %v5933_v49 = vsel %vm11209_vm4, %v4924_v59, 0.0  ;;  %v4922_v48 = vmax.f32 %v4874_v43, 0.0  ;;  %v4877_v52 = vadd.f32 %v7925_v7, %v10935_v38  ;;  %v4875_v11 = vadd.f32 %v7926_v63, %v10935_v38  ;;  %v12614_v59 = vld [vmem:[#allocation43_spill] sm:$0xff]  ;;  %v12617_v7 = vld [vmem:[#allocation36_spill] sm:$0xff]  ;;  %v11305_v63 = vpop.f32.mrb[21].mxu0 }
 0x280   : > { %v6238_v41 = vsel %vm11107_vm2, %v6230_v1, %v6237_v25  ;;  %v6216_v2 = vrot.slane %v6214_v3, 7  ;;  %v7200_v8 = vpack.c.bf16 %v5933_v49, %v5933_v49  ;;  %v4880_v15 = vadd.f32 %v7927_v55, %v10935_v38  ;;  %v11307_v3 = vpop.f32.mrb[22].mxu0  ;;  %v12653_v1 = vld [vmem:[#allocation55_spill] sm:$0xff] }
 0x281   : > { %6626 = vst [vmem:[%s9741_s9 + $0x38] sm:$0xf] %v6238_v41  ;;  %v5931_v33 = vsel %vm11219_vm8, %v4922_v48, 0.0  ;;  %v4925_v58 = vmax.f32 %v4877_v52, 0.0  ;;  %v4923_v19 = vmax.f32 %v4875_v11, 0.0  ;;  %v7928_v43 = vadd.f32 %v4680_v23, %v12613_v27  ;;  %v11313_v11 = vpop.f32.mrb[23].mxu0 }
 0x282   : > { %vm12615_vm14 = vnez %v12614_v59  ;;  %v6219_v45 = vor.u32 %v6217_v31, %v6216_v2  ;;  %v6221_v12 = vrot.slane %v6216_v2, 4  ;;  %v6259_v55 = vshrl.u32 %v7200_v8, 16 }
 0x283   : > { %v12618_v56 = vsel %vm12615_vm14, %v12616_v4, %v12617_v7  ;;  %v6262_v25 = vshll.u32 %v7200_v8, 16  ;;  %v7198_v23 = vpack.c.bf16 %v5931_v33, %v5931_v33  ;;  %v5934_v49 = vsel %vm11234_vm7, %v4925_v58, 0.0  ;;  %v12623_v58 = vld [vmem:[#allocation44_spill] sm:$0xff]  ;;  %v12630_v4 = vld [vmem:[#allocation45_spill] sm:$0xff] }
 0x284   : > { %vm11301_vm4 = vcmp.lt.s32.totalorder %v12618_v56, 16  ;;  %v5932_v48 = vsel %vm11243_vm13, %v4923_v19, 0.0  ;;  %v4928_v52 = vmax.f32 %v4880_v15, 0.0  ;;  %v6220_v41 = vsel %vm11107_vm2, %v6212_v21, %v6219_v45  ;;  %v12621_v15 = vld [vmem:[#allocation46_spill] sm:$0xff] }
 0x285   : > { %v6229_v31 = vsel %vm11107_vm2, %v6221_v12, %v6228_v29  ;;  %v6261_v2 = vrot.slane %v6259_v55, 7  ;;  %v7201_v8 = vpack.c.bf16 %v5934_v49, %v5934_v49  ;;  %v6239_v27 = vrot.slane %v11274_v61, 4  ;;  %6624 = vst [vmem:[%s9741_s9 + $0x30] sm:$0xf] %v6220_v41  ;;  %v12624_v19 = vld [vmem:[#allocation38_spill] sm:$0xff]  ;;  %v12628_v29 = vld [vmem:[#allocation47_spill] sm:$0xff] }
 0x286   : > { %6625 = vst [vmem:[%s9741_s9 + $0x34] sm:$0xf] %v6229_v31  ;;  %v6241_v44 = vshrl.u32 %v7198_v23, 16  ;;  %v7199_v33 = vpack.c.bf16 %v5932_v48, %v5932_v48  ;;  %v5937_v34 = vsel %vm11254_vm3, %v4928_v52, 0.0  ;;  %vm12622_vm8 = vnez %v12621_v15  ;;  %v12631_v61 = vld [vmem:[#allocation39_spill] sm:$0xff]  ;;  %v11342_v48 = vpop.f32.mrb[25].mxu1 }
 0x287   : > { %v12625_v59 = vsel %vm12622_vm8, %v12623_v58, %v12624_v19  ;;  %vm12629_vm0 = vnez %v12628_v29  ;;  %v6264_v45 = vor.u32 %v6262_v25, %v6261_v2  ;;  %v6266_v12 = vrot.slane %v6261_v2, 4  ;;  %v11344_v58 = vpop.f32.mrb[26].mxu1  ;;  %v12635_v29 = vld [vmem:[#allocation96_spill] sm:$0xff] }
 0x288   : > { %vm11329_vm7 = vcmp.lt.s32.totalorder %v12625_v59, 16  ;;  %v12632_v7 = vsel %vm12629_vm0, %v12630_v4, %v12631_v61  ;;  %v6244_v55 = vshll.u32 %v7198_v23, 16  ;;  %v6268_v49 = vshrl.u32 %v7201_v8, 16  ;;  %v12636_v61 = vld [vmem:[#allocation98_spill] sm:$0xff]  ;;  %v7887_v23 = vpop.f32.mrb[24].mxu0  ;;  %v11353_v2 = vpop.f32.mrb[27].mxu1 }
 0x289   : > { %vm11338_vm13 = vcmp.lt.s32.totalorder %v12632_v7, 16  ;;  %v6243_v52 = vrot.slane %v6241_v44, 7  ;;  %v6271_v41 = vshll.u32 %v7201_v8, 16  ;;  %v6250_v31 = vshrl.u32 %v7199_v33, 16  ;;  %v11355_v24 = vpop.f32.mrb[25].mxu0 }
 0x28a   : > { %v7204_v15 = vpack.c.bf16 %v5937_v34, %v5937_v34  ;;  %v11346_v19 = vrot.slane %v6268_v49, 7  ;;  %v4878_v59 = vadd.f32 %v7928_v43, %v10935_v38  ;;  %v7929_v4 = vadd.f32 %v11258_v18, %v12635_v29  ;;  %v11358_v18 = vpop.f32.mrb[26].mxu0 }
 0x28b   : > { %v7930_v25 = vadd.f32 %v11268_v32, %v12636_v61  ;;  %v6246_v7 = vor.u32 %v6244_v55, %v6243_v52  ;;  %v6252_v44 = vrot.slane %v6250_v31, 7  ;;  %v6253_v8 = vshll.u32 %v7199_v33, 16  ;;  %v12637_v31 = vld [vmem:[#allocation59_spill] sm:$0xff]  ;;  %v12639_v33 = vld [vmem:[#allocation52_spill] sm:$0xff] }
 0x28c   : > { %v6295_v34 = vshrl.u32 %v7204_v15, 16  ;;  %v6248_v49 = vrot.slane %v6243_v52, 4  ;;  %v6273_v14 = vor.u32 %v6271_v41, %v11346_v19  ;;  %v6298_v43 = vshll.u32 %v7204_v15, 16  ;;  %v12644_v41 = vld [vmem:[#allocation61_spill] sm:$0xff] }
 0x28d   : > { %v4926_v37 = vmax.f32 %v4878_v59, 0.0  ;;  %v6247_v32 = vsel %vm11107_vm2, %v6239_v27, %v6246_v7  ;;  %v6255_v29 = vor.u32 %v6253_v8, %v6252_v44  ;;  %v6257_v61 = vrot.slane %v6252_v44, 4  ;;  %v12646_v15 = vld [vmem:[#allocation53_spill] sm:$0xff]  ;;  %v11382_v7 = vpop.f32.mrb[27].mxu0 }
 0x28e   : > { %v11362_v55 = vrot.slane %v6295_v34, 7  ;;  %vm12638_vm12 = vnez %v12637_v31  ;;  %vm12645_vm14 = vnez %v12644_v41  ;;  %v12647_v59 = vld [vmem:[#allocation49_spill] sm:$0xff]  ;;  %6627 = vst [vmem:[%s9741_s9 + $0x3c] sm:$0xf] %v6247_v32  ;;  %v4881_v44 = vadd.f32 %v7929_v4, %v10935_v38 }
 0x28f   : > { %v12641_v40 = vsel %vm12638_vm12, %v12639_v33, %v12640_v5  ;;  %v12648_v57 = vsel %vm12645_vm14, %v12646_v15, %v12647_v59  ;;  %v5935_v5 = vsel %vm11301_vm4, %v4926_v37, 0.0  ;;  %v4879_v8 = vadd.f32 %v7930_v25, %v10935_v38  ;;  %v12654_v37 = vld [vmem:[#allocation50_spill] sm:$0xff]  ;;  %v12660_v25 = vld [vmem:[#allocation57_spill] sm:$0xff]  ;;  %v12661_v33 = vld [vmem:[#allocation51_spill] sm:$0xff] }
 0x290   : > { %vm11369_vm3 = vcmp.lt.s32.totalorder %v12641_v40, 16  ;;  %vm11378_vm8 = vcmp.lt.s32.totalorder %v12648_v57, 16  ;;  %v6274_v40 = vsel %vm11107_vm2, %v6266_v12, %v6273_v14  ;;  %v6275_v34 = vrot.slane %v11346_v19, 4  ;;  %v12651_v14 = vld [vmem:[#allocation63_spill] sm:$0xff]  ;;  %v12658_v19 = vld [vmem:[#allocation64_spill] sm:$0xff]  ;;  %v12665_v15 = vld [vmem:[#allocation101_spill] sm:$0xff] }
 0x291   : > { %6630 = vst [vmem:[%s9741_s9 + $0x48] sm:$0xf] %v6274_v40  ;;  %v6256_v57 = vsel %vm11107_vm2, %v6248_v49, %v6255_v29  ;;  %v6265_v31 = vsel %vm11107_vm2, %v6257_v61, %v6264_v45  ;;  %v11398_v32 = vor.u32 %v6298_v43, %v11362_v55  ;;  %vm12652_vm0 = vnez %v12651_v14  ;;  %v11418_v45 = vpop.f32.mrb[28].mxu1  ;;  %v12666_v14 = vld [vmem:[#allocation102_spill] sm:$0xff]  ;;  %v12675_v4 = vld [vmem:[#allocation69_spill] sm:$0xff]  ;;  %v12678_v29 = vld [vmem:[#allocation56_spill] sm:$0xff] }
 0x292   : > { %v12655_v12 = vsel %vm12652_vm0, %v12653_v1, %v12654_v37  ;;  %vm12659_vm12 = vnez %v12658_v19  ;;  %6628 = vst [vmem:[%s9741_s9 + $0x40] sm:$0xf] %v6256_v57  ;;  %6629 = vst [vmem:[%s9741_s9 + $0x44] sm:$0xf] %v6265_v31  ;;  %v7202_v43 = vpack.c.bf16 %v5935_v5, %v5935_v5  ;;  %v4929_v61 = vmax.f32 %v4881_v44, 0.0  ;;  %v11424_v40 = vpop.f32.mrb[29].mxu1 }
 0x293   : > { %vm11405_vm4 = vcmp.lt.s32.totalorder %v12655_v12, 16  ;;  %v12662_v49 = vsel %vm12659_vm12, %v12660_v25, %v12661_v33  ;;  %v4927_v41 = vmax.f32 %v4879_v8, 0.0  ;;  %v7931_v59 = vadd.f32 %v11290_v20, %v12665_v15  ;;  %v12667_v37 = vld [vmem:[#allocation104_spill] sm:$0xff]  ;;  %v11432_v57 = vpop.f32.mrb[30].mxu1  ;;  %v12668_v31 = vld [vmem:[#allocation66_spill] sm:$0xff] }
 0x294   : > { %vm11414_vm14 = vcmp.lt.s32.totalorder %v12662_v49, 16  ;;  %v7932_v1 = vadd.f32 %v11305_v63, %v12666_v14  ;;  %v7933_v12 = vadd.f32 %v11307_v3, %v12667_v37  ;;  %v7934_v19 = vadd.f32 %v11313_v11, %v10834_v46  ;;  %v12670_v63 = vld [vmem:[#allocation62_spill] sm:$0xff]  ;;  %v11448_v46 = vpop.f32.mrb[28].mxu0  ;;  %v11450_v11 = vpop.f32.mrb[31].mxu1 }
 0x295   : > { %v7935_v25 = vadd.f32 %v7887_v23, %v7687_v35  ;;  %v6302_v5 = vrot.slane %v11362_v55, 4  ;;  %v6277_v44 = vshrl.u32 %v7202_v43, 16  ;;  %v5938_v20 = vsel %vm11329_vm7, %v4929_v61, 0.0  ;;  %v12671_v33 = vld [vmem:[#allocation54_spill] sm:$0xff]  ;;  %v11454_v55 = vpop.f32.mrb[29].mxu0 }
 0x296   : > { %v5936_v8 = vsel %vm11338_vm13, %v4927_v41, 0.0  ;;  %vm12669_vm0 = vnez %v12668_v31  ;;  %v7205_v35 = vpack.c.bf16 %v5938_v20, %v5938_v20  ;;  %v4884_v21 = vadd.f32 %v7931_v59, %v10935_v38  ;;  %v11458_v37 = vpop.f32.mrb[30].mxu0  ;;  %v12694_v49 = vld [vmem:[#allocation78_spill] sm:$0xff] }
 0x297   : > { %v12672_v3 = vsel %vm12669_vm0, %v12670_v63, %v12671_v33  ;;  %v7203_v23 = vpack.c.bf16 %v5936_v8, %v5936_v8  ;;  %v4882_v56 = vadd.f32 %v7932_v1, %v10935_v38  ;;  %v6279_v61 = vrot.slane %v6277_v44, 7  ;;  %v11461_v8 = vpop.f32.mrb[31].mxu0 }
 0x298   : > { %vm11444_vm12 = vcmp.lt.s32.totalorder %v12672_v3, 16  ;;  %v6280_v41 = vshll.u32 %v7202_v43, 16  ;;  %v4885_v15 = vadd.f32 %v7933_v12, %v10935_v38  ;;  %v4883_v14 = vadd.f32 %v7934_v19, %v10935_v38  ;;  %v11465_v19 = vpop.f32.mrb[32].mxu1  ;;  %v11483_v27 = vpop.f32.mrb[32].mxu0 }
 0x299   : > { %v6304_v31 = vshrl.u32 %v7205_v35, 16  ;;  %v6307_v63 = vshll.u32 %v7205_v35, 16  ;;  %v6286_v33 = vshrl.u32 %v7203_v23, 16  ;;  %v4888_v20 = vadd.f32 %v7935_v25, %v10935_v38 }
 0x29a   : > { %v6282_v59 = vor.u32 %v6280_v41, %v6279_v61  ;;  %v6289_v1 = vshll.u32 %v7203_v23, 16  ;;  %v4932_v3 = vmax.f32 %v4884_v21, 0.0  ;;  %v4930_v0 = vmax.f32 %v4882_v56, 0.0  ;;  %v11473_v23 = vpop.f32.mrb[33].mxu1 }
 0x29b   : > { %v11463_v44 = vrot.slane %v6304_v31, 7  ;;  %v6288_v43 = vrot.slane %v6286_v33, 7  ;;  %v4933_v12 = vmax.f32 %v4885_v15, 0.0  ;;  %v4931_v60 = vmax.f32 %v4883_v14, 0.0  ;;  %v11477_v31 = vpop.f32.mrb[34].mxu1 }
 0x29c   : > { %v6283_v35 = vsel %vm11107_vm2, %v6275_v34, %v6282_v59  ;;  %v6284_v62 = vrot.slane %v6279_v61, 4  ;;  %v5941_v25 = vsel %vm11369_vm3, %v4932_v3, 0.0  ;;  %v5939_v41 = vsel %vm11378_vm8, %v4930_v0, 0.0  ;;  %v11485_v33 = vpop.f32.mrb[35].mxu1  ;;  %v12677_v3 = vld [vmem:[#allocation67_spill] sm:$0xff] }
 0x29d   : > { %6631 = vst [vmem:[%s9741_s9 + $0x4c] sm:$0xf] %v6283_v35  ;;  %v6309_v21 = vor.u32 %v6307_v63, %v11463_v44  ;;  %v6291_v56 = vor.u32 %v6289_v1, %v6288_v43  ;;  %v6293_v15 = vrot.slane %v6288_v43, 4  ;;  %v4936_v14 = vmax.f32 %v4888_v20, 0.0  ;;  %v12685_v35 = vld [vmem:[#allocation65_spill] sm:$0xff] }
 0x29e   : > { %v7208_v34 = vpack.c.bf16 %v5941_v25, %v5941_v25  ;;  %v7206_v61 = vpack.c.bf16 %v5939_v41, %v5939_v41  ;;  %v5942_v52 = vsel %vm11405_vm4, %v4933_v12, 0.0  ;;  %v5940_v0 = vsel %vm11414_vm14, %v4931_v60, 0.0  ;;  %v12682_v12 = vld [vmem:[#allocation79_spill] sm:$0xff] }
 0x29f   : > { %v6310_v63 = vsel %vm11107_vm2, %v6302_v5, %v6309_v21  ;;  %v6292_v20 = vsel %vm11107_vm2, %v6284_v62, %v6291_v56  ;;  %v6301_v59 = vsel %vm11107_vm2, %v6293_v15, %v11398_v32  ;;  %v7209_v1 = vpack.c.bf16 %v5942_v52, %v5942_v52  ;;  %v12684_v5 = vld [vmem:[#allocation76_spill] sm:$0xff]  ;;  %v11512_v32 = vpop.f32.mrb[33].mxu0 }
 0x2a0   : > { %vm12676_vm7 = vnez %v12675_v4  ;;  %vm12683_vm3 = vnez %v12682_v12  ;;  %6634 = vst [vmem:[%s9741_s9 + $0x58] sm:$0xf] %v6310_v63  ;;  %6632 = vst [vmem:[%s9741_s9 + $0x50] sm:$0xf] %v6292_v20  ;;  %v6331_v41 = vshrl.u32 %v7208_v34, 16  ;;  %v6313_v21 = vshrl.u32 %v7206_v61, 16 }
 0x2a1   : > { %v12679_v60 = vsel %vm12676_vm7, %v12677_v3, %v12678_v29  ;;  %v12686_v25 = vsel %vm12683_vm3, %v12684_v5, %v12685_v35  ;;  %6633 = vst [vmem:[%s9741_s9 + $0x54] sm:$0xf] %v6301_v59  ;;  %v11517_v56 = vpop.f32.mrb[34].mxu0  ;;  %v11521_v15 = vsub.s32 %v10861_v47, %v11083_v13  ;;  %v12690_v52 = vshrl.u32 %v10950_v17, 4 }
 0x2a2   : > { %vm11499_vm13 = vcmp.lt.s32.totalorder %v12679_v60, 16  ;;  %vm11508_vm8 = vcmp.lt.s32.totalorder %v12686_v25, 16  ;;  %v6316_v3 = vshll.u32 %v7206_v61, 16  ;;  %v6340_v29 = vshrl.u32 %v7209_v1, 16  ;;  %v11529_v20 = vpop.f32.mrb[35].mxu0 }
 0x2a3   : > { %12689 = vst [vmem:[#allocation10_spill] sm:$0xff] %v11521_v15  ;;  %v11525_v4 = vmul.u32 24, %v12690_v52  ;;  %v7207_v60 = vpack.c.bf16 %v5940_v0, %v5940_v0  ;;  %v5945_v63 = vsel %vm11444_vm12, %v4936_v14, 0.0  ;;  %v6333_v59 = vrot.slane %v6331_v41, 7  ;;  %v12692_v0 = vld [vmem:[#allocation81_spill] sm:$0xff]  ;;  %v12695_v14 = vld [vmem:[#allocation70_spill] sm:$0xff] }
 0x2a4   : > { %v6315_v12 = vrot.slane %v6313_v21, 7  ;;  %v11531_v5 = vpack.c.bf16 %v5945_v63, %v5945_v63  ;;  %v7936_v47 = vadd.f32 %v11355_v24, %v11342_v48  ;;  %v11535_v13 = vrot.slane %v6340_v29, 7  ;;  %v12699_v21 = vld [vmem:[#allocation83_spill] sm:$0xff]  ;;  %v12701_v52 = vld [vmem:[#allocation80_spill] sm:$0xff]  ;;  %v11557_v29 = vpop.f32.mrb[36].mxu1 }
 0x2a5   : > { %12691 = vst [vmem:[#allocation8_spill] sm:$0xff] %v11525_v4  ;;  %v6343_v17 = vshll.u32 %v7209_v1, 16  ;;  %v6322_v35 = vshrl.u32 %v7207_v60, 16  ;;  %v7937_v61 = vadd.f32 %v11358_v18, %v11344_v58  ;;  %vm12693_vm4 = vnez %v12692_v0  ;;  %v12702_v24 = vld [vmem:[#allocation72_spill] sm:$0xff] }
 0x2a6   : > { %v12696_v25 = vsel %vm12693_vm4, %v12694_v49, %v12695_v14  ;;  %vm12700_vm0 = vnez %v12699_v21  ;;  %v6311_v58 = vrot.slane %v11463_v44, 4  ;;  %v6334_v18 = vshll.u32 %v7208_v34, 16  ;;  %v11560_v49 = vpop.f32.mrb[37].mxu1 }
 0x2a7   : > { %vm11544_vm14 = vcmp.lt.s32.totalorder %v12696_v25, 16  ;;  %v12703_v48 = vsel %vm12700_vm0, %v12701_v52, %v12702_v24  ;;  %v6318_v63 = vor.u32 %v6316_v3, %v6315_v12  ;;  %v6325_v0 = vshll.u32 %v7207_v60, 16  ;;  %v11564_v24 = vpop.f32.mrb[38].mxu1  ;;  %v11570_v3 = vpop.f32.mrb[36].mxu0 }
 0x2a8   : > { %vm11553_vm12 = vcmp.lt.s32.totalorder %v12703_v48, 16  ;;  %v6338_v14 = vrot.slane %v6333_v59, 4  ;;  %v6345_v25 = vor.u32 %v6343_v17, %v11535_v13  ;;  %v6324_v21 = vrot.slane %v6322_v35, 7  ;;  %12706 = vst [vmem:[#allocation12_spill] sm:$0xff] %v11564_v24  ;;  %v11572_v60 = vpop.f32.mrb[39].mxu1 }
 0x2a9   : > { %v6367_v52 = vshrl.u32 %v11531_v5, 16  ;;  %v6336_v48 = vor.u32 %v6334_v18, %v6333_v59  ;;  %v6319_v4 = vsel %vm11107_vm2, %v6311_v58, %v6318_v63  ;;  %v4886_v44 = vadd.f32 %v7936_v47, %v10935_v38  ;;  %v11577_v59 = vpop.f32.mrb[37].mxu0  ;;  %v12710_v63 = vld [vmem:[#allocation74_spill] sm:$0xff] }
 0x2aa   : > { %v4889_v34 = vadd.f32 %v7937_v61, %v10935_v38  ;;  %v6320_v15 = vrot.slane %v6315_v12, 4  ;;  %6635 = vst [vmem:[%s9741_s9 + $0x5c] sm:$0xf] %v6319_v4  ;;  %v6346_v17 = vsel %vm11107_vm2, %v6338_v14, %v6345_v25  ;;  %v6327_v35 = vor.u32 %v6325_v0, %v6324_v21  ;;  %v12707_v12 = vld [vmem:[#allocation85_spill] sm:$0xff]  ;;  %v12709_v4 = vld [vmem:[#allocation86_spill] sm:$0xff] }
 0x2ab   : > { %v6329_v24 = vrot.slane %v6324_v21, 4  ;;  %6638 = vst [vmem:[%s9741_s9 + $0x68] sm:$0xf] %v6346_v17  ;;  %v4934_v58 = vmax.f32 %v4886_v44, 0.0  ;;  %v7938_v61 = vadd.f32 %v11382_v7, %v11353_v2  ;;  %v7939_v18 = vadd.f32 %v11448_v46, %v11418_v45  ;;  %v12714_v25 = vld [vmem:[#allocation89_spill] sm:$0xff]  ;;  %v12716_v21 = vld [vmem:[#allocation87_spill] sm:$0xff] }
 0x2ac   : > { %v4937_v47 = vmax.f32 %v4889_v34, 0.0  ;;  %vm12708_vm7 = vnez %v12707_v12  ;;  %vm12715_vm4 = vnez %v12714_v25  ;;  %v12717_v44 = vld [vmem:[#allocation77_spill] sm:$0xff]  ;;  %v11602_v2 = vpop.f32.mrb[38].mxu0  ;;  %v6347_v7 = vrot.slane %v11535_v13, 4  ;;  %v12736_v0 = vld [vmem:[#allocation94_spill] sm:$0xff] }
 0x2ad   : > { %v12711_v14 = vsel %vm12708_vm7, %v12709_v4, %v12710_v63  ;;  %v12718_v34 = vsel %vm12715_vm4, %v12716_v21, %v12717_v44  ;;  %v6328_v45 = vsel %vm11107_vm2, %v6320_v15, %v6327_v35  ;;  %v6337_v46 = vsel %vm11107_vm2, %v6329_v24, %v6336_v48  ;;  %v11609_v4 = vpop.f32.mrb[39].mxu0  ;;  %v11623_v48 = vpop.f32.mrb[40].mxu1 }
 0x2ae   : > { %vm11589_vm3 = vcmp.lt.s32.totalorder %v12711_v14, 16  ;;  %vm11598_vm0 = vcmp.lt.s32.totalorder %v12718_v34, 16  ;;  %v6369_v12 = vrot.slane %v6367_v52, 7  ;;  %6636 = vst [vmem:[%s9741_s9 + $0x60] sm:$0xf] %v6328_v45  ;;  %v5943_v63 = vsel %vm11499_vm13, %v4934_v58, 0.0 }
 0x2af   : > { %6637 = vst [vmem:[%s9741_s9 + $0x64] sm:$0xf] %v6337_v46  ;;  %v5946_v14 = vsel %vm11508_vm8, %v4937_v47, 0.0  ;;  %v4887_v25 = vadd.f32 %v7938_v61, %v10935_v38  ;;  %v4892_v13 = vadd.f32 %v7939_v18, %v10935_v38  ;;  %v7210_v21 = vpack.c.bf16 %v5943_v63, %v5943_v63  ;;  %v11629_v47 = vpop.f32.mrb[41].mxu1  ;;  %v11657_v22 = vpop.f32.mrb[40].mxu0 }
 0x2b0   : > { %v7213_v15 = vpack.c.bf16 %v5946_v14, %v5946_v14  ;;  %v7940_v24 = vadd.f32 %v11454_v55, %v11424_v40  ;;  %v7941_v52 = vadd.f32 %v11458_v37, %v11432_v57  ;;  %v7942_v62 = vadd.f32 %v11461_v8, %v11450_v11  ;;  %v12724_v11 = vld [vmem:[#allocation97_spill] sm:$0xff]  ;;  %v12725_v55 = vld [vmem:[#allocation91_spill] sm:$0xff] }
 0x2b1   : > { %v4935_v35 = vmax.f32 %v4887_v25, 0.0  ;;  %v4940_v43 = vmax.f32 %v4892_v13, 0.0  ;;  %v7943_v58 = vadd.f32 %v11483_v27, %v11465_v19  ;;  %v6349_v61 = vshrl.u32 %v7210_v21, 16  ;;  %v11649_v19 = vpop.f32.mrb[42].mxu1  ;;  %v11665_v13 = vpop.f32.mrb[41].mxu0 }
 0x2b2   : > { %v6352_v18 = vshll.u32 %v7210_v21, 16  ;;  %v6376_v44 = vshrl.u32 %v7213_v15, 16  ;;  %v6379_v34 = vshll.u32 %v7213_v15, 16  ;;  %v12721_v40 = vsel %vm10744_vm15, %v10705_v28, %v10663_v36  ;;  %v11659_v45 = vpop.f32.mrb[43].mxu1 }
 0x2b3   : > { %vm11636_vm13 = vcmp.lt.s32.totalorder %v12721_v40, 16  ;;  %v12726_v37 = vsel %vm10758_vm6, %v12724_v11, %v12725_v55  ;;  %v5944_v42 = vsel %vm11544_vm14, %v4935_v35, 0.0  ;;  %v5949_v36 = vsel %vm11553_vm12, %v4940_v43, 0.0 }
 0x2b4   : > { %vm11645_vm8 = vcmp.lt.s32.totalorder %v12726_v37, 16  ;;  %v4890_v28 = vadd.f32 %v7940_v24, %v10935_v38  ;;  %v4893_v27 = vadd.f32 %v7941_v52, %v10935_v38  ;;  %v6351_v46 = vrot.slane %v6349_v61, 7  ;;  %v11668_v24 = vpop.f32.mrb[42].mxu0 }
 0x2b5   : > { %v11661_v63 = vrot.slane %v6376_v44, 7  ;;  %v7211_v14 = vpack.c.bf16 %v5944_v42, %v5944_v42  ;;  %v11663_v25 = vpack.c.bf16 %v5949_v36, %v5949_v36  ;;  %v6370_v41 = vshll.u32 %v11531_v5, 16  ;;  %v11673_v44 = vpop.f32.mrb[43].mxu0 }
 0x2b6   : > { %v6374_v1 = vrot.slane %v6369_v12, 4  ;;  %v4938_v21 = vmax.f32 %v4890_v28, 0.0  ;;  %v4941_v15 = vmax.f32 %v4893_v27, 0.0  ;;  %v6354_v52 = vor.u32 %v6352_v18, %v6351_v46  ;;  %v12729_v28 = vld [vmem:[#allocation100_spill] sm:$0xff] }
 0x2b7   : > { %v6381_v35 = vor.u32 %v6379_v34, %v11661_v63  ;;  %v4891_v43 = vadd.f32 %v7942_v62, %v10935_v38  ;;  %v4896_v61 = vadd.f32 %v7943_v58, %v10935_v38  ;;  %v6372_v40 = vor.u32 %v6370_v41, %v6369_v12  ;;  %v11684_v38 = vpop.f32.mrb[44].mxu1 }
 0x2b8   : > { %v6356_v11 = vrot.slane %v6351_v46, 4  ;;  %v6358_v55 = vshrl.u32 %v7211_v14, 16  ;;  %v6403_v5 = vshrl.u32 %v11663_v25, 16  ;;  %v6355_v37 = vsel %vm11107_vm2, %v6347_v7, %v6354_v52  ;;  %v12731_v7 = vld [vmem:[#allocation92_spill] sm:$0xff] }
 0x2b9   : > { %v6382_v42 = vsel %vm11107_vm2, %v6374_v1, %v6381_v35  ;;  %v5947_v18 = vsel %vm11589_vm3, %v4938_v21, 0.0  ;;  %v5950_v62 = vsel %vm11598_vm0, %v4941_v15, 0.0  ;;  %6639 = vst [vmem:[%s9741_s9 + $0x6c] sm:$0xf] %v6355_v37  ;;  %v6361_v58 = vshll.u32 %v7211_v14, 16  ;;  %v11706_v14 = vpop.f32.mrb[45].mxu1 }
 0x2ba   : > { %6642 = vst [vmem:[%s9741_s9 + $0x78] sm:$0xf] %v6382_v42  ;;  %v6360_v12 = vrot.slane %v6358_v55, 7  ;;  %v7214_v34 = vpack.c.bf16 %v5947_v18, %v5947_v18  ;;  %v7217_v36 = vpack.c.bf16 %v5950_v62, %v5950_v62  ;;  %vm12730_vm6 = vnez %v12729_v28  ;;  %v11712_v52 = vpop.f32.mrb[46].mxu1  ;;  %v11715_v37 = vpop.f32.mrb[44].mxu0  ;;  %v12770_v28 = vld [vmem:[#allocation116_spill] sm:$0xff] }
 0x2bb   : > { %v12732_v27 = vsel %vm12730_vm6, %v10733_v6, %v12731_v7  ;;  %vm12735_vm14 = vnez %v12445_v10  ;;  %v4939_v1 = vmax.f32 %v4891_v43, 0.0  ;;  %v4944_v21 = vmax.f32 %v4896_v61, 0.0  ;;  %v11717_v42 = vpop.f32.mrb[47].mxu1 }
 0x2bc   : > { %vm11693_vm15 = vcmp.lt.s32.totalorder %v12732_v27, 16  ;;  %v12737_v17 = vsel %vm12735_vm14, %v10749_v26, %v12736_v0  ;;  %v7944_v6 = vadd.f32 %v11512_v32, %v11473_v23  ;;  %v7945_v15 = vadd.f32 %v11517_v56, %v11477_v31  ;;  %v11719_v32 = vpop.f32.mrb[45].mxu0  ;;  %v11760_v27 = vld [vmem:[%s12089_s2] ss:$0 sm:$0xff] }
 0x2bd   : > { %vm11702_vm12 = vcmp.lt.s32.totalorder %v12737_v17, 16  ;;  %v6363_v10 = vor.u32 %v6361_v58, %v6360_v12  ;;  %v6365_v35 = vrot.slane %v6360_v12, 4  ;;  %v6405_v26 = vrot.slane %v6403_v5, 7  ;;  %v11729_v62 = vpop.f32.mrb[46].mxu0 }
 0x2be   : > { %v6406_v55 = vshll.u32 %v11663_v25, 16  ;;  %v6385_v43 = vshrl.u32 %v7214_v34, 16  ;;  %v6388_v61 = vshll.u32 %v7214_v34, 16  ;;  %v6412_v18 = vshrl.u32 %v7217_v36, 16  ;;  %v11755_v7 = vpop.f32.mrb[47].mxu0 }
 0x2bf   : > { %v6415_v23 = vshll.u32 %v7217_v36, 16  ;;  %v6364_v31 = vsel %vm11107_vm2, %v6356_v11, %v6363_v10  ;;  %v6373_v56 = vsel %vm11107_vm2, %v6365_v35, %v6372_v40  ;;  %v5948_v5 = vsel %vm11636_vm13, %v4939_v1, 0.0  ;;  %v12740_v11 = vld [vmem:[#allocation103_spill] sm:$0xff] }
 0x2c0   : > { %v5953_v25 = vsel %vm11645_vm8, %v4944_v21, 0.0  ;;  %6640 = vst [vmem:[%s9741_s9 + $0x70] sm:$0xf] %v6364_v31  ;;  %6641 = vst [vmem:[%s9741_s9 + $0x74] sm:$0xf] %v6373_v56  ;;  %v6387_v12 = vrot.slane %v6385_v43, 7  ;;  %v7215_v34 = vpack.c.bf16 %v5948_v5, %v5948_v5  ;;  %vm12741_vm7 = vnez %v12740_v11 }
 0x2c1   : > { %v11733_v58 = vrot.slane %v6412_v18, 7  ;;  %v11735_v36 = vpack.c.bf16 %v5953_v25, %v5953_v25  ;;  %v12742_v40 = vsel %vm12741_vm7, %v10777_v53, %v10710_v16  ;;  %vm12745_vm4 = vnez %v12456_v9  ;;  %v12750_v21 = vld [vmem:[#allocation105_spill] sm:$0xff] }
 0x2c2   : > { %vm11742_vm3 = vcmp.lt.s32.totalorder %v12742_v40, 16  ;;  %v12746_v8 = vsel %vm12745_vm4, %v10808_v54, %v10725_v51  ;;  %v4894_v53 = vadd.f32 %v11760_v27, %v7944_v6  ;;  %v4897_v16 = vadd.f32 %v11760_v27, %v7945_v15  ;;  %v12751_v6 = vld [vmem:[#allocation99_spill] sm:$0xff]  ;;  %v12757_v15 = vld [vmem:[#allocation106_spill] sm:$0xff] }
 0x2c3   : > { %vm11751_vm0 = vcmp.lt.s32.totalorder %v12746_v8, 16  ;;  %v7946_v9 = vadd.f32 %v11529_v20, %v11485_v33  ;;  %v7947_v54 = vadd.f32 %v11570_v3, %v11557_v29  ;;  %vm5581_vm13 = vcmp.ne.s32.totalorder %v11056_v30, 0  ;;  %v12756_v3 = vld [vmem:[#allocation111_spill] sm:$0xff]  ;;  %v12761_v8 = vld [vmem:[#allocation12_spill] sm:$0xff] }
 0x2c4   : > { %vm5629_vm8 = vcmp.lt.s32.totalorder %v11056_v30, 0  ;;  %v6383_v51 = vrot.slane %v11661_v63, 4  ;;  %v6410_v0 = vrot.slane %v6405_v26, 4  ;;  %v6390_v17 = vor.u32 %v6388_v61, %v6387_v12  ;;  %v12777_v63 = vld [vmem:[#allocation125_spill] sm:$0xff] }
 0x2c5   : > { %v6417_v1 = vor.u32 %v6415_v23, %v11733_v58  ;;  %vm12749_vm6 = vnez %v12459_v50  ;;  %v12758_v10 = vsel %vm10956_vm10, %v12756_v3, %v12757_v15  ;;  %v6408_v35 = vor.u32 %v6406_v55, %v6405_v26 }
 0x2c6   : > { %v12752_v33 = vsel %vm12749_vm6, %v12750_v21, %v12751_v6  ;;  %vm11786_vm7 = vcmp.lt.s32.totalorder %v12758_v10, 16  ;;  %v6392_v43 = vrot.slane %v6387_v12, 4  ;;  %v6394_v61 = vshrl.u32 %v7215_v34, 16 }
 0x2c7   : > { %vm11777_vm14 = vcmp.lt.s32.totalorder %v12752_v33, 16  ;;  %v6439_v50 = vshrl.u32 %v11735_v36, 16  ;;  %v6391_v18 = vsel %vm11107_vm2, %v6383_v51, %v6390_v17  ;;  %v6418_v23 = vsel %vm11107_vm2, %v6410_v0, %v6417_v1 }
 0x2c8   : > { %v4942_v31 = vmax.f32 %v4894_v53, 0.0  ;;  %v4945_v56 = vmax.f32 %v4897_v16, 0.0  ;;  %6643 = vst [vmem:[%s9741_s9 + $0x7c] sm:$0xf] %v6391_v18  ;;  %6646 = vst [vmem:[%s9741_s9 + $0x88] sm:$0xf] %v6418_v23  ;;  %v4895_v11 = vadd.f32 %v11760_v27, %v7946_v9  ;;  %v4900_v26 = vadd.f32 %v11760_v27, %v7947_v54 }
 0x2c9   : > { %v6396_v5 = vrot.slane %v6394_v61, 7  ;;  %v6397_v25 = vshll.u32 %v7215_v34, 16  ;;  %v7948_v40 = vadd.f32 %v11577_v59, %v11560_v49  ;;  %v7949_v53 = vadd.f32 %v11602_v2, %v12761_v8  ;;  %v12764_v18 = vld [vmem:[#allocation115_spill] sm:$0xff] }
 0x2ca   : > { %v5951_v55 = vsel %vm11693_vm15, %v4942_v31, 0.0  ;;  %v5954_v12 = vsel %vm11702_vm12, %v4945_v56, 0.0  ;;  %v6441_v51 = vrot.slane %v6439_v50, 7  ;;  %v6442_v9 = vshll.u32 %v11735_v36, 16  ;;  %v12762_v50 = vld [vmem:[#allocation117_spill] sm:$0xff]  ;;  %v12765_v23 = vld [vmem:[#allocation107_spill] sm:$0xff] }
 0x2cb   : > { %v6399_v16 = vor.u32 %v6397_v25, %v6396_v5  ;;  %v6401_v34 = vrot.slane %v6396_v5, 4  ;;  %v7218_v54 = vpack.c.bf16 %v5951_v55, %v5951_v55  ;;  %v7221_v0 = vpack.c.bf16 %v5954_v12, %v5954_v12  ;;  %v12771_v5 = vld [vmem:[#allocation108_spill] sm:$0xff] }
 0x2cc   : > { %v4943_v46 = vmax.f32 %v4895_v11, 0.0  ;;  %v4948_v17 = vmax.f32 %v4900_v26, 0.0  ;;  %v4898_v49 = vadd.f32 %v11760_v27, %v7948_v40  ;;  %v4901_v59 = vadd.f32 %v11760_v27, %v7949_v53 }
 0x2cd   : > { %v6400_v41 = vsel %vm11107_vm2, %v6392_v43, %v6399_v16  ;;  %v6409_v1 = vsel %vm11107_vm2, %v6401_v34, %v6408_v35  ;;  %v6421_v2 = vshrl.u32 %v7218_v54, 16  ;;  %v6424_v21 = vshll.u32 %v7218_v54, 16 }
 0x2ce   : > { %6644 = vst [vmem:[%s9741_s9 + $0x80] sm:$0xf] %v6400_v41  ;;  %6645 = vst [vmem:[%s9741_s9 + $0x84] sm:$0xf] %v6409_v1  ;;  %v6448_v6 = vshrl.u32 %v7221_v0, 16  ;;  %v6451_v36 = vshll.u32 %v7221_v0, 16  ;;  %vm12763_vm10 = vnez %v12762_v50  ;;  %v12772_v25 = vsel %vm10987_vm9, %v12770_v28, %v12771_v5 }
 0x2cf   : > { %v5952_v33 = vsel %vm11742_vm3, %v4943_v46, 0.0  ;;  %v5957_v29 = vsel %vm11751_vm0, %v4948_v17, 0.0  ;;  %v4946_v3 = vmax.f32 %v4898_v49, 0.0  ;;  %v4949_v15 = vmax.f32 %v4901_v59, 0.0  ;;  %vm11844_vm3 = vmand %vm5629_vm8, %vm5581_vm13  ;;  %v12779_v41 = vld [vmem:[#allocation118_spill] sm:$0xff]  ;;  %v12786_v59 = vld [vmem:[#allocation112_spill] sm:$0xff] }
 0x2d0   : > { %v6423_v10 = vrot.slane %v6421_v2, 7  ;;  %v6450_v35 = vrot.slane %v6448_v6, 7  ;;  %v7219_v43 = vpack.c.bf16 %v5952_v33, %v5952_v33  ;;  %v11820_v61 = vpack.c.bf16 %v5957_v29, %v5957_v29 }
 0x2d1   : > { %v12766_v31 = vsel %vm12763_vm10, %v12764_v18, %v12765_v23  ;;  %vm11836_vm12 = vcmp.lt.s32.totalorder %v12772_v25, 16  ;;  %v5955_v55 = vsel %vm11777_vm14, %v4946_v3, 0.0  ;;  %v5958_v12 = vsel %vm11786_vm7, %v4949_v15, 0.0 }
 0x2d2   : > { %vm11827_vm15 = vcmp.lt.s32.totalorder %v12766_v31, 16  ;;  %v7950_v40 = vadd.f32 %v11609_v4, %v11572_v60  ;;  %v7951_v8 = vadd.f32 %v11657_v22, %v11623_v48  ;;  %v6419_v53 = vrot.slane %v11733_v58, 4 }
 0x2d3   : > { %v6446_v16 = vrot.slane %v6441_v51, 4  ;;  %v6426_v34 = vor.u32 %v6424_v21, %v6423_v10  ;;  %v6453_v54 = vor.u32 %v6451_v36, %v6450_v35  ;;  %v6444_v0 = vor.u32 %v6442_v9, %v6441_v51  ;;  %v12780_v51 = vld [vmem:[#allocation110_spill] sm:$0xff] }
 0x2d4   : > { %v6430_v46 = vshrl.u32 %v7219_v43, 16  ;;  %v6475_v20 = vshrl.u32 %v11820_v61, 16  ;;  %v5773_v17 = vsel %vm11844_vm3, %v12777_v63, %v11056_v30  ;;  %v7222_v48 = vpack.c.bf16 %v5955_v55, %v5955_v55  ;;  %v12785_v30 = vld [vmem:[#allocation121_spill] sm:$0xff] }
 0x2d5   : > { %v6427_v60 = vsel %vm11107_vm2, %v6419_v53, %v6426_v34  ;;  %v6454_v4 = vsel %vm11107_vm2, %v6446_v16, %v6453_v54  ;;  %v7225_v22 = vpack.c.bf16 %v5958_v12, %v5958_v12  ;;  %v12781_v9 = vsel %vm11003_vm11, %v12779_v41, %v12780_v51  ;;  %v12792_v16 = vld [vmem:[#allocation123_spill] sm:$0xff]  ;;  %v12793_v34 = vld [vmem:[#allocation113_spill] sm:$0xff] }
 0x2d6   : > { %vm11871_vm9 = vcmp.lt.s32.totalorder %v12781_v9, 16  ;;  %v12787_v2 = vsel %vm11029_vm1, %v12785_v30, %v12786_v59  ;;  %6647 = vst [vmem:[%s9741_s9 + $0x8c] sm:$0xf] %v6427_v60  ;;  %6650 = vst [vmem:[%s9741_s9 + $0x98] sm:$0xf] %v6454_v4  ;;  %v6432_v6 = vrot.slane %v6430_v46, 7  ;;  %v4899_v33 = vadd.f32 %v11760_v27, %v7950_v40 }
 0x2d7   : > { %vm11880_vm4 = vcmp.lt.s32.totalorder %v12787_v2, 16  ;;  %v6433_v36 = vshll.u32 %v7219_v43, 16  ;;  %v4904_v29 = vadd.f32 %v11760_v27, %v7951_v8  ;;  %v6428_v3 = vrot.slane %v6423_v10, 4  ;;  %v12790_v43 = vld [vmem:[#allocation10_spill] sm:$0xff] }
 0x2d8   : > { %v6477_v15 = vrot.slane %v6475_v20, 7  ;;  %v6457_v50 = vshrl.u32 %v7222_v48, 16  ;;  %v6484_v18 = vshrl.u32 %v7225_v22, 16  ;;  %v6437_v31 = vrot.slane %v6432_v6, 4 }
 0x2d9   : > { %v6435_v23 = vor.u32 %v6433_v36, %v6432_v6  ;;  %v6460_v57 = vshll.u32 %v7222_v48, 16  ;;  %v6487_v28 = vshll.u32 %v7225_v22, 16  ;;  %v4947_v26 = vmax.f32 %v4899_v33, 0.0 }
 0x2da   : > { %v6459_v5 = vrot.slane %v6457_v50, 7  ;;  %v11888_v25 = vrot.slane %v6484_v18, 7  ;;  %v4952_v55 = vmax.f32 %v4904_v29, 0.0  ;;  %vm5579_vm11 = vcmp.ne.s32.totalorder %v12790_v43, 0 }
 0x2db   : > { %v6436_v12 = vsel %vm11107_vm2, %v6428_v3, %v6435_v23  ;;  %v6445_v10 = vsel %vm11107_vm2, %v6437_v31, %v6444_v0  ;;  %v7952_v40 = vadd.f32 %v11665_v13, %v11629_v47  ;;  %v7953_v8 = vadd.f32 %v11668_v24, %v11649_v19 }
 0x2dc   : > { %v12794_v54 = vsel %vm11045_vm5, %v12792_v16, %v12793_v34  ;;  %v6455_v20 = vrot.slane %v6450_v35, 4  ;;  %6648 = vst [vmem:[%s9741_s9 + $0x90] sm:$0xf] %v6436_v12  ;;  %6649 = vst [vmem:[%s9741_s9 + $0x94] sm:$0xf] %v6445_v10  ;;  %v6482_v0 = vrot.slane %v6477_v15, 4  ;;  %v6462_v63 = vor.u32 %v6460_v57, %v6459_v5 }
 0x2dd   : > { %vm11904_vm1 = vcmp.lt.s32.totalorder %v12794_v54, 16  ;;  %v6489_v47 = vor.u32 %v6487_v28, %v11888_v25  ;;  %vm11911_vm0 = vcmp.lt.s32.totalorder %v5773_v17, 16  ;;  %v5956_v13 = vsel %vm11827_vm15, %v4947_v26, 0.0  ;;  %v12801_v16 = vld [vmem:[#allocation8_spill] sm:$0xff]  ;;  %v12802_v34 = vld [vmem:[#allocation109_spill] sm:$0xff] }
 0x2de   : > { %v5961_v24 = vsel %vm11836_vm12, %v4952_v55, 0.0  ;;  %v4902_v60 = vadd.f32 %v11760_v27, %v7952_v40  ;;  %v4905_v35 = vadd.f32 %v11760_v27, %v7953_v8  ;;  %v6463_v4 = vsel %vm11107_vm2, %v6455_v20, %v6462_v63 }
 0x2df   : > { %v6490_v48 = vsel %vm11107_vm2, %v6482_v0, %v6489_v47  ;;  %v7223_v17 = vpack.c.bf16 %v5956_v13, %v5956_v13  ;;  %v11925_v22 = vpack.c.bf16 %v5961_v24, %v5961_v24  ;;  %6651 = vst [vmem:[%s9741_s9 + $0x9c] sm:$0xf] %v6463_v4  ;;  %v7954_v11 = vadd.f32 %v11673_v44, %v11659_v45  ;;  %v12803_v24 = vld [vmem:[#allocation5_spill] sm:$0xff] }
 0x2e0   : > { %6654 = vst [vmem:[%s9741_s9 + $0xa8] sm:$0xf] %v6490_v48  ;;  %v4950_v56 = vmax.f32 %v4902_v60, 0.0  ;;  %v4953_v58 = vmax.f32 %v4905_v35, 0.0  ;;  %v7955_v41 = vadd.f32 %v11715_v37, %v11684_v38  ;;  %v6478_v51 = vshll.u32 %v11820_v61, 16 }
 0x2e1   : > { %v6466_v9 = vshrl.u32 %v7223_v17, 16  ;;  %v6511_v49 = vshrl.u32 %v11925_v22, 16  ;;  %vm5627_vm5 = vcmp.lt.s32.totalorder %v12790_v43, 0  ;;  %v4903_v2 = vadd.f32 %v11760_v27, %v7954_v11 }
 0x2e2   : > { %v5959_v30 = vsel %vm11871_vm9, %v4950_v56, 0.0  ;;  %v5962_v59 = vsel %vm11880_vm4, %v4953_v58, 0.0  ;;  %v4908_v45 = vadd.f32 %v11760_v27, %v7955_v41  ;;  %v6469_v6 = vshll.u32 %v7223_v17, 16  ;;  %vm11949_vm13 = vmand %vm5627_vm5, %vm5579_vm11 }
 0x2e3   : > { %v6468_v44 = vrot.slane %v6466_v9, 7  ;;  %v7226_v38 = vpack.c.bf16 %v5959_v30, %v5959_v30  ;;  %v7229_v37 = vpack.c.bf16 %v5962_v59, %v5962_v59  ;;  %v6480_v61 = vor.u32 %v6478_v51, %v6477_v15 }
 0x2e4   : > { %v4951_v36 = vmax.f32 %v4903_v2, 0.0  ;;  %v4956_v33 = vmax.f32 %v4908_v45, 0.0  ;;  %v7956_v1 = vadd.f32 %v11719_v32, %v11706_v14  ;;  %v6464_v29 = vrot.slane %v6459_v5, 4 }
 0x2e5   : > { %v6471_v3 = vor.u32 %v6469_v6, %v6468_v44  ;;  %v6473_v21 = vrot.slane %v6468_v44, 4  ;;  %v5723_v50 = vadd.s32 24, %v12790_v43  ;;  %v6513_v18 = vrot.slane %v6511_v49, 7 }
 0x2e6   : > { %v6493_v23 = vshrl.u32 %v7226_v38, 16  ;;  %v6496_v31 = vshll.u32 %v7226_v38, 16  ;;  %v6520_v57 = vshrl.u32 %v7229_v37, 16  ;;  %v6523_v28 = vshll.u32 %v7229_v37, 16 }
 0x2e7   : > { %v6472_v14 = vsel %vm11107_vm2, %v6464_v29, %v6471_v3  ;;  %v6481_v32 = vsel %vm11107_vm2, %v6473_v21, %v6480_v61  ;;  %v5960_v5 = vsel %vm11904_vm1, %v4951_v36, 0.0  ;;  %v5965_v10 = vsel %vm11911_vm0, %v4956_v33, 0.0 }
 0x2e8   : > { %6652 = vst [vmem:[%s9741_s9 + $0xa0] sm:$0xf] %v6472_v14  ;;  %6653 = vst [vmem:[%s9741_s9 + $0xa4] sm:$0xf] %v6481_v32  ;;  %v6495_v26 = vrot.slane %v6493_v23, 7  ;;  %v11961_v55 = vrot.slane %v6520_v57, 7  ;;  %v7227_v12 = vpack.c.bf16 %v5960_v5, %v5960_v5  ;;  %v4906_v40 = vadd.f32 %v11760_v27, %v7956_v1 }
 0x2e9   : > { %v5771_v8 = vsel %vm11949_vm13, %v5723_v50, %v12790_v43  ;;  %v7957_v53 = vadd.f32 %v11729_v62, %v11712_v52  ;;  %v5532_v54 = vsub.s32 %v12802_v34, %v12801_v16  ;;  %v6491_v46 = vrot.slane %v11888_v25, 4  ;;  %v12804_v5 = vld [vmem:[#allocation6_spill] sm:$0xff] }
 0x2ea   : > { %v6518_v20 = vrot.slane %v6513_v18, 4  ;;  %v6498_v0 = vor.u32 %v6496_v31, %v6495_v26  ;;  %v6525_v63 = vor.u32 %v6523_v28, %v11961_v55  ;;  %v6514_v47 = vshll.u32 %v11925_v22, 16  ;;  %v6663_v31 = vld [vmem:[%s9741_s9 + $0xcc] sm:$0x1] }
 0x2eb   : > { %v6502_v19 = vshrl.u32 %v7227_v12, 16  ;;  %v11976_v13 = vpack.c.bf16 %v5965_v10, %v5965_v10  ;;  %v11979_v43 = vadd.s32 360, %v12803_v24  ;;  %v4954_v60 = vmax.f32 %v4906_v40, 0.0 }
 0x2ec   : > { %v6499_v52 = vsel %vm11107_vm2, %v6491_v46, %v6498_v0  ;;  %v6526_v62 = vsel %vm11107_vm2, %v6518_v20, %v6525_v63  ;;  %vm5819_vm8 = vcmp.lt.s32.totalorder %v5771_v8, 16  ;;  %v6505_v35 = vshll.u32 %v7227_v12, 16 }
 0x2ed   : > { %6655 = vst [vmem:[%s9741_s9 + $0xac] sm:$0xf] %v6499_v52  ;;  %6658 = vst [vmem:[%s9741_s9 + $0xb8] sm:$0xf] %v6526_v62  ;;  %v6504_v25 = vrot.slane %v6502_v19, 7  ;;  %v4909_v4 = vadd.f32 %v11760_v27, %v7957_v53  ;;  %vm5582_vm6 = vcmp.ne.s32.totalorder %v5532_v54, 0  ;;  %v7958_v22 = vadd.f32 %v11755_v7, %v11717_v42 }
 0x2ee   : > { %v5963_v48 = vsel %vm5819_vm8, %v4954_v60, 0.0  ;;  %vm5630_vm14 = vcmp.lt.s32.totalorder %v5532_v54, 0  ;;  %v5726_v17 = vadd.s32 24, %v5532_v54  ;;  %v6516_v56 = vor.u32 %v6514_v47, %v6513_v18 }
 0x2ef   : > { %v6500_v58 = vrot.slane %v6495_v26, 4  ;;  %v6507_v11 = vor.u32 %v6505_v35, %v6504_v25  ;;  %v6509_v41 = vrot.slane %v6504_v25, 4  ;;  %vm5678_vm7 = vmand %vm5630_vm14, %vm5582_vm6  ;;  %v6547_v51 = vshrl.u32 %v11976_v13, 16 }
 0x2f0   : > { %v7230_v9 = vpack.c.bf16 %v5963_v48, %v5963_v48  ;;  %v4957_v49 = vmax.f32 %v4909_v4, 0.0  ;;  %v5774_v30 = vsel %vm5678_vm7, %v5726_v17, %v5532_v54  ;;  %v8697_v45 = vmov 0  }
 0x2f1   : > { %v6508_v42 = vsel %vm11107_vm2, %v6500_v58, %v6507_v11  ;;  %v6517_v7 = vsel %vm11107_vm2, %v6509_v41, %v6516_v56  ;;  %vm5822_vm10 = vcmp.lt.s32.totalorder %v5774_v30, 16  ;;  %5991 = vst [vmem:[%s9741_s9] sm:$0xf] %v8697_v45  ;;  %5992 = vst [vmem:[%s9741_s9 + $0x4] sm:$0xf] %v8697_v45  ;;  %v6549_v37 = vrot.slane %v6547_v51, 7 }
 0x2f2   : > { %6656 = vst [vmem:[%s9741_s9 + $0xb0] sm:$0xf] %v6508_v42  ;;  %6657 = vst [vmem:[%s9741_s9 + $0xb4] sm:$0xf] %v6517_v7  ;;  %v6529_v59 = vshrl.u32 %v7230_v9, 16  ;;  %v5966_v2 = vsel %vm5822_vm10, %v4957_v49, 0.0  ;;  %v4907_v14 = vadd.f32 %v11760_v27, %v7958_v22  ;;  %vm12805_vm15 = vnez %v12804_v5 }
 0x2f3   : > { %5993 = vst [vmem:[%s9741_s9 + $0x8] sm:$0xf] %v8697_v45  ;;  %6006 = vst [vmem:[%s9741_s9 + $0xd0] sm:$0xf] %v8697_v45  ;;  %v7233_v44 = vpack.c.bf16 %v5966_v2, %v5966_v2  ;;  %v12006_v6 = vmul.u32.u64.low 2863311531, %v11979_v43  ;;  %v12007_v38 = vmul.u32.u64.high 2863311531, %v11979_v43, %v12006_v6 }
 0x2f4   : > { %6007 = vst [vmem:[%s9741_s9 + $0xd4] sm:$0xf] %v8697_v45  ;;  %6008 = vst [vmem:[%s9741_s9 + $0xd8] sm:$0xf] %v8697_v45  ;;  %v6531_v61 = vrot.slane %v6529_v59, 7  ;;  %v6532_v36 = vshll.u32 %v7230_v9, 16 }
 0x2f5   : > { %6009 = vst [vmem:[%s9741_s9 + $0xdc] sm:$0xf] %v8697_v45  ;;  %6010 = vst [vmem:[%s9741_s9 + $0xe0] sm:$0xf] %v8697_v45  ;;  %v6556_v33 = vshrl.u32 %v7233_v44, 16  ;;  %v6527_v1 = vrot.slane %v11961_v55, 4 }
 0x2f6   : > { %v6534_v29 = vor.u32 %v6532_v36, %v6531_v61  ;;  %v6559_v21 = vshll.u32 %v7233_v44, 16  ;;  %v5508_v50 = vshrl.u32 %v12007_v38, 4  ;;  %v6554_v18 = vrot.slane %v6549_v37, 4 }
 0x2f7   : > { %v6558_v3 = vrot.slane %v6556_v33, 7  ;;  %v4955_v12 = vmax.f32 %v4907_v14, 0.0  ;;  %v6550_v16 = vshll.u32 %v11976_v13, 16  ;;  %v6536_v20 = vrot.slane %v6531_v61, 4 }
 0x2f8   : > { %v6535_v23 = vsel %vm11107_vm2, %v6527_v1, %v6534_v29  ;;  %v5509_v32 = vmul.u32 24, %v5508_v50 }
 0x2f9   : > { %6659 = vst [vmem:[%s9741_s9 + $0xbc] sm:$0xf] %v6535_v23  ;;  %v6561_v57 = vor.u32 %v6559_v21, %v6558_v3  ;;  %v6563_v15 = vrot.slane %v6558_v3, 4  ;;  %v6552_v46 = vor.u32 %v6550_v16, %v6549_v37 }
 0x2fa   : > { %v5510_v55 = vsub.s32 %v11979_v43, %v5509_v32 }
 0x2fb   : > { %v6562_v28 = vsel %vm11107_vm2, %v6554_v18, %v6561_v57  ;;  %v6664_v26 = vsel %vm12805_vm15, %v6563_v15, %v6663_v31 }
 0x2fc   : > { %6662 = vst [vmem:[%s9741_s9 + $0xc8] sm:$0xf] %v6562_v28  ;;  %6665 = vst [vmem:[%s9741_s9 + $0xcc] sm:$0x1] %v6664_v26  ;;  %vm5580_vm12 = vcmp.ne.s32.totalorder %v5510_v55, 0  ;;  %vm5628_vm3 = vcmp.lt.s32.totalorder %v5510_v55, 0 }
 0x2fd   : > { %v5724_v10 = vadd.s32 24, %v5510_v55  ;;  %vm5676_vm9 = vmand %vm5628_vm3, %vm5580_vm12 }
 0x2ff   : > { %v5772_v40 = vsel %vm5676_vm9, %v5724_v10, %v5510_v55 }
 0x300   : > { %vm5820_vm4 = vcmp.lt.s32.totalorder %v5772_v40, 16 }
 0x301   : > { %v5964_v27 = vsel %vm5820_vm4, %v4955_v12, 0.0 }
 0x302   : > { %v7231_v8 = vpack.c.bf16 %v5964_v27, %v5964_v27 }
 0x304   : > { %v6538_v53 = vshrl.u32 %v7231_v8, 16  ;;  %v6541_v54 = vshll.u32 %v7231_v8, 16 }
 0x306   : > { %v6540_v34 = vrot.slane %v6538_v53, 7 }
 0x308   : > { %v6543_v0 = vor.u32 %v6541_v54, %v6540_v34  ;;  %v6545_v63 = vrot.slane %v6540_v34, 4 }
 0x30a   : > { %v6544_v47 = vsel %vm11107_vm2, %v6536_v20, %v6543_v0  ;;  %v6553_v19 = vsel %vm11107_vm2, %v6545_v63, %v6552_v46 }
 0x30b   : > { %6660 = vst [vmem:[%s9741_s9 + $0xc0] sm:$0xf] %v6544_v47  ;;  %6661 = vst [vmem:[%s9741_s9 + $0xc4] sm:$0xf] %v6553_v19 }
 0x30c   : > { %8630 = shalt.err (!%p8627_p5)
}
 0x30d   : > { %s8631_s6 = scalar_lea.hbm %s12029_s28, 3648  ;;  %s8635_s9 = scalar_lea.hbm %s12090_s3, 7296 }
 0x30e   : > { %p8632_p6 = scmp.ne.s32.totalorder %s12029_s28, %s8631_s6  ;;  %p8636_p10 = scmp.lt.u32.totalorder %s12029_s28, %s12090_s3 }
 0x30f   : > { %p8637_p11 = scmp.lt.u32.totalorder %s8635_s9, %s8631_s6  ;;  %p8639_p13 = scmp.lt.u32.totalorder %s8631_s6, %s12029_s28 }
 0x310   : > { %p8633_p7 = pnand %p8632_p6, %p8761_p4 }
 0x311   : > { %p8638_p12 = por %p8637_p11, %p8636_p10 }
 0x312   : > { %p8634_p9 = pneg %p8633_p7 }
 0x313   : > { %p8640_p0 = por %p8639_p13, %p8638_p12 }
 0x315   : > { %p8641_p1 = pnand %p8640_p0, %p8634_p9 }
 0x317   : > { %8644 = shalt.err (!%p8641_p1)
}
 0x318   : > { %s8699_s18 = smov 64   ;;  %s8700_s19 = smov 4  }
 0x319   : > { %8404 = dma.vmem_to_hbm [thread:$0]  (%p8761_p4), %s12031_s23, 3648, %s12029_s28, %s12041_s15, %s8699_s18, %s8699_s18, %s8700_s19  }
 0x31a PF: > { %p8410_p2 = scmp.ge.s32.totalorder %s8695_s17, 2  ;;  %s6696_s21 = sand.u32 1, %s8675_s12  }
 0x31b   : > { %s6697_s26 = scalar_lea.sflag [#allocation3], %s6696_s21 }
 0x31c   : > { %p8407_p3 = pnand %p8410_p2, %p8768_p8 }
 0x31e   : > { %8670 = dma.done.wait (!%p8407_p3), %s6697_s26, 3648  }
 0x31f   : > { %8672 = vsyncadd (!%p8407_p3), %s6697_s26, 4294963648  ;;  %s16_s17 = sadd.s32 1, %s8695_s17   ;;  %s12806_s12 = smov %s8679_s13 }
 0x320   : > { %p13_p5 = scmp.ge.s32.totalorder %s16_s17, 4   ;;  %s12807_s13 = smov %s8683_s14 }
 0x321   : > { %s12808_s14 = smov %s8774_s25  ;;  %s12809_s15 = smov %s8691_s16 }
 0x322   : > { %s12810_s16 = smov %s12812_s20  ;;  %15 = sbr.rel (!%p13_p5) target bundleno = 4 (0x4), region = 73 }
 0x329   :  { %6702 = vsyncpa [#allocation3], 1 }
 0x32a   :  { %6704 = vsyncpa [#allocation3 + $0x1], 1 }

</bundles_post_ra>
